<compile_context>
chip_gen: v7x
topology: tpu7x:2x2x1
jax: 0.10.0
libtpu: 0.0.40
codegen_flags: <defaults>
</compile_context>

<pallas_src>
import math

import jax
import jax.numpy as jnp
from jax.experimental import pallas as pl
from jax.experimental.pallas import tpu as pltpu


# ------------------------- VMEM budgeting helpers -------------------------

def _vmem_capacity_bytes():
    """Physical VMEM per TensorCore (v5e/v6e: 128 MiB, v7x: 64 MiB)."""
    try:
        return int(pltpu.get_tpu_info().vmem_capacity_bytes)
    except Exception:
        return 64 * 1024 * 1024  # conservative (v7x-sized) fallback


_VMEM_BYTES = _vmem_capacity_bytes()


def _vmem_limit_bytes():
    # Leave headroom below physical VMEM: ~108 MiB on v5e/v6e, ~54 MiB on v7x.
    return int(min(0.85 * _VMEM_BYTES, 110 * 1024 * 1024))


def _attn_tiles(N, d_pair):
    """Pick (tq, tk) so the double-buffered bf16 z block fits a VMEM budget."""
    tq = N if N <= 128 else 128
    z_budget = int(0.35 * _VMEM_BYTES)           # double-buffered bf16 z stream
    tk_cap = max(128, z_budget // max(1, 2 * tq * d_pair * 2))
    if N <= tk_cap:
        tk = N
    else:
        tk = (min(tk_cap, N) // 128) * 128
        while tk > 128 and N % tk:
            tk -= 128
    # TODO(synk): support N not divisible by the tiles via in-kernel masking.
    assert N % tq == 0 and N % tk == 0, (N, tq, tk)
    return tq, tk


# ------------------------- tiled linear kernel -------------------------

def _linear_kernel(x_ref, w_ref, b_ref, o_ref):
    # x: [bm, d_in], w: [d_in, d_out], b: [1, d_out]
    o_ref[...] = (
        jnp.dot(x_ref[...], w_ref[...], preferred_element_type=jnp.float32)
        + b_ref[...]
    ).astype(o_ref.dtype)


def pallas_linear(x, w, b, *, block_rows=512):
    """y = x @ w + b, tiled over rows so large inputs pipeline DMA/compute."""
    m, d_in = x.shape
    d_out = w.shape[1]
    bm = m if m <= block_rows else block_rows
    grid = (pl.cdiv(m, bm),)
    return pl.pallas_call(
        _linear_kernel,
        out_shape=jax.ShapeDtypeStruct((m, d_out), jnp.float32),
        grid_spec=pltpu.PrefetchScalarGridSpec(
            num_scalar_prefetch=0,
            grid=grid,
            in_specs=[
                pl.BlockSpec((bm, d_in), lambda i: (i, 0)),
                pl.BlockSpec((d_in, d_out), lambda i: (0, 0)),
                pl.BlockSpec((1, d_out), lambda i: (0, 0)),
            ],
            out_specs=pl.BlockSpec((bm, d_out), lambda i: (i, 0)),
        ),
        compiler_params=pltpu.CompilerParams(
            dimension_semantics=("parallel",),
            vmem_limit_bytes=_vmem_limit_bytes(),
        ),
    )(x, w, b.reshape(1, d_out))


# ------------------- fused flash-style IPA attention kernel -------------------

def _ipa_flash_kernel(a_ref, b_ref, v_ref, sqk_ref, wbs_ref, mask_ref, z_ref,
                      ov_ref, opair_ref,
                      m_scr, l_scr, acc_ov, acc_pair):
    """One (query-tile, key-tile) step; all heads computed inside.

    a_ref:    [H, tq, dqk]      f32  per-head (scalar_scale*q | -2*scale_h*q_pts)
    b_ref:    [H, tk, dqk]      f32  per-head (k | k_pts)
    v_ref:    [H, tk, dv]       bf16 per-head (v | v_pts)
    sqk_ref:  [H, 1,  tk]       f32  scale_h*|k_pts|^2 + bias_scale*bb[h]
    wbs_ref:  [H, d_pair]       bf16 bias_scale * wb^T
    mask_ref: [tq, tk]          f32  additive mask
    z_ref:    [tq, tk, d_pair]  bf16
    Scratch (persist across key tiles for a given query tile):
    m_scr/l_scr: [H, tq, 1] f32 running max / denom
    acc_ov:      [H, tq, dv] f32
    acc_pair:    [tq, H, d_pair] f32
    """
    H, tq, _ = a_ref.shape
    d_pair = z_ref.shape[2]
    ki = pl.program_id(1)
    nk = pl.num_programs(1)

    @pl.when(ki == 0)
    def _init():
        m_scr[...] = jnp.full_like(m_scr, -1e30)
        l_scr[...] = jnp.zeros_like(l_scr)
        acc_ov[...] = jnp.zeros_like(acc_ov)
        acc_pair[...] = jnp.zeros_like(acc_pair)

    z = z_ref[...]                        # resident bf16 z tile (read once)
    mask = mask_ref[...]

    # Pair bias for all heads from the resident z tile (batched MXU dot).
    # Kept in this orientation so each head's slice is already tk-lane-dense
    # (no relayout into the logits); MXU cost hides under the HBM z stream.
    wbs_b = jnp.broadcast_to(wbs_ref[...][None, :, :], (tq, H, d_pair))
    bias_all = jax.lax.dot_general(
        wbs_b, z, (((2,), (2,)), ((0,), (0,))),
        preferred_element_type=jnp.float32)               # [tq, H, tk]

    p_list = []
    alpha_list = []
    for h in range(H):
        # scalar QK term + (-2*scale_h)*qp.kp cross term in one MXU dot; the
        # row-constant scale_h*|qp|^2 term is softmax-invariant and dropped.
        logits = jax.lax.dot_general(
            a_ref[h], b_ref[h], (((1,), (1,)), ((), ())),
            preferred_element_type=jnp.float32)           # [tq, tk]
        logits = logits + sqk_ref[h] + bias_all[:, h, :] + mask

        # online softmax update
        m_prev = m_scr[h]                                  # [tq, 1]
        m_new = jnp.maximum(m_prev, jnp.max(logits, axis=-1, keepdims=True))
        alpha = jnp.exp(m_prev - m_new)                    # [tq, 1]
        p = jnp.exp(logits - m_new)                        # [tq, tk] f32
        l_scr[h] = alpha * l_scr[h] + jnp.sum(p, axis=-1, keepdims=True)
        m_scr[h] = m_new

        pb = p.astype(v_ref.dtype)                         # bf16 for the MXU
        acc_ov[h] = alpha * acc_ov[h] + jnp.dot(
            pb, v_ref[h], preferred_element_type=jnp.float32)  # [tq, dv]

        p_list.append(pb)
        alpha_list.append(alpha)

    # o_pair contribution for all heads: batched MXU dot against the same tile.
    p_all = jnp.stack(p_list, axis=1)                      # [tq, H, tk] bf16
    alpha_all = jnp.stack(alpha_list, axis=1)              # [tq, H, 1]  f32
    contrib = jax.lax.dot_general(
        p_all, z, (((2,), (1,)), ((0,), (0,))),
        preferred_element_type=jnp.float32)                # [tq, H, d_pair]
    acc_pair[...] = alpha_all * acc_pair[...] + contrib

    @pl.when(ki == nk - 1)
    def _finalize():
        inv_list = []
        for h in range(H):
            inv_l = pl.reciprocal(l_scr[h], approx=True)   # [tq, 1]
            ov_ref[h] = (acc_ov[h] * inv_l).astype(ov_ref.dtype)
            inv_list.append(inv_l)
        inv_all = jnp.stack(inv_list, axis=1)              # [tq, H, 1]
        opair_ref[...] = (acc_pair[...] * inv_all).astype(opair_ref.dtype)


def ipa_attention_pallas(a_hm, b_hm, v_hm, sqk_hm, wbs, square_mask, z):
    H, N, dqk = a_hm.shape
    dv = v_hm.shape[-1]
    d_pair = z.shape[-1]
    tq, tk = _attn_tiles(N, d_pair)
    grid = (N // tq, N // tk)

    return pl.pallas_call(
        _ipa_flash_kernel,
        out_shape=(
            jax.ShapeDtypeStruct((H, N, dv), jnp.float32),      # head-major ov
            jax.ShapeDtypeStruct((N, H, d_pair), jnp.float32),  # lane-dense o_pair
        ),
        grid_spec=pltpu.PrefetchScalarGridSpec(
            num_scalar_prefetch=0,
            grid=grid,
            in_specs=[
                pl.BlockSpec((H, tq, dqk), lambda qi, ki: (0, qi, 0)),   # A (q)
                pl.BlockSpec((H, tk, dqk), lambda qi, ki: (0, ki, 0)),   # B (k)
                pl.BlockSpec((H, tk, dv), lambda qi, ki: (0, ki, 0)),    # V|Vpts
                pl.BlockSpec((H, 1, tk), lambda qi, ki: (0, 0, ki)),     # |kp|^2
                pl.BlockSpec((H, d_pair), lambda qi, ki: (0, 0)),        # wb^T
                pl.BlockSpec((tq, tk), lambda qi, ki: (qi, ki)),         # mask
                pl.BlockSpec((tq, tk, d_pair), lambda qi, ki: (qi, ki, 0)),  # z
            ],
            out_specs=[
                pl.BlockSpec((H, tq, dv), lambda qi, ki: (0, qi, 0)),
                pl.BlockSpec((tq, H, d_pair), lambda qi, ki: (qi, 0, 0)),
            ],
            scratch_shapes=[
                pltpu.VMEM((H, tq, 1), jnp.float32),        # running max
                pltpu.VMEM((H, tq, 1), jnp.float32),        # running denom
                pltpu.VMEM((H, tq, dv), jnp.float32),       # (v|v_pts) accum
                pltpu.VMEM((tq, H, d_pair), jnp.float32),   # o_pair accum
            ],
        ),
        compiler_params=pltpu.CompilerParams(
            dimension_semantics=("parallel", "arbitrary"),
            vmem_limit_bytes=_vmem_limit_bytes(),
        ),
    )(a_hm, b_hm, v_hm, sqk_hm, wbs, square_mask, z)


# ------------------------- forward pass -------------------------

def make_ipa_forward(*, d_single, d_pair, d_hid, num_heads, num_qk_points,
                     num_v_points, eps=1e-8):
    H, Pq, Pv = num_heads, num_qk_points, num_v_points
    hc = H * d_hid
    scalar_scale = math.sqrt(1.0 / (3 * d_hid))
    bias_scale = math.sqrt(1.0 / 3.0)
    pt_scale = math.sqrt(1.0 / (3 * (Pq * 9.0 / 2)))

    def forward(s, z, rot, trans, square_mask, params):
        N = s.shape[0]

        # --- single fused projection of s (one read of s, lane-dense out) ---
        w_s = jnp.concatenate(
            [params["wq"], params["wkv"], params["wqp"], params["wkvp"]], axis=1)
        b_s = jnp.concatenate(
            [params["bq"], params["bkv"], params["bqp"], params["bkvp"]], axis=0)
        proj = pallas_linear(s, w_s, b_s)                    # [N, total]

        o0, o1 = 0, hc
        q = proj[:, o0:o1].reshape(N, H, d_hid)
        o0, o1 = o1, o1 + 2 * hc
        kv = proj[:, o0:o1].reshape(N, H, 2 * d_hid)
        k, v = kv[..., :d_hid], kv[..., d_hid:]
        o0, o1 = o1, o1 + H * Pq * 3
        qp_raw = proj[:, o0:o1]
        o0, o1 = o1, o1 + H * (Pq + Pv) * 3
        kvp_raw = proj[:, o0:o1]

        def to_points(raw):
            # torch: split last dim into 3 chunks (x, y, z), stack -> [N, M, 3]
            xyz = jnp.stack(jnp.split(raw, 3, axis=-1), axis=-1)
            # apply frame: R @ p + t
            return jnp.einsum("nij,nmj->nmi", rot, xyz) + trans[:, None, :]

        q_pts = to_points(qp_raw).reshape(N, H, Pq, 3)
        kv_pts = to_points(kvp_raw).reshape(N, H, Pq + Pv, 3)
        k_pts, v_pts = kv_pts[:, :, :Pq], kv_pts[:, :, Pq:]

        # --- head-major prep for the attention kernel (small arrays) ---
        hw = jax.nn.softplus(params["head_weights"])
        scale = (-0.5 * hw * pt_scale).astype(jnp.float32)   # [H]

        q_hm = jnp.transpose(q, (1, 0, 2)) * scalar_scale            # [H,N,d_hid]
        k_hm = jnp.transpose(k, (1, 0, 2))
        v_hm = jnp.transpose(v, (1, 0, 2))
        qp_hm = jnp.transpose(q_pts, (1, 0, 2, 3)).reshape(H, N, Pq * 3)
        kp_hm = jnp.transpose(k_pts, (1, 0, 2, 3)).reshape(H, N, Pq * 3)
        vp_hm = jnp.transpose(v_pts, (1, 0, 2, 3)).reshape(H, N, Pv * 3)

        # q/k sides (incl. point channels) kept f32 for the |qp-kp|^2 expansion.
        a_hm = jnp.concatenate(
            [q_hm, qp_hm * (-2.0 * scale)[:, None, None]], axis=-1)  # [H,N,dqk]
        b_hm = jnp.concatenate([k_hm, kp_hm], axis=-1)               # [H,N,dqk]
        # streamed value/pair operands in bf16 (halved HBM traffic + VMEM)
        vv_hm = jnp.concatenate([v_hm, vp_hm], axis=-1).astype(jnp.bfloat16)
        sqk_hm = (scale[:, None] * jnp.sum(kp_hm * kp_hm, axis=-1)
                  + bias_scale * params["bb"][:, None])[:, None, :]  # [H,1,N]
        wbs = (bias_scale * params["wb"].T).astype(jnp.bfloat16)     # [H,d_pair]

        ov, opair = ipa_attention_pallas(
            a_hm, b_hm, vv_hm, sqk_hm, wbs, square_mask,
            z.astype(jnp.bfloat16))
        # ov: [H, N, dv] head-major, opair: [N, H, d_pair]

        # --- epilogue (small arrays; only cheap reshapes / transposes) ---
        dv = d_hid + Pv * 3
        ov3 = jnp.transpose(ov, (1, 0, 2))                           # [N, H, dv]
        o = ov3[:, :, :d_hid].reshape(N, H * d_hid)
        o_pts_g = ov3[:, :, d_hid:].reshape(N, H, Pv, 3)
        # invert frame: R^T @ (x - t)
        o_pts = jnp.einsum("nji,nhpj->nhpi", rot,
                           o_pts_g - trans[:, None, None, :])
        o_pts_norm = jnp.sqrt(jnp.sum(o_pts ** 2, axis=-1) + eps
                              ).reshape(N, H * Pv)
        o_pts_flat = o_pts.reshape(N, H * Pv, 3)
        o_pair = opair.reshape(N, H * d_pair)

        feat = jnp.concatenate(
            [o, o_pts_flat[..., 0], o_pts_flat[..., 1], o_pts_flat[..., 2],
             o_pts_norm, o_pair], axis=-1)
        return pallas_linear(feat, params["wout"], params["bout"])

    return jax.jit(forward)


# ------------------------- pure-JAX reference -------------------------

def ipa_reference(s, z, rot, trans, square_mask, params, *, d_single, d_pair,
                  d_hid, num_heads, num_qk_points, num_v_points, eps=1e-8):
    H, Pq, Pv = num_heads, num_qk_points, num_v_points
    N = s.shape[0]
    lin = lambda x, w, b: x @ w + b
    q = lin(s, params["wq"], params["bq"]).reshape(N, H, d_hid)
    kv = lin(s, params["wkv"], params["bkv"]).reshape(N, H, 2 * d_hid)
    k, v = kv[..., :d_hid], kv[..., d_hid:]

    def to_points(raw):
        xyz = jnp.stack(jnp.split(raw, 3, axis=-1), axis=-1)
        return jnp.einsum("nij,nmj->nmi", rot, xyz) + trans[:, None, :]

    q_pts = to_points(lin(s, params["wqp"], params["bqp"])).reshape(N, H, Pq, 3)
    kv_pts = to_points(lin(s, params["wkvp"], params["bkvp"])
                       ).reshape(N, H, Pq + Pv, 3)
    k_pts, v_pts = kv_pts[:, :, :Pq], kv_pts[:, :, Pq:]
    b = lin(z.reshape(N * N, d_pair), params["wb"], params["bb"]).reshape(N, N, H)

    attn = jnp.einsum("ihc,jhc->hij", q, k) * math.sqrt(1.0 / (3 * d_hid))
    attn = attn + math.sqrt(1.0 / 3) * jnp.transpose(b, (2, 0, 1))
    pt = jnp.sum((q_pts[:, None] - k_pts[None, :]) ** 2, axis=-1)   # [N,N,H,Pq]
    hw = jax.nn.softplus(params["head_weights"])
    hw = hw[None, None, :, None] * math.sqrt(1.0 / (3 * (Pq * 9.0 / 2)))
    pt = jnp.transpose(jnp.sum(pt * hw * -0.5, axis=-1), (2, 0, 1))  # [H,N,N]
    attn = attn + square_mask[None]
    a = jax.nn.softmax(attn + pt, axis=-1)

    o = jnp.einsum("hij,jhc->ihc", a, v).reshape(N, H * d_hid)
    o_pts_g = jnp.einsum("hij,jhpc->ihpc", a, v_pts)
    o_pts = jnp.einsum("nji,nhpj->nhpi", rot, o_pts_g - trans[:, None, None, :])
    o_pts_norm = jnp.sqrt(jnp.sum(o_pts ** 2, -1) + eps).reshape(N, H * Pv)
    o_pts_flat = o_pts.reshape(N, H * Pv, 3)
    o_pair = jnp.einsum("hij,ijd->ihd", a, z).reshape(N, H * d_pair)
    feat = jnp.concatenate(
        [o, o_pts_flat[..., 0], o_pts_flat[..., 1], o_pts_flat[..., 2],
         o_pts_norm, o_pair], axis=-1)
    return lin(feat, params["wout"], params["bout"])


# ------------------------- params / helpers -------------------------

def init_params(key, *, d_single, d_pair, d_hid, num_heads, num_qk_points,
                num_v_points):
    H, Pq, Pv = num_heads, num_qk_points, num_v_points
    hc = H * d_hid
    keys = jax.random.split(key, 6)

    def lin(k, d_in, d_out):
        kw, kb = jax.random.split(k)
        w = jax.random.normal(kw, (d_in, d_out), jnp.float32) / math.sqrt(d_in)
        b = 0.02 * jax.random.normal(kb, (d_out,), jnp.float32)
        return w, b

    wq, bq = lin(keys[0], d_single, hc)
    wkv, bkv = lin(keys[1], d_single, 2 * hc)
    wqp, bqp = lin(keys[2], d_single, H * Pq * 3)
    wkvp, bkvp = lin(keys[3], d_single, H * (Pq + Pv) * 3)
    wb, bb = lin(keys[4], d_pair, H)
    concat_dim = H * (d_pair + d_hid + Pv * 4)
    # NOTE: real module uses init='final' (zeros) for linear_out; random init
    # here keeps this synthetic test non-trivial.
    wout, bout = lin(keys[5], concat_dim, d_single)
    head_weights = jnp.full((H,), 0.541324854612918, jnp.float32)  # softplus^-1(1)
    return dict(wq=wq, bq=bq, wkv=wkv, bkv=bkv, wqp=wqp, bqp=bqp,
                wkvp=wkvp, bkvp=bkvp, wb=wb, bb=bb, wout=wout, bout=bout,
                head_weights=head_weights)


def quat_to_rotmat(q):
    q = q / jnp.linalg.norm(q, axis=-1, keepdims=True)
    w, x, y, z = q[..., 0], q[..., 1], q[..., 2], q[..., 3]
    return jnp.stack([
        jnp.stack([1 - 2 * (y * y + z * z), 2 * (x * y - w * z), 2 * (x * z + w * y)], -1),
        jnp.stack([2 * (x * y + w * z), 1 - 2 * (x * x + z * z), 2 * (y * z - w * x)], -1),
        jnp.stack([2 * (x * z - w * y), 2 * (y * z + w * x), 1 - 2 * (x * x + y * y)], -1),
    ], axis=-2)


if __name__ == "__main__":
    cfg = dict(d_single=32, d_pair=16, d_hid=16, num_heads=4,
               num_qk_points=4, num_v_points=8)
    N = 16
    key = jax.random.PRNGKey(0)
    k_s, k_z, k_q, k_t, k_p = jax.random.split(key, 5)

    s = jax.random.normal(k_s, (N, cfg["d_single"]), jnp.float32)
    z = jax.random.normal(k_z, (N, N, cfg["d_pair"]), jnp.float32)
    rot = quat_to_rotmat(jax.random.normal(k_q, (N, 4), jnp.float32))
    trans = jax.random.normal(k_t, (N, 3), jnp.float32)
    valid = jnp.arange(N) < (N - 3)
    square_mask = jnp.broadcast_to(
        jnp.where(valid, 0.0, -1e9)[None, :], (N, N)).astype(jnp.float32)

    params = init_params(k_p, **cfg)

    fwd = make_ipa_forward(**cfg)
    out = fwd(s, z, rot, trans, square_mask, params)
    jax.block_until_ready(out)

    ref = ipa_reference(s, z, rot, trans, square_mask, params, **cfg)
    assert out.shape == (N, cfg["d_single"])
    max_err = float(jnp.max(jnp.abs(out - ref)))
    # bf16 z/v streams + default (non-HIGHEST) MXU precision on both sides:
    # tolerance loosened vs the all-f32/HIGHEST v2 check.
    assert jnp.allclose(out, ref, atol=4e-2, rtol=4e-2), max_err
    print("KERNEL_OK")
</pallas_src>

<mosaic_0001>
module attributes {stable_mosaic.version = 11 : i64} {
  func.func @_linear_kernel(%arg0: i32, %arg1: memref<16x32xf32, #tpu.memory_space<vmem>>, %arg2: memref<32x384xf32, #tpu.memory_space<vmem>>, %arg3: memref<1x384xf32, #tpu.memory_space<vmem>>, %arg4: memref<16x384xf32, #tpu.memory_space<vmem>>) attributes {dimension_semantics = [#tpu.dimension_semantics<parallel>], iteration_bounds = array<i64: 1>, scalar_prefetch = 0 : i64, scratch_operands = 0 : i64, tpu.core_type = #tpu.core_type<tc>, window_params = [{transform_indices = @transform_0, window_bounds = array<i64: 16, 32>}, {pipeline_mode = #tpu.pipeline_mode<synchronous>, transform_indices = @transform_1, window_bounds = array<i64: 32, 384>}, {pipeline_mode = #tpu.pipeline_mode<synchronous>, transform_indices = @transform_2, window_bounds = array<i64: 1, 384>}, {transform_indices = @transform_3, window_bounds = array<i64: 16, 384>}]} {
    %c0 = arith.constant 0 : index
    %c0_0 = arith.constant 0 : index
    %0 = vector.load %arg1[%c0, %c0_0] : memref<16x32xf32, #tpu.memory_space<vmem>>, vector<16x32xf32>
    %c0_1 = arith.constant 0 : index
    %c0_2 = arith.constant 0 : index
    %1 = vector.load %arg2[%c0_1, %c0_2] : memref<32x384xf32, #tpu.memory_space<vmem>>, vector<32x384xf32>
    %cst = arith.constant dense<0.000000e+00> : vector<16x384xf32>
    %2 = tpu.matmul %0, %1, %cst {dimension_numbers = #tpu.dot_dimension_numbers<[1], [0], [0], [1], [0, 0, 1, 1], [], []>} : vector<16x32xf32>, vector<32x384xf32>, vector<16x384xf32> -> vector<16x384xf32>
    %c0_3 = arith.constant 0 : index
    %c0_4 = arith.constant 0 : index
    %3 = vector.load %arg3[%c0_3, %c0_4] : memref<1x384xf32, #tpu.memory_space<vmem>>, vector<1x384xf32>
    %4 = vector.broadcast %3 : vector<1x384xf32> to vector<16x384xf32>
    %5 = arith.addf %2, %4 : vector<16x384xf32>
    %c0_5 = arith.constant 0 : index
    %c0_6 = arith.constant 0 : index
    %6 = vector.load %arg4[%c0_5, %c0_6] : memref<16x384xf32, #tpu.memory_space<vmem>>, vector<16x384xf32>
    tpu.vector_store %arg4[%c0_5, %c0_6], %5 {strides = array<i32>} : memref<16x384xf32, #tpu.memory_space<vmem>>, vector<16x384xf32>,
    return
  }
  func.func @transform_0(%arg0: i32) -> (i32, i32) {
    %c0_i32 = arith.constant 0 : i32
    %c0_i32_0 = arith.constant 0 : i32
    return %arg0, %c0_i32 : i32, i32
  }
  func.func @transform_1(%arg0: i32) -> (i32, i32) {
    %c0_i32 = arith.constant 0 : i32
    %c0_i32_0 = arith.constant 0 : i32
    %c0_i32_1 = arith.constant 0 : i32
    return %c0_i32, %c0_i32_0 : i32, i32
  }
  func.func @transform_2(%arg0: i32) -> (i32, i32) {
    %c0_i32 = arith.constant 0 : i32
    %c0_i32_0 = arith.constant 0 : i32
    %c0_i32_1 = arith.constant 0 : i32
    return %c0_i32, %c0_i32_0 : i32, i32
  }
  func.func @transform_3(%arg0: i32) -> (i32, i32) {
    %c0_i32 = arith.constant 0 : i32
    %c0_i32_0 = arith.constant 0 : i32
    return %arg0, %c0_i32 : i32, i32
  }
}

module attributes {stable_mosaic.version = 11 : i64} {
  func.func @_ipa_flash_kernel(%arg0: i32, %arg1: i32, %arg2: memref<4x16x28xf32, #tpu.memory_space<vmem>>, %arg3: memref<4x16x28xf32, #tpu.memory_space<vmem>>, %arg4: memref<4x16x40xbf16, #tpu.memory_space<vmem>>, %arg5: memref<4x1x16xf32, #tpu.memory_space<vmem>>, %arg6: memref<4x16xbf16, #tpu.memory_space<vmem>>, %arg7: memref<16x16xf32, #tpu.memory_space<vmem>>, %arg8: memref<16x16x16xbf16, #tpu.memory_space<vmem>>, %arg9: memref<4x16x40xf32, #tpu.memory_space<vmem>>, %arg10: memref<16x4x16xf32, #tpu.memory_space<vmem>>, %arg11: memref<4x16x1xf32, #tpu.memory_space<vmem>>, %arg12: memref<4x16x1xf32, #tpu.memory_space<vmem>>, %arg13: memref<4x16x40xf32, #tpu.memory_space<vmem>>, %arg14: memref<16x4x16xf32, #tpu.memory_space<vmem>>) attributes {dimension_semantics = [#tpu.dimension_semantics<parallel>, #tpu.dimension_semantics<arbitrary>], iteration_bounds = array<i64: 1, 1>, scalar_prefetch = 0 : i64, scratch_operands = 4 : i64, tpu.core_type = #tpu.core_type<tc>, window_params = [{transform_indices = @transform_0, window_bounds = array<i64: 4, 16, 28>}, {transform_indices = @transform_1, window_bounds = array<i64: 4, 16, 28>}, {transform_indices = @transform_2, window_bounds = array<i64: 4, 16, 40>}, {transform_indices = @transform_3, window_bounds = array<i64: 4, 1, 16>}, {pipeline_mode = #tpu.pipeline_mode<synchronous>, transform_indices = @transform_4, window_bounds = array<i64: 4, 16>}, {transform_indices = @transform_5, window_bounds = array<i64: 16, 16>}, {transform_indices = @transform_6, window_bounds = array<i64: 16, 16, 16>}, {transform_indices = @transform_7, window_bounds = array<i64: 4, 16, 40>}, {transform_indices = @transform_8, window_bounds = array<i64: 16, 4, 16>}]} {
    %c0_i32 = arith.constant 0 : i32
    %0 = arith.cmpi eq, %arg1, %c0_i32 : i32
    %1 = arith.extui %0 : i1 to i32
    %c0_i32_0 = arith.constant 0 : i32
    %2 = arith.cmpi ne, %1, %c0_i32_0 : i32
    scf.if %2 {
      %cst_149 = arith.constant -1.000000e+30 : f32
      %217 = vector.broadcast %cst_149 : f32 to vector<4x16x1xf32>
      %c0_150 = arith.constant 0 : index
      %c0_151 = arith.constant 0 : index
      %c0_152 = arith.constant 0 : index
      %218 = vector.load %arg11[%c0_150, %c0_151, %c0_152] : memref<4x16x1xf32, #tpu.memory_space<vmem>>, vector<4x16x1xf32>
      tpu.vector_store %arg11[%c0_150, %c0_151, %c0_152], %217 {strides = array<i32>} : memref<4x16x1xf32, #tpu.memory_space<vmem>>, vector<4x16x1xf32>,
      %cst_153 = arith.constant 0.000000e+00 : f32
      %219 = vector.broadcast %cst_153 : f32 to vector<4x16x1xf32>
      %c0_154 = arith.constant 0 : index
      %c0_155 = arith.constant 0 : index
      %c0_156 = arith.constant 0 : index
      %220 = vector.load %arg12[%c0_154, %c0_155, %c0_156] : memref<4x16x1xf32, #tpu.memory_space<vmem>>, vector<4x16x1xf32>
      tpu.vector_store %arg12[%c0_154, %c0_155, %c0_156], %219 {strides = array<i32>} : memref<4x16x1xf32, #tpu.memory_space<vmem>>, vector<4x16x1xf32>,
      %cst_157 = arith.constant 0.000000e+00 : f32
      %221 = vector.broadcast %cst_157 : f32 to vector<4x16x40xf32>
      %c0_158 = arith.constant 0 : index
      %c0_159 = arith.constant 0 : index
      %c0_160 = arith.constant 0 : index
      %222 = vector.load %arg13[%c0_158, %c0_159, %c0_160] : memref<4x16x40xf32, #tpu.memory_space<vmem>>, vector<4x16x40xf32>
      tpu.vector_store %arg13[%c0_158, %c0_159, %c0_160], %221 {strides = array<i32>} : memref<4x16x40xf32, #tpu.memory_space<vmem>>, vector<4x16x40xf32>,
      %cst_161 = arith.constant 0.000000e+00 : f32
      %223 = vector.broadcast %cst_161 : f32 to vector<16x4x16xf32>
      %c0_162 = arith.constant 0 : index
      %c0_163 = arith.constant 0 : index
      %c0_164 = arith.constant 0 : index
      %224 = vector.load %arg14[%c0_162, %c0_163, %c0_164] : memref<16x4x16xf32, #tpu.memory_space<vmem>>, vector<16x4x16xf32>
      tpu.vector_store %arg14[%c0_162, %c0_163, %c0_164], %223 {strides = array<i32>} : memref<16x4x16xf32, #tpu.memory_space<vmem>>, vector<16x4x16xf32>,
    } else {
    }
    %c0 = arith.constant 0 : index
    %c0_1 = arith.constant 0 : index
    %c0_2 = arith.constant 0 : index
    %3 = vector.load %arg8[%c0, %c0_1, %c0_2] : memref<16x16x16xbf16, #tpu.memory_space<vmem>>, vector<16x16x16xbf16>
    %c0_3 = arith.constant 0 : index
    %c0_4 = arith.constant 0 : index
    %4 = vector.load %arg7[%c0_3, %c0_4] : memref<16x16xf32, #tpu.memory_space<vmem>>, vector<16x16xf32>
    %c0_5 = arith.constant 0 : index
    %c0_6 = arith.constant 0 : index
    %5 = vector.load %arg6[%c0_5, %c0_6] : memref<4x16xbf16, #tpu.memory_space<vmem>>, vector<4x16xbf16>
    %6 = vector.shape_cast %5 : vector<4x16xbf16> to vector<1x4x16xbf16>
    %7 = vector.shape_cast %6 : vector<1x4x16xbf16> to vector<1x4x16xbf16>
    %8 = vector.broadcast %7 : vector<1x4x16xbf16> to vector<16x4x16xbf16>
    %cst = arith.constant dense<0.000000e+00> : vector<16x4x16xf32>
    %9 = tpu.matmul %8, %3, %cst {dimension_numbers = #tpu.dot_dimension_numbers<[2], [2], [1], [1], [0, 0, 0, 1, 1, 1], [0], [0]>} : vector<16x4x16xbf16>, vector<16x16x16xbf16>, vector<16x4x16xf32> -> vector<16x4x16xf32>
    %c0_7 = arith.constant 0 : index
    %c0_8 = arith.constant 0 : index
    %c0_9 = arith.constant 0 : index
    %10 = vector.load %arg2[%c0_7, %c0_8, %c0_9] : memref<4x16x28xf32, #tpu.memory_space<vmem>>, vector<1x16x28xf32>
    %11 = vector.shape_cast %10 : vector<1x16x28xf32> to vector<16x28xf32>
    %c0_10 = arith.constant 0 : index
    %c0_11 = arith.constant 0 : index
    %c0_12 = arith.constant 0 : index
    %12 = vector.load %arg3[%c0_10, %c0_11, %c0_12] : memref<4x16x28xf32, #tpu.memory_space<vmem>>, vector<1x16x28xf32>
    %13 = vector.shape_cast %12 : vector<1x16x28xf32> to vector<16x28xf32>
    %cst_13 = arith.constant dense<0.000000e+00> : vector<16x16xf32>
    %14 = tpu.matmul %11, %13, %cst_13 {dimension_numbers = #tpu.dot_dimension_numbers<[1], [1], [0], [0], [0, 0, 1, 0], [], []>} : vector<16x28xf32>, vector<16x28xf32>, vector<16x16xf32> -> vector<16x16xf32>
    %c0_14 = arith.constant 0 : index
    %c0_15 = arith.constant 0 : index
    %c0_16 = arith.constant 0 : index
    %15 = vector.load %arg5[%c0_14, %c0_15, %c0_16] : memref<4x1x16xf32, #tpu.memory_space<vmem>>, vector<1x1x16xf32>
    %16 = vector.shape_cast %15 : vector<1x1x16xf32> to vector<1x16xf32>
    %17 = vector.broadcast %16 : vector<1x16xf32> to vector<16x16xf32>
    %18 = arith.addf %14, %17 : vector<16x16xf32>
    %19 = vector.extract_strided_slice %9 {offsets = [0, 0, 0], sizes = [16, 1, 16], strides = [1, 1, 1]} : vector<16x4x16xf32> to vector<16x1x16xf32>
    %20 = vector.shape_cast %19 : vector<16x1x16xf32> to vector<16x16xf32>
    %21 = arith.addf %18, %20 : vector<16x16xf32>
    %22 = arith.addf %21, %4 : vector<16x16xf32>
    %c0_17 = arith.constant 0 : index
    %c0_18 = arith.constant 0 : index
    %c0_19 = arith.constant 0 : index
    %23 = vector.load %arg11[%c0_17, %c0_18, %c0_19] : memref<4x16x1xf32, #tpu.memory_space<vmem>>, vector<1x16x1xf32>
    %24 = vector.shape_cast %23 : vector<1x16x1xf32> to vector<16x1xf32>
    %cst_20 = arith.constant dense<0xFF800000> : vector<16xf32>
    %25 = vector.multi_reduction <maximumf>, %22, %cst_20 [1] : vector<16x16xf32> to vector<16xf32>
    %26 = vector.shape_cast %25 : vector<16xf32> to vector<16x1xf32>
    %27 = arith.maximumf %24, %26 : vector<16x1xf32>
    %28 = arith.subf %24, %27 : vector<16x1xf32>
    %29 = math.exp %28 : vector<16x1xf32>
    %30 = vector.broadcast %27 : vector<16x1xf32> to vector<16x16xf32>
    %31 = arith.subf %22, %30 : vector<16x16xf32>
    %32 = math.exp %31 : vector<16x16xf32>
    %c0_21 = arith.constant 0 : index
    %c0_22 = arith.constant 0 : index
    %c0_23 = arith.constant 0 : index
    %33 = vector.load %arg12[%c0_21, %c0_22, %c0_23] : memref<4x16x1xf32, #tpu.memory_space<vmem>>, vector<1x16x1xf32>
    %34 = vector.shape_cast %33 : vector<1x16x1xf32> to vector<16x1xf32>
    %35 = arith.mulf %29, %34 : vector<16x1xf32>
    %cst_24 = arith.constant dense<0.000000e+00> : vector<16xf32>
    %36 = vector.multi_reduction <add>, %32, %cst_24 [1] : vector<16x16xf32> to vector<16xf32>
    %37 = vector.shape_cast %36 : vector<16xf32> to vector<16x1xf32>
    %38 = arith.addf %35, %37 : vector<16x1xf32>
    %c0_25 = arith.constant 0 : index
    %c0_26 = arith.constant 0 : index
    %c0_27 = arith.constant 0 : index
    %39 = vector.load %arg12[%c0_25, %c0_26, %c0_27] : memref<4x16x1xf32, #tpu.memory_space<vmem>>, vector<1x16x1xf32>
    %40 = vector.shape_cast %39 : vector<1x16x1xf32> to vector<16x1xf32>
    %41 = vector.shape_cast %38 : vector<16x1xf32> to vector<1x16x1xf32>
    tpu.vector_store %arg12[%c0_25, %c0_26, %c0_27], %41 {strides = array<i32>} : memref<4x16x1xf32, #tpu.memory_space<vmem>>, vector<1x16x1xf32>,
    %c0_28 = arith.constant 0 : index
    %c0_29 = arith.constant 0 : index
    %c0_30 = arith.constant 0 : index
    %42 = vector.load %arg11[%c0_28, %c0_29, %c0_30] : memref<4x16x1xf32, #tpu.memory_space<vmem>>, vector<1x16x1xf32>
    %43 = vector.shape_cast %42 : vector<1x16x1xf32> to vector<16x1xf32>
    %44 = vector.shape_cast %27 : vector<16x1xf32> to vector<1x16x1xf32>
    tpu.vector_store %arg11[%c0_28, %c0_29, %c0_30], %44 {strides = array<i32>} : memref<4x16x1xf32, #tpu.memory_space<vmem>>, vector<1x16x1xf32>,
    %45 = arith.truncf %32 : vector<16x16xf32> to vector<16x16xbf16>
    %c0_31 = arith.constant 0 : index
    %c0_32 = arith.constant 0 : index
    %c0_33 = arith.constant 0 : index
    %46 = vector.load %arg13[%c0_31, %c0_32, %c0_33] : memref<4x16x40xf32, #tpu.memory_space<vmem>>, vector<1x16x40xf32>
    %47 = vector.shape_cast %46 : vector<1x16x40xf32> to vector<16x40xf32>
    %48 = vector.broadcast %29 : vector<16x1xf32> to vector<16x40xf32>
    %49 = arith.mulf %48, %47 : vector<16x40xf32>
    %c0_34 = arith.constant 0 : index
    %c0_35 = arith.constant 0 : index
    %c0_36 = arith.constant 0 : index
    %50 = vector.load %arg4[%c0_34, %c0_35, %c0_36] : memref<4x16x40xbf16, #tpu.memory_space<vmem>>, vector<1x16x40xbf16>
    %51 = vector.shape_cast %50 : vector<1x16x40xbf16> to vector<16x40xbf16>
    %cst_37 = arith.constant dense<0.000000e+00> : vector<16x40xf32>
    %52 = tpu.matmul %45, %51, %cst_37 {dimension_numbers = #tpu.dot_dimension_numbers<[1], [0], [0], [1], [0, 0, 1, 1], [], []>} : vector<16x16xbf16>, vector<16x40xbf16>, vector<16x40xf32> -> vector<16x40xf32>
    %53 = arith.addf %49, %52 : vector<16x40xf32>
    %c0_38 = arith.constant 0 : index
    %c0_39 = arith.constant 0 : index
    %c0_40 = arith.constant 0 : index
    %54 = vector.load %arg13[%c0_38, %c0_39, %c0_40] : memref<4x16x40xf32, #tpu.memory_space<vmem>>, vector<1x16x40xf32>
    %55 = vector.shape_cast %54 : vector<1x16x40xf32> to vector<16x40xf32>
    %56 = vector.shape_cast %53 : vector<16x40xf32> to vector<1x16x40xf32>
    tpu.vector_store %arg13[%c0_38, %c0_39, %c0_40], %56 {strides = array<i32>} : memref<4x16x40xf32, #tpu.memory_space<vmem>>, vector<1x16x40xf32>,
    %c1 = arith.constant 1 : index
    %c0_41 = arith.constant 0 : index
    %c0_42 = arith.constant 0 : index
    %57 = vector.load %arg2[%c1, %c0_41, %c0_42] : memref<4x16x28xf32, #tpu.memory_space<vmem>>, vector<1x16x28xf32>
    %58 = vector.shape_cast %57 : vector<1x16x28xf32> to vector<16x28xf32>
    %c1_43 = arith.constant 1 : index
    %c0_44 = arith.constant 0 : index
    %c0_45 = arith.constant 0 : index
    %59 = vector.load %arg3[%c1_43, %c0_44, %c0_45] : memref<4x16x28xf32, #tpu.memory_space<vmem>>, vector<1x16x28xf32>
    %60 = vector.shape_cast %59 : vector<1x16x28xf32> to vector<16x28xf32>
    %cst_46 = arith.constant dense<0.000000e+00> : vector<16x16xf32>
    %61 = tpu.matmul %58, %60, %cst_46 {dimension_numbers = #tpu.dot_dimension_numbers<[1], [1], [0], [0], [0, 0, 1, 0], [], []>} : vector<16x28xf32>, vector<16x28xf32>, vector<16x16xf32> -> vector<16x16xf32>
    %c1_47 = arith.constant 1 : index
    %c0_48 = arith.constant 0 : index
    %c0_49 = arith.constant 0 : index
    %62 = vector.load %arg5[%c1_47, %c0_48, %c0_49] : memref<4x1x16xf32, #tpu.memory_space<vmem>>, vector<1x1x16xf32>
    %63 = vector.shape_cast %62 : vector<1x1x16xf32> to vector<1x16xf32>
    %64 = vector.broadcast %63 : vector<1x16xf32> to vector<16x16xf32>
    %65 = arith.addf %61, %64 : vector<16x16xf32>
    %66 = vector.extract_strided_slice %9 {offsets = [0, 1, 0], sizes = [16, 1, 16], strides = [1, 1, 1]} : vector<16x4x16xf32> to vector<16x1x16xf32>
    %67 = vector.shape_cast %66 : vector<16x1x16xf32> to vector<16x16xf32>
    %68 = arith.addf %65, %67 : vector<16x16xf32>
    %69 = arith.addf %68, %4 : vector<16x16xf32>
    %c1_50 = arith.constant 1 : index
    %c0_51 = arith.constant 0 : index
    %c0_52 = arith.constant 0 : index
    %70 = vector.load %arg11[%c1_50, %c0_51, %c0_52] : memref<4x16x1xf32, #tpu.memory_space<vmem>>, vector<1x16x1xf32>
    %71 = vector.shape_cast %70 : vector<1x16x1xf32> to vector<16x1xf32>
    %cst_53 = arith.constant dense<0xFF800000> : vector<16xf32>
    %72 = vector.multi_reduction <maximumf>, %69, %cst_53 [1] : vector<16x16xf32> to vector<16xf32>
    %73 = vector.shape_cast %72 : vector<16xf32> to vector<16x1xf32>
    %74 = arith.maximumf %71, %73 : vector<16x1xf32>
    %75 = arith.subf %71, %74 : vector<16x1xf32>
    %76 = math.exp %75 : vector<16x1xf32>
    %77 = vector.broadcast %74 : vector<16x1xf32> to vector<16x16xf32>
    %78 = arith.subf %69, %77 : vector<16x16xf32>
    %79 = math.exp %78 : vector<16x16xf32>
    %c1_54 = arith.constant 1 : index
    %c0_55 = arith.constant 0 : index
    %c0_56 = arith.constant 0 : index
    %80 = vector.load %arg12[%c1_54, %c0_55, %c0_56] : memref<4x16x1xf32, #tpu.memory_space<vmem>>, vector<1x16x1xf32>
    %81 = vector.shape_cast %80 : vector<1x16x1xf32> to vector<16x1xf32>
    %82 = arith.mulf %76, %81 : vector<16x1xf32>
    %cst_57 = arith.constant dense<0.000000e+00> : vector<16xf32>
    %83 = vector.multi_reduction <add>, %79, %cst_57 [1] : vector<16x16xf32> to vector<16xf32>
    %84 = vector.shape_cast %83 : vector<16xf32> to vector<16x1xf32>
    %85 = arith.addf %82, %84 : vector<16x1xf32>
    %c1_58 = arith.constant 1 : index
    %c0_59 = arith.constant 0 : index
    %c0_60 = arith.constant 0 : index
    %86 = vector.load %arg12[%c1_58, %c0_59, %c0_60] : memref<4x16x1xf32, #tpu.memory_space<vmem>>, vector<1x16x1xf32>
    %87 = vector.shape_cast %86 : vector<1x16x1xf32> to vector<16x1xf32>
    %88 = vector.shape_cast %85 : vector<16x1xf32> to vector<1x16x1xf32>
    tpu.vector_store %arg12[%c1_58, %c0_59, %c0_60], %88 {strides = array<i32>} : memref<4x16x1xf32, #tpu.memory_space<vmem>>, vector<1x16x1xf32>,
    %c1_61 = arith.constant 1 : index
    %c0_62 = arith.constant 0 : index
    %c0_63 = arith.constant 0 : index
    %89 = vector.load %arg11[%c1_61, %c0_62, %c0_63] : memref<4x16x1xf32, #tpu.memory_space<vmem>>, vector<1x16x1xf32>
    %90 = vector.shape_cast %89 : vector<1x16x1xf32> to vector<16x1xf32>
    %91 = vector.shape_cast %74 : vector<16x1xf32> to vector<1x16x1xf32>
    tpu.vector_store %arg11[%c1_61, %c0_62, %c0_63], %91 {strides = array<i32>} : memref<4x16x1xf32, #tpu.memory_space<vmem>>, vector<1x16x1xf32>,
    %92 = arith.truncf %79 : vector<16x16xf32> to vector<16x16xbf16>
    %c1_64 = arith.constant 1 : index
    %c0_65 = arith.constant 0 : index
    %c0_66 = arith.constant 0 : index
    %93 = vector.load %arg13[%c1_64, %c0_65, %c0_66] : memref<4x16x40xf32, #tpu.memory_space<vmem>>, vector<1x16x40xf32>
    %94 = vector.shape_cast %93 : vector<1x16x40xf32> to vector<16x40xf32>
    %95 = vector.broadcast %76 : vector<16x1xf32> to vector<16x40xf32>
    %96 = arith.mulf %95, %94 : vector<16x40xf32>
    %c1_67 = arith.constant 1 : index
    %c0_68 = arith.constant 0 : index
    %c0_69 = arith.constant 0 : index
    %97 = vector.load %arg4[%c1_67, %c0_68, %c0_69] : memref<4x16x40xbf16, #tpu.memory_space<vmem>>, vector<1x16x40xbf16>
    %98 = vector.shape_cast %97 : vector<1x16x40xbf16> to vector<16x40xbf16>
    %cst_70 = arith.constant dense<0.000000e+00> : vector<16x40xf32>
    %99 = tpu.matmul %92, %98, %cst_70 {dimension_numbers = #tpu.dot_dimension_numbers<[1], [0], [0], [1], [0, 0, 1, 1], [], []>} : vector<16x16xbf16>, vector<16x40xbf16>, vector<16x40xf32> -> vector<16x40xf32>
    %100 = arith.addf %96, %99 : vector<16x40xf32>
    %c1_71 = arith.constant 1 : index
    %c0_72 = arith.constant 0 : index
    %c0_73 = arith.constant 0 : index
    %101 = vector.load %arg13[%c1_71, %c0_72, %c0_73] : memref<4x16x40xf32, #tpu.memory_space<vmem>>, vector<1x16x40xf32>
    %102 = vector.shape_cast %101 : vector<1x16x40xf32> to vector<16x40xf32>
    %103 = vector.shape_cast %100 : vector<16x40xf32> to vector<1x16x40xf32>
    tpu.vector_store %arg13[%c1_71, %c0_72, %c0_73], %103 {strides = array<i32>} : memref<4x16x40xf32, #tpu.memory_space<vmem>>, vector<1x16x40xf32>,
    %c2 = arith.constant 2 : index
    %c0_74 = arith.constant 0 : index
    %c0_75 = arith.constant 0 : index
    %104 = vector.load %arg2[%c2, %c0_74, %c0_75] : memref<4x16x28xf32, #tpu.memory_space<vmem>>, vector<1x16x28xf32>
    %105 = vector.shape_cast %104 : vector<1x16x28xf32> to vector<16x28xf32>
    %c2_76 = arith.constant 2 : index
    %c0_77 = arith.constant 0 : index
    %c0_78 = arith.constant 0 : index
    %106 = vector.load %arg3[%c2_76, %c0_77, %c0_78] : memref<4x16x28xf32, #tpu.memory_space<vmem>>, vector<1x16x28xf32>
    %107 = vector.shape_cast %106 : vector<1x16x28xf32> to vector<16x28xf32>
    %cst_79 = arith.constant dense<0.000000e+00> : vector<16x16xf32>
    %108 = tpu.matmul %105, %107, %cst_79 {dimension_numbers = #tpu.dot_dimension_numbers<[1], [1], [0], [0], [0, 0, 1, 0], [], []>} : vector<16x28xf32>, vector<16x28xf32>, vector<16x16xf32> -> vector<16x16xf32>
    %c2_80 = arith.constant 2 : index
    %c0_81 = arith.constant 0 : index
    %c0_82 = arith.constant 0 : index
    %109 = vector.load %arg5[%c2_80, %c0_81, %c0_82] : memref<4x1x16xf32, #tpu.memory_space<vmem>>, vector<1x1x16xf32>
    %110 = vector.shape_cast %109 : vector<1x1x16xf32> to vector<1x16xf32>
    %111 = vector.broadcast %110 : vector<1x16xf32> to vector<16x16xf32>
    %112 = arith.addf %108, %111 : vector<16x16xf32>
    %113 = vector.extract_strided_slice %9 {offsets = [0, 2, 0], sizes = [16, 1, 16], strides = [1, 1, 1]} : vector<16x4x16xf32> to vector<16x1x16xf32>
    %114 = vector.shape_cast %113 : vector<16x1x16xf32> to vector<16x16xf32>
    %115 = arith.addf %112, %114 : vector<16x16xf32>
    %116 = arith.addf %115, %4 : vector<16x16xf32>
    %c2_83 = arith.constant 2 : index
    %c0_84 = arith.constant 0 : index
    %c0_85 = arith.constant 0 : index
    %117 = vector.load %arg11[%c2_83, %c0_84, %c0_85] : memref<4x16x1xf32, #tpu.memory_space<vmem>>, vector<1x16x1xf32>
    %118 = vector.shape_cast %117 : vector<1x16x1xf32> to vector<16x1xf32>
    %cst_86 = arith.constant dense<0xFF800000> : vector<16xf32>
    %119 = vector.multi_reduction <maximumf>, %116, %cst_86 [1] : vector<16x16xf32> to vector<16xf32>
    %120 = vector.shape_cast %119 : vector<16xf32> to vector<16x1xf32>
    %121 = arith.maximumf %118, %120 : vector<16x1xf32>
    %122 = arith.subf %118, %121 : vector<16x1xf32>
    %123 = math.exp %122 : vector<16x1xf32>
    %124 = vector.broadcast %121 : vector<16x1xf32> to vector<16x16xf32>
    %125 = arith.subf %116, %124 : vector<16x16xf32>
    %126 = math.exp %125 : vector<16x16xf32>
    %c2_87 = arith.constant 2 : index
    %c0_88 = arith.constant 0 : index
    %c0_89 = arith.constant 0 : index
    %127 = vector.load %arg12[%c2_87, %c0_88, %c0_89] : memref<4x16x1xf32, #tpu.memory_space<vmem>>, vector<1x16x1xf32>
    %128 = vector.shape_cast %127 : vector<1x16x1xf32> to vector<16x1xf32>
    %129 = arith.mulf %123, %128 : vector<16x1xf32>
    %cst_90 = arith.constant dense<0.000000e+00> : vector<16xf32>
    %130 = vector.multi_reduction <add>, %126, %cst_90 [1] : vector<16x16xf32> to vector<16xf32>
    %131 = vector.shape_cast %130 : vector<16xf32> to vector<16x1xf32>
    %132 = arith.addf %129, %131 : vector<16x1xf32>
    %c2_91 = arith.constant 2 : index
    %c0_92 = arith.constant 0 : index
    %c0_93 = arith.constant 0 : index
    %133 = vector.load %arg12[%c2_91, %c0_92, %c0_93] : memref<4x16x1xf32, #tpu.memory_space<vmem>>, vector<1x16x1xf32>
    %134 = vector.shape_cast %133 : vector<1x16x1xf32> to vector<16x1xf32>
    %135 = vector.shape_cast %132 : vector<16x1xf32> to vector<1x16x1xf32>
    tpu.vector_store %arg12[%c2_91, %c0_92, %c0_93], %135 {strides = array<i32>} : memref<4x16x1xf32, #tpu.memory_space<vmem>>, vector<1x16x1xf32>,
    %c2_94 = arith.constant 2 : index
    %c0_95 = arith.constant 0 : index
    %c0_96 = arith.constant 0 : index
    %136 = vector.load %arg11[%c2_94, %c0_95, %c0_96] : memref<4x16x1xf32, #tpu.memory_space<vmem>>, vector<1x16x1xf32>
    %137 = vector.shape_cast %136 : vector<1x16x1xf32> to vector<16x1xf32>
    %138 = vector.shape_cast %121 : vector<16x1xf32> to vector<1x16x1xf32>
    tpu.vector_store %arg11[%c2_94, %c0_95, %c0_96], %138 {strides = array<i32>} : memref<4x16x1xf32, #tpu.memory_space<vmem>>, vector<1x16x1xf32>,
    %139 = arith.truncf %126 : vector<16x16xf32> to vector<16x16xbf16>
    %c2_97 = arith.constant 2 : index
    %c0_98 = arith.constant 0 : index
    %c0_99 = arith.constant 0 : index
    %140 = vector.load %arg13[%c2_97, %c0_98, %c0_99] : memref<4x16x40xf32, #tpu.memory_space<vmem>>, vector<1x16x40xf32>
    %141 = vector.shape_cast %140 : vector<1x16x40xf32> to vector<16x40xf32>
    %142 = vector.broadcast %123 : vector<16x1xf32> to vector<16x40xf32>
    %143 = arith.mulf %142, %141 : vector<16x40xf32>
    %c2_100 = arith.constant 2 : index
    %c0_101 = arith.constant 0 : index
    %c0_102 = arith.constant 0 : index
    %144 = vector.load %arg4[%c2_100, %c0_101, %c0_102] : memref<4x16x40xbf16, #tpu.memory_space<vmem>>, vector<1x16x40xbf16>
    %145 = vector.shape_cast %144 : vector<1x16x40xbf16> to vector<16x40xbf16>
    %cst_103 = arith.constant dense<0.000000e+00> : vector<16x40xf32>
    %146 = tpu.matmul %139, %145, %cst_103 {dimension_numbers = #tpu.dot_dimension_numbers<[1], [0], [0], [1], [0, 0, 1, 1], [], []>} : vector<16x16xbf16>, vector<16x40xbf16>, vector<16x40xf32> -> vector<16x40xf32>
    %147 = arith.addf %143, %146 : vector<16x40xf32>
    %c2_104 = arith.constant 2 : index
    %c0_105 = arith.constant 0 : index
    %c0_106 = arith.constant 0 : index
    %148 = vector.load %arg13[%c2_104, %c0_105, %c0_106] : memref<4x16x40xf32, #tpu.memory_space<vmem>>, vector<1x16x40xf32>
    %149 = vector.shape_cast %148 : vector<1x16x40xf32> to vector<16x40xf32>
    %150 = vector.shape_cast %147 : vector<16x40xf32> to vector<1x16x40xf32>
    tpu.vector_store %arg13[%c2_104, %c0_105, %c0_106], %150 {strides = array<i32>} : memref<4x16x40xf32, #tpu.memory_space<vmem>>, vector<1x16x40xf32>,
    %c3 = arith.constant 3 : index
    %c0_107 = arith.constant 0 : index
    %c0_108 = arith.constant 0 : index
    %151 = vector.load %arg2[%c3, %c0_107, %c0_108] : memref<4x16x28xf32, #tpu.memory_space<vmem>>, vector<1x16x28xf32>
    %152 = vector.shape_cast %151 : vector<1x16x28xf32> to vector<16x28xf32>
    %c3_109 = arith.constant 3 : index
    %c0_110 = arith.constant 0 : index
    %c0_111 = arith.constant 0 : index
    %153 = vector.load %arg3[%c3_109, %c0_110, %c0_111] : memref<4x16x28xf32, #tpu.memory_space<vmem>>, vector<1x16x28xf32>
    %154 = vector.shape_cast %153 : vector<1x16x28xf32> to vector<16x28xf32>
    %cst_112 = arith.constant dense<0.000000e+00> : vector<16x16xf32>
    %155 = tpu.matmul %152, %154, %cst_112 {dimension_numbers = #tpu.dot_dimension_numbers<[1], [1], [0], [0], [0, 0, 1, 0], [], []>} : vector<16x28xf32>, vector<16x28xf32>, vector<16x16xf32> -> vector<16x16xf32>
    %c3_113 = arith.constant 3 : index
    %c0_114 = arith.constant 0 : index
    %c0_115 = arith.constant 0 : index
    %156 = vector.load %arg5[%c3_113, %c0_114, %c0_115] : memref<4x1x16xf32, #tpu.memory_space<vmem>>, vector<1x1x16xf32>
    %157 = vector.shape_cast %156 : vector<1x1x16xf32> to vector<1x16xf32>
    %158 = vector.broadcast %157 : vector<1x16xf32> to vector<16x16xf32>
    %159 = arith.addf %155, %158 : vector<16x16xf32>
    %160 = vector.extract_strided_slice %9 {offsets = [0, 3, 0], sizes = [16, 1, 16], strides = [1, 1, 1]} : vector<16x4x16xf32> to vector<16x1x16xf32>
    %161 = vector.shape_cast %160 : vector<16x1x16xf32> to vector<16x16xf32>
    %162 = arith.addf %159, %161 : vector<16x16xf32>
    %163 = arith.addf %162, %4 : vector<16x16xf32>
    %c3_116 = arith.constant 3 : index
    %c0_117 = arith.constant 0 : index
    %c0_118 = arith.constant 0 : index
    %164 = vector.load %arg11[%c3_116, %c0_117, %c0_118] : memref<4x16x1xf32, #tpu.memory_space<vmem>>, vector<1x16x1xf32>
    %165 = vector.shape_cast %164 : vector<1x16x1xf32> to vector<16x1xf32>
    %cst_119 = arith.constant dense<0xFF800000> : vector<16xf32>
    %166 = vector.multi_reduction <maximumf>, %163, %cst_119 [1] : vector<16x16xf32> to vector<16xf32>
    %167 = vector.shape_cast %166 : vector<16xf32> to vector<16x1xf32>
    %168 = arith.maximumf %165, %167 : vector<16x1xf32>
    %169 = arith.subf %165, %168 : vector<16x1xf32>
    %170 = math.exp %169 : vector<16x1xf32>
    %171 = vector.broadcast %168 : vector<16x1xf32> to vector<16x16xf32>
    %172 = arith.subf %163, %171 : vector<16x16xf32>
    %173 = math.exp %172 : vector<16x16xf32>
    %c3_120 = arith.constant 3 : index
    %c0_121 = arith.constant 0 : index
    %c0_122 = arith.constant 0 : index
    %174 = vector.load %arg12[%c3_120, %c0_121, %c0_122] : memref<4x16x1xf32, #tpu.memory_space<vmem>>, vector<1x16x1xf32>
    %175 = vector.shape_cast %174 : vector<1x16x1xf32> to vector<16x1xf32>
    %176 = arith.mulf %170, %175 : vector<16x1xf32>
    %cst_123 = arith.constant dense<0.000000e+00> : vector<16xf32>
    %177 = vector.multi_reduction <add>, %173, %cst_123 [1] : vector<16x16xf32> to vector<16xf32>
    %178 = vector.shape_cast %177 : vector<16xf32> to vector<16x1xf32>
    %179 = arith.addf %176, %178 : vector<16x1xf32>
    %c3_124 = arith.constant 3 : index
    %c0_125 = arith.constant 0 : index
    %c0_126 = arith.constant 0 : index
    %180 = vector.load %arg12[%c3_124, %c0_125, %c0_126] : memref<4x16x1xf32, #tpu.memory_space<vmem>>, vector<1x16x1xf32>
    %181 = vector.shape_cast %180 : vector<1x16x1xf32> to vector<16x1xf32>
    %182 = vector.shape_cast %179 : vector<16x1xf32> to vector<1x16x1xf32>
    tpu.vector_store %arg12[%c3_124, %c0_125, %c0_126], %182 {strides = array<i32>} : memref<4x16x1xf32, #tpu.memory_space<vmem>>, vector<1x16x1xf32>,
    %c3_127 = arith.constant 3 : index
    %c0_128 = arith.constant 0 : index
    %c0_129 = arith.constant 0 : index
    %183 = vector.load %arg11[%c3_127, %c0_128, %c0_129] : memref<4x16x1xf32, #tpu.memory_space<vmem>>, vector<1x16x1xf32>
    %184 = vector.shape_cast %183 : vector<1x16x1xf32> to vector<16x1xf32>
    %185 = vector.shape_cast %168 : vector<16x1xf32> to vector<1x16x1xf32>
    tpu.vector_store %arg11[%c3_127, %c0_128, %c0_129], %185 {strides = array<i32>} : memref<4x16x1xf32, #tpu.memory_space<vmem>>, vector<1x16x1xf32>,
    %186 = arith.truncf %173 : vector<16x16xf32> to vector<16x16xbf16>
    %c3_130 = arith.constant 3 : index
    %c0_131 = arith.constant 0 : index
    %c0_132 = arith.constant 0 : index
    %187 = vector.load %arg13[%c3_130, %c0_131, %c0_132] : memref<4x16x40xf32, #tpu.memory_space<vmem>>, vector<1x16x40xf32>
    %188 = vector.shape_cast %187 : vector<1x16x40xf32> to vector<16x40xf32>
    %189 = vector.broadcast %170 : vector<16x1xf32> to vector<16x40xf32>
    %190 = arith.mulf %189, %188 : vector<16x40xf32>
    %c3_133 = arith.constant 3 : index
    %c0_134 = arith.constant 0 : index
    %c0_135 = arith.constant 0 : index
    %191 = vector.load %arg4[%c3_133, %c0_134, %c0_135] : memref<4x16x40xbf16, #tpu.memory_space<vmem>>, vector<1x16x40xbf16>
    %192 = vector.shape_cast %191 : vector<1x16x40xbf16> to vector<16x40xbf16>
    %cst_136 = arith.constant dense<0.000000e+00> : vector<16x40xf32>
    %193 = tpu.matmul %186, %192, %cst_136 {dimension_numbers = #tpu.dot_dimension_numbers<[1], [0], [0], [1], [0, 0, 1, 1], [], []>} : vector<16x16xbf16>, vector<16x40xbf16>, vector<16x40xf32> -> vector<16x40xf32>
    %194 = arith.addf %190, %193 : vector<16x40xf32>
    %c3_137 = arith.constant 3 : index
    %c0_138 = arith.constant 0 : index
    %c0_139 = arith.constant 0 : index
    %195 = vector.load %arg13[%c3_137, %c0_138, %c0_139] : memref<4x16x40xf32, #tpu.memory_space<vmem>>, vector<1x16x40xf32>
    %196 = vector.shape_cast %195 : vector<1x16x40xf32> to vector<16x40xf32>
    %197 = vector.shape_cast %194 : vector<16x40xf32> to vector<1x16x40xf32>
    tpu.vector_store %arg13[%c3_137, %c0_138, %c0_139], %197 {strides = array<i32>} : memref<4x16x40xf32, #tpu.memory_space<vmem>>, vector<1x16x40xf32>,
    %198 = vector.shape_cast %45 : vector<16x16xbf16> to vector<16x1x16xbf16>
    %199 = vector.shape_cast %92 : vector<16x16xbf16> to vector<16x1x16xbf16>
    %200 = vector.shape_cast %139 : vector<16x16xbf16> to vector<16x1x16xbf16>
    %201 = vector.shape_cast %186 : vector<16x16xbf16> to vector<16x1x16xbf16>
    %202 = tpu.concatenate %198, %199, %200, %201 in 1 : vector<16x1x16xbf16>, vector<16x1x16xbf16>, vector<16x1x16xbf16>, vector<16x1x16xbf16> -> vector<16x4x16xbf16>
    %203 = vector.shape_cast %29 : vector<16x1xf32> to vector<16x1x1xf32>
    %204 = vector.shape_cast %76 : vector<16x1xf32> to vector<16x1x1xf32>
    %205 = vector.shape_cast %123 : vector<16x1xf32> to vector<16x1x1xf32>
    %206 = vector.shape_cast %170 : vector<16x1xf32> to vector<16x1x1xf32>
    %207 = tpu.concatenate %203, %204, %205, %206 in 1 : vector<16x1x1xf32>, vector<16x1x1xf32>, vector<16x1x1xf32>, vector<16x1x1xf32> -> vector<16x4x1xf32>
    %cst_140 = arith.constant dense<0.000000e+00> : vector<16x4x16xf32>
    %208 = tpu.matmul %202, %3, %cst_140 {dimension_numbers = #tpu.dot_dimension_numbers<[2], [1], [1], [2], [0, 0, 0, 1, 1, 2], [0], [0]>} : vector<16x4x16xbf16>, vector<16x16x16xbf16>, vector<16x4x16xf32> -> vector<16x4x16xf32>
    %c0_141 = arith.constant 0 : index
    %c0_142 = arith.constant 0 : index
    %c0_143 = arith.constant 0 : index
    %209 = vector.load %arg14[%c0_141, %c0_142, %c0_143] : memref<16x4x16xf32, #tpu.memory_space<vmem>>, vector<16x4x16xf32>
    %210 = vector.broadcast %207 : vector<16x4x1xf32> to vector<16x4x16xf32>
    %211 = arith.mulf %210, %209 : vector<16x4x16xf32>
    %212 = arith.addf %211, %208 : vector<16x4x16xf32>
    %c0_144 = arith.constant 0 : index
    %c0_145 = arith.constant 0 : index
    %c0_146 = arith.constant 0 : index
    %213 = vector.load %arg14[%c0_144, %c0_145, %c0_146] : memref<16x4x16xf32, #tpu.memory_space<vmem>>, vector<16x4x16xf32>
    tpu.vector_store %arg14[%c0_144, %c0_145, %c0_146], %212 {strides = array<i32>} : memref<16x4x16xf32, #tpu.memory_space<vmem>>, vector<16x4x16xf32>,
    %c0_i32_147 = arith.constant 0 : i32
    %214 = arith.cmpi eq, %arg1, %c0_i32_147 : i32
    %215 = arith.extui %214 : i1 to i32
    %c0_i32_148 = arith.constant 0 : i32
    %216 = arith.cmpi ne, %215, %c0_i32_148 : i32
    scf.if %216 {
      %c0_149 = arith.constant 0 : index
      %c0_150 = arith.constant 0 : index
      %c0_151 = arith.constant 0 : index
      %217 = vector.load %arg12[%c0_149, %c0_150, %c0_151] : memref<4x16x1xf32, #tpu.memory_space<vmem>>, vector<1x16x1xf32>
      %218 = vector.shape_cast %217 : vector<1x16x1xf32> to vector<16x1xf32>
      %219 = tpu.reciprocal %218 {approx = true} : vector<16x1xf32> -> vector<16x1xf32>
      %c0_152 = arith.constant 0 : index
      %c0_153 = arith.constant 0 : index
      %c0_154 = arith.constant 0 : index
      %220 = vector.load %arg13[%c0_152, %c0_153, %c0_154] : memref<4x16x40xf32, #tpu.memory_space<vmem>>, vector<1x16x40xf32>
      %221 = vector.shape_cast %220 : vector<1x16x40xf32> to vector<16x40xf32>
      %222 = vector.broadcast %219 : vector<16x1xf32> to vector<16x40xf32>
      %223 = arith.mulf %221, %222 : vector<16x40xf32>
      %c0_155 = arith.constant 0 : index
      %c0_156 = arith.constant 0 : index
      %c0_157 = arith.constant 0 : index
      %224 = vector.load %arg9[%c0_155, %c0_156, %c0_157] : memref<4x16x40xf32, #tpu.memory_space<vmem>>, vector<1x16x40xf32>
      %225 = vector.shape_cast %224 : vector<1x16x40xf32> to vector<16x40xf32>
      %226 = vector.shape_cast %223 : vector<16x40xf32> to vector<1x16x40xf32>
      tpu.vector_store %arg9[%c0_155, %c0_156, %c0_157], %226 {strides = array<i32>} : memref<4x16x40xf32, #tpu.memory_space<vmem>>, vector<1x16x40xf32>,
      %c1_158 = arith.constant 1 : index
      %c0_159 = arith.constant 0 : index
      %c0_160 = arith.constant 0 : index
      %227 = vector.load %arg12[%c1_158, %c0_159, %c0_160] : memref<4x16x1xf32, #tpu.memory_space<vmem>>, vector<1x16x1xf32>
      %228 = vector.shape_cast %227 : vector<1x16x1xf32> to vector<16x1xf32>
      %229 = tpu.reciprocal %228 {approx = true} : vector<16x1xf32> -> vector<16x1xf32>
      %c1_161 = arith.constant 1 : index
      %c0_162 = arith.constant 0 : index
      %c0_163 = arith.constant 0 : index
      %230 = vector.load %arg13[%c1_161, %c0_162, %c0_163] : memref<4x16x40xf32, #tpu.memory_space<vmem>>, vector<1x16x40xf32>
      %231 = vector.shape_cast %230 : vector<1x16x40xf32> to vector<16x40xf32>
      %232 = vector.broadcast %229 : vector<16x1xf32> to vector<16x40xf32>
      %233 = arith.mulf %231, %232 : vector<16x40xf32>
      %c1_164 = arith.constant 1 : index
      %c0_165 = arith.constant 0 : index
      %c0_166 = arith.constant 0 : index
      %234 = vector.load %arg9[%c1_164, %c0_165, %c0_166] : memref<4x16x40xf32, #tpu.memory_space<vmem>>, vector<1x16x40xf32>
      %235 = vector.shape_cast %234 : vector<1x16x40xf32> to vector<16x40xf32>
      %236 = vector.shape_cast %233 : vector<16x40xf32> to vector<1x16x40xf32>
      tpu.vector_store %arg9[%c1_164, %c0_165, %c0_166], %236 {strides = array<i32>} : memref<4x16x40xf32, #tpu.memory_space<vmem>>, vector<1x16x40xf32>,
      %c2_167 = arith.constant 2 : index
      %c0_168 = arith.constant 0 : index
      %c0_169 = arith.constant 0 : index
      %237 = vector.load %arg12[%c2_167, %c0_168, %c0_169] : memref<4x16x1xf32, #tpu.memory_space<vmem>>, vector<1x16x1xf32>
      %238 = vector.shape_cast %237 : vector<1x16x1xf32> to vector<16x1xf32>
      %239 = tpu.reciprocal %238 {approx = true} : vector<16x1xf32> -> vector<16x1xf32>
      %c2_170 = arith.constant 2 : index
      %c0_171 = arith.constant 0 : index
      %c0_172 = arith.constant 0 : index
      %240 = vector.load %arg13[%c2_170, %c0_171, %c0_172] : memref<4x16x40xf32, #tpu.memory_space<vmem>>, vector<1x16x40xf32>
      %241 = vector.shape_cast %240 : vector<1x16x40xf32> to vector<16x40xf32>
      %242 = vector.broadcast %239 : vector<16x1xf32> to vector<16x40xf32>
      %243 = arith.mulf %241, %242 : vector<16x40xf32>
      %c2_173 = arith.constant 2 : index
      %c0_174 = arith.constant 0 : index
      %c0_175 = arith.constant 0 : index
      %244 = vector.load %arg9[%c2_173, %c0_174, %c0_175] : memref<4x16x40xf32, #tpu.memory_space<vmem>>, vector<1x16x40xf32>
      %245 = vector.shape_cast %244 : vector<1x16x40xf32> to vector<16x40xf32>
      %246 = vector.shape_cast %243 : vector<16x40xf32> to vector<1x16x40xf32>
      tpu.vector_store %arg9[%c2_173, %c0_174, %c0_175], %246 {strides = array<i32>} : memref<4x16x40xf32, #tpu.memory_space<vmem>>, vector<1x16x40xf32>,
      %c3_176 = arith.constant 3 : index
      %c0_177 = arith.constant 0 : index
      %c0_178 = arith.constant 0 : index
      %247 = vector.load %arg12[%c3_176, %c0_177, %c0_178] : memref<4x16x1xf32, #tpu.memory_space<vmem>>, vector<1x16x1xf32>
      %248 = vector.shape_cast %247 : vector<1x16x1xf32> to vector<16x1xf32>
      %249 = tpu.reciprocal %248 {approx = true} : vector<16x1xf32> -> vector<16x1xf32>
      %c3_179 = arith.constant 3 : index
      %c0_180 = arith.constant 0 : index
      %c0_181 = arith.constant 0 : index
      %250 = vector.load %arg13[%c3_179, %c0_180, %c0_181] : memref<4x16x40xf32, #tpu.memory_space<vmem>>, vector<1x16x40xf32>
      %251 = vector.shape_cast %250 : vector<1x16x40xf32> to vector<16x40xf32>
      %252 = vector.broadcast %249 : vector<16x1xf32> to vector<16x40xf32>
      %253 = arith.mulf %251, %252 : vector<16x40xf32>
      %c3_182 = arith.constant 3 : index
      %c0_183 = arith.constant 0 : index
      %c0_184 = arith.constant 0 : index
      %254 = vector.load %arg9[%c3_182, %c0_183, %c0_184] : memref<4x16x40xf32, #tpu.memory_space<vmem>>, vector<1x16x40xf32>
      %255 = vector.shape_cast %254 : vector<1x16x40xf32> to vector<16x40xf32>
      %256 = vector.shape_cast %253 : vector<16x40xf32> to vector<1x16x40xf32>
      tpu.vector_store %arg9[%c3_182, %c0_183, %c0_184], %256 {strides = array<i32>} : memref<4x16x40xf32, #tpu.memory_space<vmem>>, vector<1x16x40xf32>,
      %257 = vector.shape_cast %219 : vector<16x1xf32> to vector<16x1x1xf32>
      %258 = vector.shape_cast %229 : vector<16x1xf32> to vector<16x1x1xf32>
      %259 = vector.shape_cast %239 : vector<16x1xf32> to vector<16x1x1xf32>
      %260 = vector.shape_cast %249 : vector<16x1xf32> to vector<16x1x1xf32>
      %261 = tpu.concatenate %257, %258, %259, %260 in 1 : vector<16x1x1xf32>, vector<16x1x1xf32>, vector<16x1x1xf32>, vector<16x1x1xf32> -> vector<16x4x1xf32>
      %c0_185 = arith.constant 0 : index
      %c0_186 = arith.constant 0 : index
      %c0_187 = arith.constant 0 : index
      %262 = vector.load %arg14[%c0_185, %c0_186, %c0_187] : memref<16x4x16xf32, #tpu.memory_space<vmem>>, vector<16x4x16xf32>
      %263 = vector.broadcast %261 : vector<16x4x1xf32> to vector<16x4x16xf32>
      %264 = arith.mulf %262, %263 : vector<16x4x16xf32>
      %c0_188 = arith.constant 0 : index
      %c0_189 = arith.constant 0 : index
      %c0_190 = arith.constant 0 : index
      %265 = vector.load %arg10[%c0_188, %c0_189, %c0_190] : memref<16x4x16xf32, #tpu.memory_space<vmem>>, vector<16x4x16xf32>
      tpu.vector_store %arg10[%c0_188, %c0_189, %c0_190], %264 {strides = array<i32>} : memref<16x4x16xf32, #tpu.memory_space<vmem>>, vector<16x4x16xf32>,
    } else {
    }
    return
  }
  func.func @transform_0(%arg0: i32, %arg1: i32) -> (i32, i32, i32) {
    %c0_i32 = arith.constant 0 : i32
    %c0_i32_0 = arith.constant 0 : i32
    %c0_i32_1 = arith.constant 0 : i32
    return %c0_i32, %arg0, %c0_i32_0 : i32, i32, i32
  }
  func.func @transform_1(%arg0: i32, %arg1: i32) -> (i32, i32, i32) {
    %c0_i32 = arith.constant 0 : i32
    %c0_i32_0 = arith.constant 0 : i32
    %c0_i32_1 = arith.constant 0 : i32
    return %c0_i32, %arg1, %c0_i32_0 : i32, i32, i32
  }
  func.func @transform_2(%arg0: i32, %arg1: i32) -> (i32, i32, i32) {
    %c0_i32 = arith.constant 0 : i32
    %c0_i32_0 = arith.constant 0 : i32
    %c0_i32_1 = arith.constant 0 : i32
    return %c0_i32, %arg1, %c0_i32_0 : i32, i32, i32
  }
  func.func @transform_3(%arg0: i32, %arg1: i32) -> (i32, i32, i32) {
    %c0_i32 = arith.constant 0 : i32
    %c0_i32_0 = arith.constant 0 : i32
    %c0_i32_1 = arith.constant 0 : i32
    return %c0_i32, %c0_i32_0, %arg1 : i32, i32, i32
  }
  func.func @transform_4(%arg0: i32, %arg1: i32) -> (i32, i32) {
    %c0_i32 = arith.constant 0 : i32
    %c0_i32_0 = arith.constant 0 : i32
    %c0_i32_1 = arith.constant 0 : i32
    return %c0_i32, %c0_i32_0 : i32, i32
  }
  func.func @transform_5(%arg0: i32, %arg1: i32) -> (i32, i32) {
    %c0_i32 = arith.constant 0 : i32
    return %arg0, %arg1 : i32, i32
  }
  func.func @transform_6(%arg0: i32, %arg1: i32) -> (i32, i32, i32) {
    %c0_i32 = arith.constant 0 : i32
    %c0_i32_0 = arith.constant 0 : i32
    return %arg0, %arg1, %c0_i32 : i32, i32, i32
  }
  func.func @transform_7(%arg0: i32, %arg1: i32) -> (i32, i32, i32) {
    %c0_i32 = arith.constant 0 : i32
    %c0_i32_0 = arith.constant 0 : i32
    %c0_i32_1 = arith.constant 0 : i32
    return %c0_i32, %arg0, %c0_i32_0 : i32, i32, i32
  }
  func.func @transform_8(%arg0: i32, %arg1: i32) -> (i32, i32, i32) {
    %c0_i32 = arith.constant 0 : i32
    %c0_i32_0 = arith.constant 0 : i32
    %c0_i32_1 = arith.constant 0 : i32
    return %arg0, %c0_i32, %c0_i32_0 : i32, i32, i32
  }
}

module attributes {stable_mosaic.version = 11 : i64} {
  func.func @_linear_kernel(%arg0: i32, %arg1: memref<16x256xf32, #tpu.memory_space<vmem>>, %arg2: memref<256x32xf32, #tpu.memory_space<vmem>>, %arg3: memref<1x32xf32, #tpu.memory_space<vmem>>, %arg4: memref<16x32xf32, #tpu.memory_space<vmem>>) attributes {dimension_semantics = [#tpu.dimension_semantics<parallel>], iteration_bounds = array<i64: 1>, scalar_prefetch = 0 : i64, scratch_operands = 0 : i64, tpu.core_type = #tpu.core_type<tc>, window_params = [{transform_indices = @transform_0, window_bounds = array<i64: 16, 256>}, {pipeline_mode = #tpu.pipeline_mode<synchronous>, transform_indices = @transform_1, window_bounds = array<i64: 256, 32>}, {pipeline_mode = #tpu.pipeline_mode<synchronous>, transform_indices = @transform_2, window_bounds = array<i64: 1, 32>}, {transform_indices = @transform_3, window_bounds = array<i64: 16, 32>}]} {
    %c0 = arith.constant 0 : index
    %c0_0 = arith.constant 0 : index
    %0 = vector.load %arg1[%c0, %c0_0] : memref<16x256xf32, #tpu.memory_space<vmem>>, vector<16x256xf32>
    %c0_1 = arith.constant 0 : index
    %c0_2 = arith.constant 0 : index
    %1 = vector.load %arg2[%c0_1, %c0_2] : memref<256x32xf32, #tpu.memory_space<vmem>>, vector<256x32xf32>
    %cst = arith.constant dense<0.000000e+00> : vector<16x32xf32>
    %2 = tpu.matmul %0, %1, %cst {dimension_numbers = #tpu.dot_dimension_numbers<[1], [0], [0], [1], [0, 0, 1, 1], [], []>} : vector<16x256xf32>, vector<256x32xf32>, vector<16x32xf32> -> vector<16x32xf32>
    %c0_3 = arith.constant 0 : index
    %c0_4 = arith.constant 0 : index
    %3 = vector.load %arg3[%c0_3, %c0_4] : memref<1x32xf32, #tpu.memory_space<vmem>>, vector<1x32xf32>
    %4 = vector.broadcast %3 : vector<1x32xf32> to vector<16x32xf32>
    %5 = arith.addf %2, %4 : vector<16x32xf32>
    %c0_5 = arith.constant 0 : index
    %c0_6 = arith.constant 0 : index
    %6 = vector.load %arg4[%c0_5, %c0_6] : memref<16x32xf32, #tpu.memory_space<vmem>>, vector<16x32xf32>
    tpu.vector_store %arg4[%c0_5, %c0_6], %5 {strides = array<i32>} : memref<16x32xf32, #tpu.memory_space<vmem>>, vector<16x32xf32>,
    return
  }
  func.func @transform_0(%arg0: i32) -> (i32, i32) {
    %c0_i32 = arith.constant 0 : i32
    %c0_i32_0 = arith.constant 0 : i32
    return %arg0, %c0_i32 : i32, i32
  }
  func.func @transform_1(%arg0: i32) -> (i32, i32) {
    %c0_i32 = arith.constant 0 : i32
    %c0_i32_0 = arith.constant 0 : i32
    %c0_i32_1 = arith.constant 0 : i32
    return %c0_i32, %c0_i32_0 : i32, i32
  }
  func.func @transform_2(%arg0: i32) -> (i32, i32) {
    %c0_i32 = arith.constant 0 : i32
    %c0_i32_0 = arith.constant 0 : i32
    %c0_i32_1 = arith.constant 0 : i32
    return %c0_i32, %c0_i32_0 : i32, i32
  }
  func.func @transform_3(%arg0: i32) -> (i32, i32) {
    %c0_i32 = arith.constant 0 : i32
    %c0_i32_0 = arith.constant 0 : i32
    return %arg0, %c0_i32 : i32, i32
  }
}

</mosaic_0001>

<bundles_post_ra>
// kernel: forward.3
= control target key start
LH: loop header
LB: loop body
LE: loop exit
PB: predicated region body
PF: predicated region fallthrough
CT: control target
= control target key end

     0   :  { %v252_v3 = vmov 0.0   ;;  %vm45_vm0 = vcmask 261120   ;;  %v30_v21 = vlaneseq  ;;  %s336_s1 = inlined_call_operand.vmem [shape: f32[32,384], index: 1, kind: input, shape index: {}]   ;;  %s337_s0 = inlined_call_operand.vmem [shape: f32[16,32], index: 0, kind: input, shape index: {}]   ;;  %s338_s2 = inlined_call_operand.vmem [shape: f32[1,384], index: 2, kind: input, shape index: {}]   ;;  %s339_s3 = inlined_call_operand.vmem [shape: f32[16,384], index: 3, kind: output, shape index: {}]  }
   0x1   :  { %v17_v0 = vld [vmem:[%s336_s1 + $0x8] sm:$0xff]  ;;  %v20_v1 = vld [vmem:[%s336_s1 + $0x20] sm:$0xff]  ;;  %116 = vmatprep.mubr.f32.mxu0 %v252_v3  ;;  %v19_v5 = vld [vmem:[%s336_s1 + $0x18] sm:$0xff] }
   0x2   :  { %v16_v2 = vld [vmem:[%s336_s1] sm:$0xff]  ;;  %v235_v4 = vpack.c.bf16 %v20_v1, %v17_v0  ;;  %v18_v6 = vld [vmem:[%s336_s1 + $0x10] sm:$0xff]  ;;  %v21_v7 = vld [vmem:[%s336_s1 + $0x28] sm:$0xff]  ;;  %v31_v22 = vshrl.u32 %v30_v21, 7 }
   0x3   :  { %v237_v8 = vpack.c.bf16 %v19_v5, %v16_v2  ;;  %v243_v9 = vpack.c.bf16 %v21_v7, %v18_v6  ;;  %v23_v10 = vld [vmem:[%s336_s1 + $0x38] sm:$0xff]  ;;  %v26_v11 = vld [vmem:[%s336_s1 + $0x50] sm:$0xff]  ;;  %v25_v14 = vld [vmem:[%s336_s1 + $0x48] sm:$0xff] }
   0x4   :  { %v22_v12 = vld [vmem:[%s336_s1 + $0x30] sm:$0xff]  ;;  %236 = vmatprep.subr.bf16.mxu0 %v235_v4  ;;  %v239_v13 = vpack.c.bf16 %v26_v11, %v23_v10  ;;  %v24_v15 = vld [vmem:[%s336_s1 + $0x40] sm:$0xff]  ;;  %v27_v16 = vld [vmem:[%s336_s1 + $0x58] sm:$0xff]  ;;  %v32_v23 = vsub.s32 0, %v31_v22  ;;  %v36_v25 = vsub.s32 1, %v31_v22  ;;  %v40_v26 = vsub.s32 2, %v31_v22 }
   0x5   :  { %238 = vmatpush1.bf16.msra.mxu0 %v237_v8  ;;  %244 = vmatprep.subr.bf16.mxu1 %v243_v9  ;;  %v241_v17 = vpack.c.bf16 %v25_v14, %v22_v12  ;;  %v247_v18 = vpack.c.bf16 %v27_v16, %v24_v15  ;;  %v14_v19 = vld [vmem:[%s337_s0] sm:$0xff]  ;;  %v15_v20 = vld [vmem:[%s337_s0 + $0x8] sm:$0xff] }
   0x6   :  { %240 = vmatprep.subr.bf16.mxu0 %v239_v13  ;;  %246 = vmatpush3.bf16.msra.mxu1 %v243_v9  ;;  %v28_v24 = vld [vmem:[%s338_s2] sm:$0x7] }
   0x7   :  { %248 = vmatprep.subr.bf16.mxu1 %v247_v18  ;;  %232 = vmatprep.mubr.msk.f32.mxu1 %vm45_vm0, %v14_v19  ;;  %v33_v27 = vrot.slane %v28_v24, %v32_v23  ;;  %v37_v28 = vrot.slane %v28_v24, %v36_v25  ;;  %v41_v29 = vrot.slane %v28_v24, %v40_v26 }
   0x9   :  { %242 = vmatpush1.bf16.msra.mxu0 %v241_v17 }
   0xa   :  { %250 = vmatpush3.bf16.msra.mxu1 %v247_v18 }
   0xc   :  { %214 = vmatmul.mubr.msk.f32.vlgmr.msra.gmra.mrb[0].mxu0 %vm45_vm0, %v14_v19 }
   0xd   :  { %122 = vmatprep.mubr.f32.mxu0 %v252_v3  ;;  %233 = vmatmul.mubr.msk.f32.vlgmr.msra.gmra.mrb[0].mxu1 %vm45_vm0, %v15_v20 }
  0x10   :  { %215 = vmatmul.mubr.msk.f32.gmra.mrb[2].mxu0 %vm45_vm0, %v15_v20 }
  0xdf   :  { %v118_v30 = vpop.f32.mrb[0].mxu0 }
  0xe0   :  { %v119_v31 = vadd.f32 %v118_v30, %v33_v27  ;;  %v120_v32 = vpop.f32.mrb[1].mxu0  ;;  %v234_v33 = vpop.f32.mrb[0].mxu1 }
  0xe1   :  { %v121_v34 = vadd.f32 %v120_v32, %v37_v28  ;;  %v201_v35 = vadd.f32 %v234_v33, %v41_v29  ;;  %v195_v36 = vpop.f32.mrb[1].mxu1 }
  0xe2   :  { %204 = vst [vmem:[%s339_s3] sm:$0xff] %v119_v31  ;;  %v196_v37 = vadd.f32 %v195_v36, %v41_v29 }
  0xe3   :  { %205 = vst [vmem:[%s339_s3 + $0x8] sm:$0xff] %v121_v34  ;;  %209 = vst [vmem:[%s339_s3 + $0x28] sm:$0xff] %v201_v35  ;;  %v124_v38 = vpop.f32.mrb[2].mxu0 }
  0xe4   :  { %v125_v39 = vadd.f32 %v124_v38, %v33_v27  ;;  %206 = vst [vmem:[%s339_s3 + $0x10] sm:$0xff] %v196_v37  ;;  %v126_v40 = vpop.f32.mrb[3].mxu0 }
  0xe5   :  { %v127_v41 = vadd.f32 %v126_v40, %v37_v28 }
  0xe6   :  { %207 = vst [vmem:[%s339_s3 + $0x18] sm:$0xff] %v125_v39 }
  0xe7   :  { %208 = vst [vmem:[%s339_s3 + $0x20] sm:$0xff] %v127_v41 }

// kernel: forward.5
= control target key start
LH: loop header
LB: loop body
LE: loop exit
PB: predicated region body
PF: predicated region fallthrough
CT: control target
= control target key end

     0   :  { %s412_s0 = inlined_call_operand.vmem [shape: f32[16,256], index: 0, kind: input, shape index: {}]   ;;  %s413_s1 = inlined_call_operand.vmem [shape: f32[256,32], index: 1, kind: input, shape index: {}]   ;;  %s414_s2 = inlined_call_operand.vmem [shape: f32[1,32], index: 2, kind: input, shape index: {}]   ;;  %s415_s3 = inlined_call_operand.hbm [shape: f32[16,32], index: 3, kind: output, shape index: {}]  }
   0x1   :  { %v35_v0 = vld [vmem:[%s413_s1 + $0x80] sm:$0xff]  ;;  %v36_v1 = vld [vmem:[%s413_s1 + $0x88] sm:$0xff]  ;;  %v37_v5 = vld [vmem:[%s413_s1 + $0x90] sm:$0xff] }
   0x2   :  { %v19_v2 = vld [vmem:[%s413_s1] sm:$0xff]  ;;  %v191_v3 = vpack.c.bf16 %v36_v1, %v35_v0  ;;  %v20_v4 = vld [vmem:[%s413_s1 + $0x8] sm:$0xff]  ;;  %v38_v6 = vld [vmem:[%s413_s1 + $0x98] sm:$0xff] }
   0x3   :  { %v193_v7 = vpack.c.bf16 %v20_v4, %v19_v2  ;;  %v195_v8 = vpack.c.bf16 %v38_v6, %v37_v5  ;;  %v21_v9 = vld [vmem:[%s413_s1 + $0x10] sm:$0xff]  ;;  %v22_v10 = vld [vmem:[%s413_s1 + $0x18] sm:$0xff]  ;;  %v39_v11 = vld [vmem:[%s413_s1 + $0xa0] sm:$0xff] }
   0x4   :  { %192 = vmatprep.subr.bf16.mxu0 %v191_v3  ;;  %223 = vmatprep.subr.bf16.mxu1 %v191_v3  ;;  %v40_v12 = vld [vmem:[%s413_s1 + $0xa8] sm:$0xff]  ;;  %v197_v13 = vpack.c.bf16 %v22_v10, %v21_v9  ;;  %v23_v15 = vld [vmem:[%s413_s1 + $0x20] sm:$0xff]  ;;  %v41_v17 = vld [vmem:[%s413_s1 + $0xb0] sm:$0xff] }
   0x5   :  { %194 = vmatpush3.bf16.msra.mxu0 %v193_v7  ;;  %231 = vmatpush3.bf16.msra.mxu1 %v193_v7  ;;  %v199_v14 = vpack.c.bf16 %v40_v12, %v39_v11  ;;  %v24_v16 = vld [vmem:[%s413_s1 + $0x28] sm:$0xff]  ;;  %v42_v18 = vld [vmem:[%s413_s1 + $0xb8] sm:$0xff]  ;;  %v25_v21 = vld [vmem:[%s413_s1 + $0x30] sm:$0xff] }
   0x6   :  { %196 = vmatprep.subr.bf16.mxu0 %v195_v8  ;;  %224 = vmatprep.subr.bf16.mxu1 %v195_v8  ;;  %v201_v19 = vpack.c.bf16 %v24_v16, %v23_v15  ;;  %v203_v20 = vpack.c.bf16 %v42_v18, %v41_v17  ;;  %v26_v22 = vld [vmem:[%s413_s1 + $0x38] sm:$0xff]  ;;  %v43_v23 = vld [vmem:[%s413_s1 + $0xc0] sm:$0xff]  ;;  %v44_v24 = vld [vmem:[%s413_s1 + $0xc8] sm:$0xff] }
   0x7   :  { %v16_v25 = vld [vmem:[%s412_s0 + $0x8] sm:$0xff]  ;;  %v18_v26 = vld [vmem:[%s412_s0 + $0x18] sm:$0xff]  ;;  %v205_v27 = vpack.c.bf16 %v26_v22, %v25_v21 }
   0x8   :  { %122 = vmatprep.mubr.f32.mxu0 %v16_v25 }
   0x9   :  { %198 = vmatpush3.bf16.msra.mxu0 %v197_v13  ;;  %232 = vmatpush3.bf16.msra.mxu1 %v197_v13 }
   0xa   :  { %200 = vmatprep.subr.bf16.mxu0 %v199_v14  ;;  %225 = vmatprep.subr.bf16.mxu1 %v199_v14 }
   0xd   :  { %202 = vmatpush3.bf16.msra.mxu0 %v201_v19  ;;  %233 = vmatpush3.bf16.msra.mxu1 %v201_v19 }
   0xe   :  { %8 = vsyncpa [#allocation3], 0  ;;  %204 = vmatprep.subr.bf16.mxu0 %v203_v20  ;;  %226 = vmatprep.subr.bf16.mxu1 %v203_v20  ;;  %v207_v28 = vpack.c.bf16 %v44_v24, %v43_v23  ;;  %v27_v29 = vld [vmem:[%s413_s1 + $0x40] sm:$0xff]  ;;  %v28_v30 = vld [vmem:[%s413_s1 + $0x48] sm:$0xff]  ;;  %vm133_vm0 = vcmask 261120  }
   0xf   :  { %v45_v31 = vld [vmem:[%s413_s1 + $0xd0] sm:$0xff]  ;;  %v46_v32 = vld [vmem:[%s413_s1 + $0xd8] sm:$0xff]  ;;  %127 = vmatprep.mubr.f32.mxu1 %v18_v26  ;;  %v209_v33 = vpack.c.bf16 %v28_v30, %v27_v29  ;;  %v47_v37 = vld [vmem:[%s413_s1 + $0xe0] sm:$0xff] }
  0x10   :  { %v211_v34 = vpack.c.bf16 %v46_v32, %v45_v31  ;;  %v29_v35 = vld [vmem:[%s413_s1 + $0x50] sm:$0xff]  ;;  %v30_v36 = vld [vmem:[%s413_s1 + $0x58] sm:$0xff]  ;;  %v48_v38 = vld [vmem:[%s413_s1 + $0xe8] sm:$0xff] }
  0x11   :  { %206 = vmatpush3.bf16.msra.mxu0 %v205_v27  ;;  %234 = vmatpush3.bf16.msra.mxu1 %v205_v27  ;;  %v213_v39 = vpack.c.bf16 %v30_v36, %v29_v35  ;;  %v215_v40 = vpack.c.bf16 %v48_v38, %v47_v37  ;;  %v31_v41 = vld [vmem:[%s413_s1 + $0x60] sm:$0xff]  ;;  %v32_v42 = vld [vmem:[%s413_s1 + $0x68] sm:$0xff]  ;;  %v49_v43 = vld [vmem:[%s413_s1 + $0xf0] sm:$0xff] }
  0x12   :  { %208 = vmatprep.subr.bf16.mxu0 %v207_v28  ;;  %227 = vmatprep.subr.bf16.mxu1 %v207_v28  ;;  %v50_v44 = vld [vmem:[%s413_s1 + $0xf8] sm:$0xff]  ;;  %v217_v45 = vpack.c.bf16 %v32_v42, %v31_v41  ;;  %v33_v47 = vld [vmem:[%s413_s1 + $0x70] sm:$0xff]  ;;  %v15_v50 = vld [vmem:[%s412_s0] sm:$0xff] }
  0x13   :  { %v219_v46 = vpack.c.bf16 %v50_v44, %v49_v43  ;;  %v34_v48 = vld [vmem:[%s413_s1 + $0x78] sm:$0xff]  ;;  %v17_v51 = vld [vmem:[%s412_s0 + $0x10] sm:$0xff]  ;;  %s266_s1 = smov [#allocation2]   ;;  %v152_v54 = vld [vmem:[%s414_s2] ss:$0 sm:$0xff] }
  0x14   :  { %v221_v49 = vpack.c.bf16 %v34_v48, %v33_v47  ;;  %s141_s30 = sshll.u32 %s266_s1, 4  ;;  %s142_s30 = int_to_ptr.vmem [resolvable:$true] %s141_s30 }
  0x15   :  { %210 = vmatpush3.bf16.msra.mxu0 %v209_v33  ;;  %235 = vmatpush3.bf16.msra.mxu1 %v209_v33  ;;  %s242_s0 = scalar_lea.vmem %s142_s30, 256  ;;  %p247_p1 = scmp.lt.s32.totalorder %s142_s30, %s142_s30 }
  0x16   :  { %212 = vmatprep.subr.bf16.mxu0 %v211_v34  ;;  %228 = vmatprep.subr.bf16.mxu1 %v211_v34  ;;  %p243_p0 = scmp.ne.s32.totalorder %s142_s30, %s242_s0  ;;  %p248_p2 = scmp.lt.s32.totalorder %s242_s0, %s242_s0 }
  0x18   :  { %p249_p3 = por %p248_p2, %p247_p1 }
  0x19   :  { %214 = vmatpush3.bf16.msra.mxu0 %v213_v39  ;;  %236 = vmatpush3.bf16.msra.mxu1 %v213_v39 }
  0x1a   :  { %216 = vmatprep.subr.bf16.mxu0 %v215_v40  ;;  %229 = vmatprep.subr.bf16.mxu1 %v215_v40  ;;  %p250_p4 = pnand %p249_p3, %p243_p0 }
  0x1d   :  { %218 = vmatpush3.bf16.msra.mxu0 %v217_v45  ;;  %237 = vmatpush3.bf16.msra.mxu1 %v217_v45 }
  0x1e   :  { %220 = vmatprep.subr.bf16.mxu0 %v219_v46  ;;  %230 = vmatprep.subr.bf16.mxu1 %v219_v46 }
  0x21   :  { %222 = vmatpush3.bf16.msra.mxu0 %v221_v49  ;;  %238 = vmatpush3.bf16.msra.mxu1 %v221_v49 }
  0x24   :  { %123 = vmatmul.mubr.f32.vlgmr.msra.gmra.mrb[0].mxu0 %v15_v50  ;;  %128 = vmatmul.mubr.f32.vlgmr.msra.gmra.mrb[0].mxu1 %v17_v51 }
  0xf7   :  { %v185_v52 = vpop.f32.mrb[0].mxu0  ;;  %v188_v53 = vpop.f32.mrb[0].mxu1 }
  0xf8   :  { %v186_v55 = vpop.f32.mrb[1].mxu0  ;;  %v189_v56 = vpop.f32.mrb[1].mxu1 }
  0xf9   :  { %v187_v57 = vadd.f32 %v186_v55, %v185_v52  ;;  %v190_v58 = vadd.f32 %v189_v56, %v188_v53 }
  0xfb   :  { %v125_v59 = vadd.f32 %v187_v57, %v152_v54  ;;  %v130_v60 = vadd.f32 %v190_v58, %v152_v54 }
  0xfd   :  { %134 = vst.msk [vmem:[#allocation2] sm:$0xff] %vm133_vm0, %v125_v59  ;;  %135 = vst.msk [vmem:[#allocation2 + $0x8] sm:$0xff] %vm133_vm0, %v130_v60 }
  0xfe   :  { %253 = shalt.err (!%p250_p4)
}
  0xff   :  { %s254_s2 = scalar_lea.hbm %s415_s3, 256 }
 0x100   :  { %p255_p5 = scmp.ne.s32.totalorder %s415_s3, %s254_s2  ;;  %p258_p6 = scmp.lt.u32.totalorder %s254_s2, %s415_s3 }
 0x102   :  { %p260_p7 = pnand %p258_p6, %p255_p5 }
 0x104   :  { %263 = shalt.err (!%p260_p7)
}
 0x105   :  { %s267_s12 = smov 128   ;;  %s268_s13 = smov 8  }
 0x106   :  { %147 = dma.vmem_to_hbm [thread:$0]  %s142_s30, 256, %s415_s3, [#allocation3], %s267_s12, %s267_s12, %s268_s13  }
 0x107   :  { %264 = dma.done.wait [#allocation3], 256  }
 0x108   :  { %265 = vsyncadd [#allocation3], 4294967040 }
 0x109   :  { %151 = vsyncpa [#allocation3], 1 }

// kernel: forward.4
= control target key start
LH: loop header
LB: loop body
LE: loop exit
PB: predicated region body
PF: predicated region fallthrough
CT: control target
= control target key end

     0   :  { %vm116_vm0 = vcmask 130048   ;;  %v7541_v0 = vmov 0.0   ;;  %vm5720_vm1 = vmmov 0   ;;  %vm894_vm2 = vcmask 228352   ;;  %s7532_s6 = inlined_call_operand.vmem [shape: bf16[16,16,16], index: 6, kind: input, shape index: {}]   ;;  %s7533_s4 = inlined_call_operand.vmem [shape: bf16[4,16], index: 4, kind: input, shape index: {}]   ;;  %s7534_s1 = inlined_call_operand.vmem [shape: f32[4,16,28], index: 1, kind: input, shape index: {}]   ;;  %s7535_s0 = inlined_call_operand.vmem [shape: f32[4,16,28], index: 0, kind: input, shape index: {}]   ;;  %s7536_s3 = inlined_call_operand.vmem [shape: f32[4,1,16], index: 3, kind: input, shape index: {}]   ;;  %s7537_s5 = inlined_call_operand.vmem [shape: f32[16,16], index: 5, kind: input, shape index: {}]   ;;  %s7538_s2 = inlined_call_operand.vmem [shape: bf16[4,16,40], index: 2, kind: input, shape index: {}]   ;;  %s7539_s7 = inlined_call_operand.vmem [shape: f32[4,16,40], index: 7, kind: output, shape index: {0}]   ;;  %s7540_s8 = inlined_call_operand.vmem [shape: f32[16,4,16], index: 8, kind: output, shape index: {1}]  }
   0x1   :  { %5361 = vmatprep.subr.bf16.mxu0 %v7541_v0  ;;  %5367 = vmatprep.subr.bf16.mxu1 %v7541_v0  ;;  %v5774_v1 = vld [vmem:[%s7532_s6] sm:$0xff]   ;;  %v5637_v2 = vld [vmem:[%s7532_s6 + $0x8] sm:$0xff]   ;;  %v5638_v5 = vld [vmem:[%s7532_s6 + $0x10] sm:$0xff]   ;;  %vm33_vm4 = vcmask 7168   ;;  %v5721_v55 = vmov -1e+30  }
   0x2   :  { %5363 = vmatprep.mubr.msk.bf16.mxu0 %vm5720_vm1, %v7541_v0  ;;  %5369 = vmatprep.mubr.msk.bf16.mxu1 %vm5720_vm1, %v7541_v0  ;;  %v121_v3 = vsel %vm116_vm0, %v5774_v1, 0  ;;  %v169_v4 = vsel %vm116_vm0, %v5637_v2, 0  ;;  %v5639_v6 = vld [vmem:[%s7532_s6 + $0x18] sm:$0xff]   ;;  %v5797_v7 = vld [vmem:[%s7533_s4] sm:$0x3]  ;;  %v217_v8 = vsel %vm116_vm0, %v5638_v5, 0  ;;  %vm5919_vm3 = vmpackc.low %vm894_vm2, %vm894_vm2 }
   0x3   :  { %5362 = vmatpush3.bf16.xpose.msra.mxu0 %v121_v3  ;;  %5368 = vmatpush3.bf16.xpose.msra.mxu1 %v169_v4  ;;  %v265_v9 = vsel %vm116_vm0, %v5639_v6, 0  ;;  %v5640_v10 = vld [vmem:[%s7532_s6 + $0x20] sm:$0xff]   ;;  %v5641_v11 = vld [vmem:[%s7532_s6 + $0x28] sm:$0xff]   ;;  %v5642_v14 = vld [vmem:[%s7532_s6 + $0x30] sm:$0xff]   ;;  %34 = vst.msk [vmem:[#allocation2] sm:$0xff] %vm33_vm4, %v5721_v55  ;;  %vm999_vm5 = vcmask 1041409  }
   0x4   :  { %5373 = vmatprep.subr.bf16.mxu0 %v7541_v0  ;;  %5379 = vmatprep.subr.bf16.mxu1 %v7541_v0  ;;  %v313_v12 = vsel %vm116_vm0, %v5640_v10, 0  ;;  %v361_v13 = vsel %vm116_vm0, %v5641_v11, 0  ;;  %v5643_v15 = vld [vmem:[%s7532_s6 + $0x38] sm:$0xff]   ;;  %v409_v16 = vsel %vm116_vm0, %v5642_v14, 0  ;;  %v5644_v18 = vld [vmem:[%s7532_s6 + $0x40] sm:$0xff]   ;;  %v5645_v19 = vld [vmem:[%s7532_s6 + $0x48] sm:$0xff]  }
   0x5   :  { %v457_v17 = vsel %vm116_vm0, %v5643_v15, 0  ;;  %v505_v20 = vsel %vm116_vm0, %v5644_v18, 0  ;;  %v553_v21 = vsel %vm116_vm0, %v5645_v19, 0  ;;  %v5646_v22 = vld [vmem:[%s7532_s6 + $0x50] sm:$0xff]   ;;  %v5647_v23 = vld [vmem:[%s7532_s6 + $0x58] sm:$0xff]   ;;  %v5648_v26 = vld [vmem:[%s7532_s6 + $0x60] sm:$0xff]  }
   0x6   :  { %v601_v24 = vsel %vm116_vm0, %v5646_v22, 0  ;;  %v649_v25 = vsel %vm116_vm0, %v5647_v23, 0  ;;  %v5649_v27 = vld [vmem:[%s7532_s6 + $0x68] sm:$0xff]   ;;  %v697_v28 = vsel %vm116_vm0, %v5648_v26, 0  ;;  %v5650_v30 = vld [vmem:[%s7532_s6 + $0x70] sm:$0xff]   ;;  %v5651_v31 = vld [vmem:[%s7532_s6 + $0x78] sm:$0xff]  }
   0x7   :  { %v745_v29 = vsel %vm116_vm0, %v5649_v27, 0  ;;  %v885_v32 = vld [vmem:[%s7534_s1] sm:$0xff]  ;;  %v886_v33 = vld [vmem:[%s7534_s1 + $0x8] sm:$0xff]  ;;  %v793_v34 = vsel %vm116_vm0, %v5650_v30, 0  ;;  %v841_v35 = vsel %vm116_vm0, %v5651_v31, 0  ;;  %v5175_v38 = vld [vmem:[%s7534_s1 + $0x10] sm:$0xff] }
   0x8   :  { %v5605_v36 = vpack.c.bf16 %v886_v33, %v885_v32  ;;  %v5176_v39 = vld [vmem:[%s7534_s1 + $0x18] sm:$0xff]  ;;  %v883_v41 = vld [vmem:[%s7535_s0] sm:$0xff]  ;;  %v5190_v43 = vld [vmem:[%s7534_s1 + $0x28] sm:$0xff]  ;;  %35 = vst.msk [vmem:[#allocation2 + $0x8] sm:$0xff] %vm33_vm4, %v5721_v55  ;;  %vm1002_vm6 = vcmask 1042434   ;;  %vm1005_vm7 = vcmask 1043459  }
   0x9   :  { %v5611_v40 = vpack.c.bf16 %v5176_v39, %v5175_v38  ;;  %v5189_v42 = vld [vmem:[%s7534_s1 + $0x20] sm:$0xff]  ;;  %v884_v44 = vld [vmem:[%s7535_s0 + $0x8] sm:$0xff]  ;;  %v5173_v45 = vld [vmem:[%s7535_s0 + $0x10] sm:$0xff]  ;;  %36 = vst.msk [vmem:[#allocation2 + $0x10] sm:$0xff] %vm33_vm4, %v5721_v55  ;;  %vm1008_vm8 = vcmask 1044484   ;;  %vm1011_vm9 = vcmask 1045509  }
   0xa   :  { %5364 = vmatmul.mubr.msk.bf16.vlgmr.msra.gmra.mrb[0].mxu0 %vm116_vm0, %v5797_v7  ;;  %5370 = vmatmul.mubr.msk.bf16.vlgmr.msra.gmra.mrb[0].mxu1 %vm116_vm0, %v5797_v7  ;;  %v5617_v46 = vpack.c.bf16 %v5190_v43, %v5189_v42  ;;  %v5203_v47 = vld [vmem:[%s7534_s1 + $0x30] sm:$0xff]  ;;  %v5204_v48 = vld [vmem:[%s7534_s1 + $0x38] sm:$0xff]  ;;  %v5187_v50 = vld [vmem:[%s7535_s0 + $0x20] sm:$0xff]  ;;  %37 = vst.msk [vmem:[#allocation2 + $0x18] sm:$0xff] %vm33_vm4, %v5721_v55  ;;  %vm1014_vm10 = vcmask 1046534   ;;  %vm1017_vm11 = vcmask 1047559  }
   0xb   :  { %5374 = vmatpush3.bf16.xpose.msra.mxu0 %v217_v8  ;;  %5380 = vmatpush3.bf16.xpose.msra.mxu1 %v265_v9  ;;  %v5174_v49 = vld [vmem:[%s7535_s0 + $0x18] sm:$0xff]  ;;  %v5623_v51 = vpack.c.bf16 %v5204_v48, %v5203_v47  ;;  %v5188_v52 = vld [vmem:[%s7535_s0 + $0x28] sm:$0xff]  ;;  %v5201_v53 = vld [vmem:[%s7535_s0 + $0x30] sm:$0xff]  ;;  %38 = vst.msk [vmem:[#allocation2 + $0x20] sm:$0xff] %vm33_vm4, %v5721_v55  ;;  %vm50_vm12 = vcmask 326656   ;;  %vm2566_vm13 = vcmask 1040384  }
   0xc   :  { %5375 = vmatprep.mubr.msk.bf16.mxu0 %vm5720_vm1, %v7541_v0  ;;  %5381 = vmatprep.mubr.msk.bf16.mxu1 %vm5720_vm1, %v7541_v0  ;;  %v5202_v54 = vld [vmem:[%s7535_s0 + $0x38] sm:$0xff]  ;;  %39 = vst.msk [vmem:[#allocation2 + $0x28] sm:$0xff] %vm33_vm4, %v5721_v55  ;;  %40 = vst.msk [vmem:[#allocation2 + $0x30] sm:$0xff] %vm33_vm4, %v5721_v55  ;;  %vm2650_vm14 = vcmask 1041408   ;;  %vm3350_vm15 = vcmask 1042432  }
   0xd   :  { %5385 = vmatprep.subr.bf16.mxu0 %v7541_v0  ;;  %5391 = vmatprep.subr.bf16.mxu1 %v7541_v0  ;;  %41 = vst.msk [vmem:[#allocation2 + $0x38] sm:$0xff] %vm33_vm4, %v5721_v55  ;;  %42 = vst.msk [vmem:[#allocation3] sm:$0xff] %vm33_vm4, %v7541_v0 }
   0xe   :  { %43 = vst.msk [vmem:[#allocation3 + $0x8] sm:$0xff] %vm33_vm4, %v7541_v0  ;;  %44 = vst.msk [vmem:[#allocation3 + $0x10] sm:$0xff] %vm33_vm4, %v7541_v0 }
   0xf   :  { %45 = vst.msk [vmem:[#allocation3 + $0x18] sm:$0xff] %vm33_vm4, %v7541_v0  ;;  %46 = vst.msk [vmem:[#allocation3 + $0x20] sm:$0xff] %vm33_vm4, %v7541_v0 }
  0x10   :  { %47 = vst.msk [vmem:[#allocation3 + $0x28] sm:$0xff] %vm33_vm4, %v7541_v0  ;;  %48 = vst.msk [vmem:[#allocation3 + $0x30] sm:$0xff] %vm33_vm4, %v7541_v0 }
  0x11   :  { %49 = vst.msk [vmem:[#allocation3 + $0x38] sm:$0xff] %vm33_vm4, %v7541_v0 }
  0x12   :  { %5376 = vmatmul.mubr.msk.bf16.vlgmr.msra.gmra.mrb[4].mxu0 %vm116_vm0, %v5797_v7  ;;  %5382 = vmatmul.mubr.msk.bf16.vlgmr.msra.gmra.mrb[4].mxu1 %vm116_vm0, %v5797_v7  ;;  %51 = vst.msk [vmem:[#allocation4] sm:$0xff] %vm50_vm12, %v7541_v0  ;;  %52 = vst.msk [vmem:[#allocation4 + $0x8] sm:$0xff] %vm50_vm12, %v7541_v0 }
  0x13   :  { %5386 = vmatpush3.bf16.xpose.msra.mxu0 %v313_v12  ;;  %5392 = vmatpush3.bf16.xpose.msra.mxu1 %v361_v13  ;;  %53 = vst.msk [vmem:[#allocation4 + $0x10] sm:$0xff] %vm50_vm12, %v7541_v0  ;;  %54 = vst.msk [vmem:[#allocation4 + $0x18] sm:$0xff] %vm50_vm12, %v7541_v0 }
  0x14   :  { %5387 = vmatprep.mubr.msk.bf16.mxu0 %vm5720_vm1, %v7541_v0  ;;  %5393 = vmatprep.mubr.msk.bf16.mxu1 %vm5720_vm1, %v7541_v0  ;;  %55 = vst.msk [vmem:[#allocation4 + $0x20] sm:$0xff] %vm50_vm12, %v7541_v0  ;;  %56 = vst.msk [vmem:[#allocation4 + $0x28] sm:$0xff] %vm50_vm12, %v7541_v0 }
  0x15   :  { %5397 = vmatprep.subr.bf16.mxu0 %v7541_v0  ;;  %5403 = vmatprep.subr.bf16.mxu1 %v7541_v0  ;;  %57 = vst.msk [vmem:[#allocation4 + $0x30] sm:$0xff] %vm50_vm12, %v7541_v0  ;;  %58 = vst.msk [vmem:[#allocation4 + $0x38] sm:$0xff] %vm50_vm12, %v7541_v0 }
  0x1a   :  { %5388 = vmatmul.mubr.msk.bf16.vlgmr.msra.gmra.mrb[8].mxu0 %vm116_vm0, %v5797_v7  ;;  %5394 = vmatmul.mubr.msk.bf16.vlgmr.msra.gmra.mrb[8].mxu1 %vm116_vm0, %v5797_v7 }
  0x1b   :  { %5398 = vmatpush3.bf16.xpose.msra.mxu0 %v409_v16  ;;  %5404 = vmatpush3.bf16.xpose.msra.mxu1 %v457_v17 }
  0x1c   :  { %5399 = vmatprep.mubr.msk.bf16.mxu0 %vm5720_vm1, %v7541_v0  ;;  %5405 = vmatprep.mubr.msk.bf16.mxu1 %vm5720_vm1, %v7541_v0 }
  0x1d   :  { %5409 = vmatprep.subr.bf16.mxu0 %v7541_v0  ;;  %5415 = vmatprep.subr.bf16.mxu1 %v7541_v0 }
  0x22   :  { %5400 = vmatmul.mubr.msk.bf16.vlgmr.msra.gmra.mrb[12].mxu0 %vm116_vm0, %v5797_v7  ;;  %5406 = vmatmul.mubr.msk.bf16.vlgmr.msra.gmra.mrb[12].mxu1 %vm116_vm0, %v5797_v7 }
  0x23   :  { %5410 = vmatpush3.bf16.xpose.msra.mxu0 %v505_v20  ;;  %5416 = vmatpush3.bf16.xpose.msra.mxu1 %v553_v21 }
  0x24   :  { %5411 = vmatprep.mubr.msk.bf16.mxu0 %vm5720_vm1, %v7541_v0  ;;  %5417 = vmatprep.mubr.msk.bf16.mxu1 %vm5720_vm1, %v7541_v0 }
  0x25   :  { %5421 = vmatprep.subr.bf16.mxu0 %v7541_v0  ;;  %5427 = vmatprep.subr.bf16.mxu1 %v7541_v0 }
  0x2a   :  { %5412 = vmatmul.mubr.msk.bf16.vlgmr.msra.gmra.mrb[16].mxu0 %vm116_vm0, %v5797_v7  ;;  %5418 = vmatmul.mubr.msk.bf16.vlgmr.msra.gmra.mrb[16].mxu1 %vm116_vm0, %v5797_v7 }
  0x2b   :  { %5422 = vmatpush3.bf16.xpose.msra.mxu0 %v601_v24  ;;  %5428 = vmatpush3.bf16.xpose.msra.mxu1 %v649_v25 }
  0x2c   :  { %5423 = vmatprep.mubr.msk.bf16.mxu0 %vm5720_vm1, %v7541_v0  ;;  %5429 = vmatprep.mubr.msk.bf16.mxu1 %vm5720_vm1, %v7541_v0 }
  0x2d   :  { %5433 = vmatprep.subr.bf16.mxu0 %v7541_v0  ;;  %5439 = vmatprep.subr.bf16.mxu1 %v7541_v0 }
  0x32   :  { %5424 = vmatmul.mubr.msk.bf16.vlgmr.msra.gmra.mrb[20].mxu0 %vm116_vm0, %v5797_v7  ;;  %5430 = vmatmul.mubr.msk.bf16.vlgmr.msra.gmra.mrb[20].mxu1 %vm116_vm0, %v5797_v7 }
  0x33   :  { %5434 = vmatpush3.bf16.xpose.msra.mxu0 %v697_v28  ;;  %5440 = vmatpush3.bf16.xpose.msra.mxu1 %v745_v29 }
  0x34   :  { %5435 = vmatprep.mubr.msk.bf16.mxu0 %vm5720_vm1, %v7541_v0  ;;  %5441 = vmatprep.mubr.msk.bf16.mxu1 %vm5720_vm1, %v7541_v0 }
  0x35   :  { %5445 = vmatprep.subr.bf16.mxu0 %v7541_v0  ;;  %5451 = vmatprep.subr.bf16.mxu1 %v7541_v0 }
  0x3a   :  { %5436 = vmatmul.mubr.msk.bf16.vlgmr.msra.gmra.mrb[24].mxu0 %vm116_vm0, %v5797_v7  ;;  %5442 = vmatmul.mubr.msk.bf16.vlgmr.msra.gmra.mrb[24].mxu1 %vm116_vm0, %v5797_v7 }
  0x3b   :  { %5446 = vmatpush3.bf16.xpose.msra.mxu0 %v793_v34  ;;  %5452 = vmatpush3.bf16.xpose.msra.mxu1 %v841_v35 }
  0x3c   :  { %5447 = vmatprep.mubr.msk.bf16.mxu0 %vm5720_vm1, %v7541_v0  ;;  %5453 = vmatprep.mubr.msk.bf16.mxu1 %vm5720_vm1, %v7541_v0 }
  0x3d   :  { %5607 = vmatprep.subr.msk.bf16.mxu0 %vm5919_vm3, %v5605_v36  ;;  %5464 = vmatprep.subr.bf16.mxu1 %v7541_v0 }
  0x42   :  { %5448 = vmatmul.mubr.msk.bf16.vlgmr.msra.gmra.mrb[28].mxu0 %vm116_vm0, %v5797_v7  ;;  %5454 = vmatmul.mubr.msk.bf16.vlgmr.msra.gmra.mrb[28].mxu1 %vm116_vm0, %v5797_v7 }
  0x43   :  { %5610 = vmatpush3.bf16.xpose.msk.msra.mxu0 %vm5919_vm3, %v5605_v36  ;;  %5461 = vmatprep.mubr.msk.f32.mxu0 %vm894_vm2, %v883_v41 }
  0x44   :  { %5613 = vmatprep.subr.msk.bf16.mxu0 %vm5919_vm3, %v5611_v40  ;;  %5466 = vmatprep.mubr.msk.bf16.mxu1 %vm5720_vm1, %v7541_v0 }
  0x4a   :  { %5462 = vmatmul.mubr.msk.f32.vlgmr.msra.gmra.mrb[32].mxu0 %vm894_vm2, %v884_v44 }
  0x4b   :  { %5616 = vmatpush3.bf16.xpose.msk.msra.mxu0 %vm5919_vm3, %v5611_v40  ;;  %5474 = vmatprep.mubr.msk.f32.mxu0 %vm894_vm2, %v5173_v45 }
  0x4c   :  { %5619 = vmatprep.subr.msk.bf16.mxu0 %vm5919_vm3, %v5617_v46 }
  0x52   :  { %5475 = vmatmul.mubr.msk.f32.vlgmr.msra.gmra.mrb[34].mxu0 %vm894_vm2, %v5174_v49 }
  0x53   :  { %5622 = vmatpush3.bf16.xpose.msk.msra.mxu0 %vm5919_vm3, %v5617_v46  ;;  %5487 = vmatprep.mubr.msk.f32.mxu0 %vm894_vm2, %v5187_v50 }
  0x54   :  { %5625 = vmatprep.subr.msk.bf16.mxu0 %vm5919_vm3, %v5623_v51 }
  0x5a   :  { %5488 = vmatmul.mubr.msk.f32.vlgmr.msra.gmra.mrb[36].mxu0 %vm894_vm2, %v5188_v52 }
  0x5b   :  { %5628 = vmatpush3.bf16.xpose.msk.msra.mxu0 %vm5919_vm3, %v5623_v51  ;;  %5500 = vmatprep.mubr.msk.f32.mxu0 %vm894_vm2, %v5201_v53  ;;  %vm2567_vm3 = vsmask.f32 256 }
  0x5c   :  { %5509 = vmatprep.subr.bf16.mxu0 %v7541_v0 }
  0x62   :  { %5501 = vmatmul.mubr.msk.f32.vlgmr.msra.gmra.mrb[38].mxu0 %vm894_vm2, %v5202_v54  ;;  %vm59_vm2 = vcmask 125952  }
  0x63   :  { %5510 = vmatpush3.bf16.msra.mxu0 %v5774_v1  ;;  %5511 = vmatprep.mubr.msk.bf16.mxu0 %vm5720_vm1, %v7541_v0  ;;  %60 = vst.msk [vmem:[#allocation5] sm:$0xf] %vm59_vm2, %v7541_v0  ;;  %61 = vst.msk [vmem:[#allocation5 + $0x4] sm:$0xf] %vm59_vm2, %v7541_v0 }
  0x64   :  { %5521 = vmatprep.subr.bf16.mxu0 %v7541_v0  ;;  %62 = vst.msk [vmem:[#allocation5 + $0x8] sm:$0xf] %vm59_vm2, %v7541_v0  ;;  %63 = vst.msk [vmem:[#allocation5 + $0xc] sm:$0xf] %vm59_vm2, %v7541_v0 }
  0x65   :  { %64 = vst.msk [vmem:[#allocation5 + $0x10] sm:$0xf] %vm59_vm2, %v7541_v0  ;;  %65 = vst.msk [vmem:[#allocation5 + $0x14] sm:$0xf] %vm59_vm2, %v7541_v0 }
  0x66   :  { %66 = vst.msk [vmem:[#allocation5 + $0x18] sm:$0xf] %vm59_vm2, %v7541_v0  ;;  %67 = vst.msk [vmem:[#allocation5 + $0x1c] sm:$0xf] %vm59_vm2, %v7541_v0 }
  0x67   :  { %68 = vst.msk [vmem:[#allocation5 + $0x20] sm:$0xf] %vm59_vm2, %v7541_v0  ;;  %69 = vst.msk [vmem:[#allocation5 + $0x24] sm:$0xf] %vm59_vm2, %v7541_v0 }
  0x68   :  { %70 = vst.msk [vmem:[#allocation5 + $0x28] sm:$0xf] %vm59_vm2, %v7541_v0  ;;  %71 = vst.msk [vmem:[#allocation5 + $0x2c] sm:$0xf] %vm59_vm2, %v7541_v0 }
  0x69   :  { %72 = vst.msk [vmem:[#allocation5 + $0x30] sm:$0xf] %vm59_vm2, %v7541_v0  ;;  %73 = vst.msk [vmem:[#allocation5 + $0x34] sm:$0xf] %vm59_vm2, %v7541_v0 }
  0x6a   :  { %74 = vst.msk [vmem:[#allocation5 + $0x38] sm:$0xf] %vm59_vm2, %v7541_v0  ;;  %75 = vst.msk [vmem:[#allocation5 + $0x3c] sm:$0xf] %vm59_vm2, %v7541_v0 }
  0xdd   :  { %v157_v56 = vpop.f32.mrb[0].mxu0  ;;  %v205_v60 = vpop.f32.mrb[0].mxu1 }
  0xde   :  { %v1261_v57 = vrot.slane %v157_v56, 1  ;;  %v1519_v58 = vrot.slane %v157_v56, 2  ;;  %v1777_v59 = vrot.slane %v157_v56, 3  ;;  %v5365_v61 = vpop.f32.mrb[1].mxu0  ;;  %v998_v62 = vrot.slane %v205_v60, 7  ;;  %v5371_v3 = vpop.f32.mrb[1].mxu1 }
  0xdf   :  { %v1520_v63 = vrot.slane %v205_v60, 1  ;;  %v1778_v1 = vrot.slane %v205_v60, 2  ;;  %v160_v2 = vpop.f32.mrb[2].mxu0  ;;  %v208_v6 = vpop.f32.mrb[2].mxu1 }
  0xe0   :  { %v1262_v4 = vsel %vm999_vm5, %v205_v60, %v1261_v57  ;;  %v5366_v5 = vpop.f32.mrb[3].mxu0  ;;  %v1000_v7 = vsel %vm999_vm5, %v998_v62, %v157_v56  ;;  %v5372_v8 = vpop.f32.mrb[3].mxu1 }
  0xe1   :  { %v1521_v9 = vsel %vm999_vm5, %v1520_v63, %v1519_v58  ;;  %v1779_v10 = vsel %vm999_vm5, %v1778_v1, %v1777_v59 }
  0xe5   :  { %v253_v11 = vpop.f32.mrb[4].mxu0  ;;  %v301_v16 = vpop.f32.mrb[4].mxu1 }
  0xe6   :  { %v1001_v12 = vrot.slane %v253_v11, 6  ;;  %v1263_v13 = vrot.slane %v253_v11, 7  ;;  %v1522_v14 = vsel %vm1002_vm6, %v253_v11, %v1521_v9  ;;  %v1780_v15 = vrot.slane %v253_v11, 1  ;;  %v5377_v17 = vpop.f32.mrb[5].mxu0  ;;  %v5383_v22 = vpop.f32.mrb[5].mxu1 }
  0xe7   :  { %v1004_v18 = vrot.slane %v301_v16, 5  ;;  %v1265_v19 = vrot.slane %v301_v16, 6  ;;  %v1523_v20 = vrot.slane %v301_v16, 7  ;;  %v256_v21 = vpop.f32.mrb[6].mxu0  ;;  %v304_v27 = vpop.f32.mrb[6].mxu1 }
  0xe8   :  { %v1003_v23 = vsel %vm1002_vm6, %v1001_v12, %v1000_v7  ;;  %v1264_v24 = vsel %vm1002_vm6, %v1263_v13, %v1262_v4  ;;  %v1781_v25 = vsel %vm1002_vm6, %v1780_v15, %v1779_v10  ;;  %v5378_v26 = vpop.f32.mrb[7].mxu0  ;;  %v5384_v32 = vpop.f32.mrb[7].mxu1 }
  0xe9   :  { %v1006_v28 = vsel %vm1005_vm7, %v1004_v18, %v1003_v23  ;;  %v1266_v29 = vsel %vm1005_vm7, %v1265_v19, %v1264_v24  ;;  %v1524_v30 = vsel %vm1005_vm7, %v1523_v20, %v1522_v14  ;;  %v1782_v31 = vsel %vm1005_vm7, %v301_v16, %v1781_v25 }
  0xed   :  { %v349_v33 = vpop.f32.mrb[8].mxu0  ;;  %v397_v39 = vpop.f32.mrb[8].mxu1 }
  0xee   :  { %v1007_v34 = vrot.slane %v349_v33, 4  ;;  %v1267_v35 = vrot.slane %v349_v33, 5  ;;  %v1525_v36 = vrot.slane %v349_v33, 6  ;;  %v1783_v37 = vrot.slane %v349_v33, 7  ;;  %v5389_v38 = vpop.f32.mrb[9].mxu0  ;;  %v5395_v45 = vpop.f32.mrb[9].mxu1 }
  0xef   :  { %v1010_v40 = vrot.slane %v397_v39, 3  ;;  %v1269_v41 = vrot.slane %v397_v39, 4  ;;  %v1527_v42 = vrot.slane %v397_v39, 5  ;;  %v1785_v43 = vrot.slane %v397_v39, 6  ;;  %v352_v44 = vpop.f32.mrb[10].mxu0  ;;  %v400_v47 = vpop.f32.mrb[10].mxu1 }
  0xf0   :  { %v5390_v46 = vpop.f32.mrb[11].mxu0  ;;  %v1009_v48 = vsel %vm1008_vm8, %v1007_v34, %v1006_v28  ;;  %v1268_v49 = vsel %vm1008_vm8, %v1267_v35, %v1266_v29  ;;  %v1526_v50 = vsel %vm1008_vm8, %v1525_v36, %v1524_v30  ;;  %v1784_v51 = vsel %vm1008_vm8, %v1783_v37, %v1782_v31  ;;  %v5396_v52 = vpop.f32.mrb[11].mxu1 }
  0xf1   :  { %v1012_v53 = vsel %vm1011_vm9, %v1010_v40, %v1009_v48  ;;  %v1270_v54 = vsel %vm1011_vm9, %v1269_v41, %v1268_v49  ;;  %v1528_v55 = vsel %vm1011_vm9, %v1527_v42, %v1526_v50  ;;  %v1786_v56 = vsel %vm1011_vm9, %v1785_v43, %v1784_v51 }
  0xf5   :  { %v445_v57 = vpop.f32.mrb[12].mxu0  ;;  %v493_v63 = vpop.f32.mrb[12].mxu1 }
  0xf6   :  { %v1013_v58 = vrot.slane %v445_v57, 2  ;;  %v1271_v59 = vrot.slane %v445_v57, 3  ;;  %v1529_v60 = vrot.slane %v445_v57, 4  ;;  %v1787_v61 = vrot.slane %v445_v57, 5  ;;  %v5401_v62 = vpop.f32.mrb[13].mxu0  ;;  %v5407_v6 = vpop.f32.mrb[13].mxu1 }
  0xf7   :  { %v1016_v1 = vrot.slane %v493_v63, 1  ;;  %v1273_v2 = vrot.slane %v493_v63, 2  ;;  %v1531_v3 = vrot.slane %v493_v63, 3  ;;  %v1789_v4 = vrot.slane %v493_v63, 4  ;;  %v448_v5 = vpop.f32.mrb[14].mxu0  ;;  %v496_v8 = vpop.f32.mrb[14].mxu1 }
  0xf8   :  { %v5402_v7 = vpop.f32.mrb[15].mxu0  ;;  %v1015_v9 = vsel %vm1014_vm10, %v1013_v58, %v1012_v53  ;;  %v1272_v10 = vsel %vm1014_vm10, %v1271_v59, %v1270_v54  ;;  %v1530_v11 = vsel %vm1014_vm10, %v1529_v60, %v1528_v55  ;;  %v1788_v12 = vsel %vm1014_vm10, %v1787_v61, %v1786_v56  ;;  %v5408_v13 = vpop.f32.mrb[15].mxu1 }
  0xf9   :  { %v6056_v14 = vsel %vm1017_vm11, %v1016_v1, %v1015_v9  ;;  %v6059_v15 = vsel %vm1017_vm11, %v1273_v2, %v1272_v10  ;;  %v6062_v16 = vsel %vm1017_vm11, %v1531_v3, %v1530_v11  ;;  %v6065_v17 = vsel %vm1017_vm11, %v1789_v4, %v1788_v12 }
  0xfd   :  { %v541_v18 = vpop.f32.mrb[16].mxu0  ;;  %v589_v22 = vpop.f32.mrb[16].mxu1 }
  0xfe   :  { %v1275_v19 = vrot.slane %v541_v18, 1  ;;  %v1533_v20 = vrot.slane %v541_v18, 2  ;;  %v1791_v21 = vrot.slane %v541_v18, 3  ;;  %v5413_v23 = vpop.f32.mrb[17].mxu0  ;;  %v1019_v24 = vrot.slane %v589_v22, 7  ;;  %v5419_v28 = vpop.f32.mrb[17].mxu1 }
  0xff   :  { %v1534_v25 = vrot.slane %v589_v22, 1  ;;  %v1792_v26 = vrot.slane %v589_v22, 2  ;;  %v544_v27 = vpop.f32.mrb[18].mxu0  ;;  %v592_v31 = vpop.f32.mrb[18].mxu1 }
 0x100   :  { %v1276_v29 = vsel %vm999_vm5, %v589_v22, %v1275_v19  ;;  %v5414_v30 = vpop.f32.mrb[19].mxu0  ;;  %v1020_v32 = vsel %vm999_vm5, %v1019_v24, %v541_v18  ;;  %v5420_v33 = vpop.f32.mrb[19].mxu1 }
 0x101   :  { %v1535_v34 = vsel %vm999_vm5, %v1534_v25, %v1533_v20  ;;  %v1793_v35 = vsel %vm999_vm5, %v1792_v26, %v1791_v21  ;;  %vm2651_vm5 = vsmask.f32 1280 }
 0x105   :  { %v637_v36 = vpop.f32.mrb[20].mxu0  ;;  %v685_v41 = vpop.f32.mrb[20].mxu1 }
 0x106   :  { %v1021_v37 = vrot.slane %v637_v36, 6  ;;  %v1277_v38 = vrot.slane %v637_v36, 7  ;;  %v1536_v39 = vsel %vm1002_vm6, %v637_v36, %v1535_v34  ;;  %v1794_v40 = vrot.slane %v637_v36, 1  ;;  %v5425_v42 = vpop.f32.mrb[21].mxu0  ;;  %v5431_v47 = vpop.f32.mrb[21].mxu1 }
 0x107   :  { %v1023_v43 = vrot.slane %v685_v41, 5  ;;  %v1279_v44 = vrot.slane %v685_v41, 6  ;;  %v1537_v45 = vrot.slane %v685_v41, 7  ;;  %v640_v46 = vpop.f32.mrb[22].mxu0  ;;  %v688_v52 = vpop.f32.mrb[22].mxu1 }
 0x108   :  { %v1022_v48 = vsel %vm1002_vm6, %v1021_v37, %v1020_v32  ;;  %v1278_v49 = vsel %vm1002_vm6, %v1277_v38, %v1276_v29  ;;  %v1795_v50 = vsel %vm1002_vm6, %v1794_v40, %v1793_v35  ;;  %v5426_v51 = vpop.f32.mrb[23].mxu0  ;;  %v5432_v57 = vpop.f32.mrb[23].mxu1  ;;  %v5166_v47 = vld [vmem:[%s7536_s3] ss:$0 sm:$0xff]  ;;  %vm6657_vm6 = vmand %vm2566_vm13, %vm2567_vm3 }
 0x109   :  { %v1024_v53 = vsel %vm1005_vm7, %v1023_v43, %v1022_v48  ;;  %v1280_v54 = vsel %vm1005_vm7, %v1279_v44, %v1278_v49  ;;  %v1538_v55 = vsel %vm1005_vm7, %v1537_v45, %v1536_v39  ;;  %v1796_v56 = vsel %vm1005_vm7, %v685_v41, %v1795_v50  ;;  %vm6697_vm7 = vmand %vm2650_vm14, %vm2651_vm5 }
 0x10d   :  { %v733_v58 = vpop.f32.mrb[24].mxu0  ;;  %v781_v1 = vpop.f32.mrb[24].mxu1 }
 0x10e   :  { %v1025_v59 = vrot.slane %v733_v58, 4  ;;  %v1281_v60 = vrot.slane %v733_v58, 5  ;;  %v1539_v61 = vrot.slane %v733_v58, 6  ;;  %v1797_v62 = vrot.slane %v733_v58, 7  ;;  %v5437_v63 = vpop.f32.mrb[25].mxu0  ;;  %v5443_v7 = vpop.f32.mrb[25].mxu1 }
 0x10f   :  { %v1027_v2 = vrot.slane %v781_v1, 3  ;;  %v1283_v3 = vrot.slane %v781_v1, 4  ;;  %v1541_v4 = vrot.slane %v781_v1, 5  ;;  %v1799_v5 = vrot.slane %v781_v1, 6  ;;  %v736_v6 = vpop.f32.mrb[26].mxu0  ;;  %v784_v9 = vpop.f32.mrb[26].mxu1 }
 0x110   :  { %v5438_v8 = vpop.f32.mrb[27].mxu0  ;;  %v1026_v10 = vsel %vm1008_vm8, %v1025_v59, %v1024_v53  ;;  %v1282_v11 = vsel %vm1008_vm8, %v1281_v60, %v1280_v54  ;;  %v1540_v12 = vsel %vm1008_vm8, %v1539_v61, %v1538_v55  ;;  %v1798_v13 = vsel %vm1008_vm8, %v1797_v62, %v1796_v56  ;;  %v5444_v18 = vpop.f32.mrb[27].mxu1  ;;  %v108_v53 = vld [vmem:[%s7537_s5] sm:$0xff]  ;;  %v109_v55 = vld [vmem:[%s7537_s5 + $0x8] sm:$0xff] }
 0x111   :  { %v1028_v19 = vsel %vm1011_vm9, %v1027_v2, %v1026_v10  ;;  %v1284_v20 = vsel %vm1011_vm9, %v1283_v3, %v1282_v11  ;;  %v1542_v21 = vsel %vm1011_vm9, %v1541_v4, %v1540_v12  ;;  %v1800_v22 = vsel %vm1011_vm9, %v1799_v5, %v1798_v13  ;;  %v5178_v56 = vld [vmem:[%s7536_s3 + $0x1] ss:$0 sm:$0xff]  ;;  %v5192_v4 = vld [vmem:[%s7536_s3 + $0x2] ss:$0 sm:$0xff]  ;;  %v5206_v18 = vld [vmem:[%s7536_s3 + $0x3] ss:$0 sm:$0xff] }
 0x115   :  { %v829_v23 = vpop.f32.mrb[28].mxu0  ;;  %v877_v29 = vpop.f32.mrb[28].mxu1 }
 0x116   :  { %v1029_v24 = vrot.slane %v829_v23, 2  ;;  %v1285_v25 = vrot.slane %v829_v23, 3  ;;  %v1543_v26 = vrot.slane %v829_v23, 4  ;;  %v1801_v27 = vrot.slane %v829_v23, 5  ;;  %v5449_v28 = vpop.f32.mrb[29].mxu0  ;;  %v5455_v35 = vpop.f32.mrb[29].mxu1 }
 0x117   :  { %v1031_v30 = vrot.slane %v877_v29, 1  ;;  %v1287_v31 = vrot.slane %v877_v29, 2  ;;  %v1545_v32 = vrot.slane %v877_v29, 3  ;;  %v1803_v33 = vrot.slane %v877_v29, 4  ;;  %v832_v34 = vpop.f32.mrb[30].mxu0  ;;  %v880_v38 = vpop.f32.mrb[30].mxu1 }
 0x118   :  { %v5450_v36 = vpop.f32.mrb[31].mxu0  ;;  %v1030_v37 = vsel %vm1014_vm10, %v1029_v24, %v1028_v19  ;;  %v1286_v39 = vsel %vm1014_vm10, %v1285_v25, %v1284_v20  ;;  %v1544_v40 = vsel %vm1014_vm10, %v1543_v26, %v1542_v21  ;;  %v1802_v41 = vsel %vm1014_vm10, %v1801_v27, %v1800_v22  ;;  %v5456_v43 = vpop.f32.mrb[31].mxu1 }
 0x119   :  { %v1032_v42 = vsel %vm1017_vm11, %v1031_v30, %v1030_v37  ;;  %v1288_v44 = vsel %vm1017_vm11, %v1287_v31, %v1286_v39  ;;  %v1546_v45 = vsel %vm1017_vm11, %v1545_v32, %v1544_v40  ;;  %v1804_v46 = vsel %vm1017_vm11, %v1803_v33, %v1802_v41  ;;  %v1039_v32 = vld [vmem:[#allocation2] sm:$0xff]  ;;  %v1296_v39 = vld [vmem:[#allocation2 + $0x10] sm:$0xff]  ;;  %v1297_v40 = vld [vmem:[#allocation2 + $0x18] sm:$0xff] }
 0x11a   :  { %v5722_v27 = vmov 0   ;;  %v5723_v41 = vmov 1966171168   ;;  %v1939_v43 = vlaneseq }
 0x11b   :  { %5634 = vset.pattern.permute.xlu1 %v5722_v27  ;;  %5635 = vset.pattern.permute.xlu0 %v5722_v27 }
 0x11d   :  { %v5463_v48 = vpop.f32.mrb[32].mxu0 }
 0x11e   :  { %v979_v49 = vadd.f32 %v5463_v48, %v5166_v47  ;;  %v973_v50 = vpop.f32.mrb[33].mxu0 }
 0x11f   :  { %v974_v51 = vadd.f32 %v5166_v47, %v973_v50 }
 0x120   :  { %v1036_v52 = vadd.f32 %v1032_v42, %v979_v49  ;;  %v1937_v42 = vunpack.c.l.s4 %v5723_v41 }
 0x121   :  { %v1035_v54 = vadd.f32 %v6056_v14, %v974_v51  ;;  %v1940_v51 = vshrl.u32 %v1939_v43, 7 }
 0x122   :  { %v6112_v60 = vadd.f32 %v1036_v52, %v109_v55  ;;  %v1938_v50 = vunpack.c.0.s8 %v1937_v42 }
 0x123   :  { %v6108_v57 = vadd.f32 %v1035_v54, %v108_v53 }
 0x124   :  { %v1044_v2 = vsel %vm116_vm0, %v6112_v60, -inf }
 0x125   :  { %v5476_v58 = vpop.f32.mrb[34].mxu0  ;;  %v1041_v59 = vsel %vm116_vm0, %v6108_v57, -inf }
 0x126   :  { %v1258_v61 = vadd.f32 %v5476_v58, %v5178_v56  ;;  %v1252_v62 = vpop.f32.mrb[35].mxu0  ;;  %1042 = vmax.xlane.f32.xlu0 %v1041_v59  ;;  %v6169_v58 = vsub.s32 %v1938_v50, %v1940_v51 }
 0x127   :  { %v1253_v14 = vadd.f32 %v5178_v56, %v1252_v62  ;;  %v1555_v56 = vld [vmem:[#allocation2 + $0x28] sm:$0xff] }
 0x128   :  { %v1292_v63 = vadd.f32 %v1288_v44, %v1258_v61 }
 0x129   :  { %v1291_v1 = vadd.f32 %v6059_v15, %v1253_v14  ;;  %v1554_v14 = vld [vmem:[#allocation2 + $0x20] sm:$0xff] }
 0x12a   :  { %1045 = vmax.xlane.f32.xlu0 %v1044_v2  ;;  %v6117_v3 = vadd.f32 %v1292_v63, %v109_v55 }
 0x12b   :  { %v6122_v5 = vadd.f32 %v1291_v1, %v108_v53 }
 0x12c   :  { %v1301_v6 = vsel %vm116_vm0, %v6117_v3, -inf }
 0x12d   :  { %v5489_v7 = vpop.f32.mrb[36].mxu0  ;;  %v1298_v8 = vsel %vm116_vm0, %v6122_v5, -inf }
 0x12e   :  { %v1516_v15 = vadd.f32 %v5489_v7, %v5192_v4  ;;  %v1510_v9 = vpop.f32.mrb[37].mxu0  ;;  %1299 = vmax.xlane.f32.xlu1 %v1298_v8  ;;  %1302 = vmax.xlane.f32.xlu0 %v1301_v6 }
 0x12f   :  { %v1511_v10 = vadd.f32 %v5192_v4, %v1510_v9 }
 0x130   :  { %v1550_v11 = vadd.f32 %v1546_v45, %v1516_v15 }
 0x131   :  { %v1549_v12 = vadd.f32 %v6062_v16, %v1511_v10 }
 0x132   :  { %v6129_v13 = vadd.f32 %v1550_v11, %v109_v55 }
 0x133   :  { %v6136_v20 = vadd.f32 %v1549_v12, %v108_v53  ;;  %v1812_v12 = vld [vmem:[#allocation2 + $0x30] sm:$0xff] }
 0x134   :  { %v1559_v19 = vsel %vm116_vm0, %v6129_v13, -inf }
 0x135   :  { %v5502_v21 = vpop.f32.mrb[38].mxu0  ;;  %1560 = vmax.xlane.f32.xlu0 %v1559_v19  ;;  %v1556_v16 = vsel %vm116_vm0, %v6136_v20, -inf }
 0x136   :  { %v1774_v22 = vadd.f32 %v5502_v21, %v5206_v18  ;;  %v1768_v23 = vpop.f32.mrb[39].mxu0 }
 0x137   :  { %v1769_v24 = vadd.f32 %v5206_v18, %v1768_v23  ;;  %v6186_v18 = vsub.s32 0, %v1940_v51 }
 0x138   :  { %v1808_v25 = vadd.f32 %v1804_v46, %v1774_v22 }
 0x139   :  { %v1807_v26 = vadd.f32 %v6065_v17, %v1769_v24  ;;  %1557 = vmax.xlane.f32.xlu0 %v1556_v16  ;;  %v1040_v17 = vld [vmem:[#allocation2 + $0x8] sm:$0xff] }
 0x13a   :  { %v6145_v30 = vadd.f32 %v1808_v25, %v109_v55 }
 0x13b   :  { %v6141_v28 = vadd.f32 %v1807_v26, %v108_v53 }
 0x13c   :  { %v1817_v31 = vsel %vm116_vm0, %v6145_v30, -inf }
 0x13d   :  { %v1814_v29 = vsel %vm116_vm0, %v6141_v28, -inf }
 0x13e   :  { %1815 = vmax.xlane.f32.xlu0 %v1814_v29 }
 0x142   :  { %1818 = vmax.xlane.f32.xlu0 %v1817_v31  ;;  %v5652_v31 = vld [vmem:[%s7538_s2] sm:$0xff]  }
 0x143   :  { %5465 = vmatpush3.bf16.msra.mxu1 %v5652_v31 }
 0x144   :  { %5477 = vmatprep.subr.bf16.mxu1 %v7541_v0 }
 0x1b3   :  { %v1043_v33 = vpop.xlane.xlu0 %1042 }
 0x1b4   :  { %v1047_v34 = vmax.f32 %v1039_v32, %v1043_v33 }
 0x1b6   :  { %v1049_v35 = vsub.f32 %v1039_v32, %v1047_v34  ;;  %1086 = vst.msk [vmem:[#allocation2] sm:$0xff] %vm33_vm4, %v1047_v34 }
 0x1b7   :  { %v1046_v36 = vpop.xlane.xlu0 %1045 }
 0x1b8   :  { %v1051_v37 = vmul.f32 1.442695, %v1049_v35  ;;  %v1048_v38 = vmax.f32 %v1040_v17, %v1046_v36  ;;  %v1813_v35 = vld [vmem:[#allocation2 + $0x38] sm:$0xff] }
 0x1ba   :  { %5656 = vpow2.f32 %v1051_v37  ;;  %v1050_v44 = vsub.f32 %v1040_v17, %v1048_v38  ;;  %1087 = vst.msk [vmem:[#allocation2 + $0x8] sm:$0xff] %vm33_vm4, %v1048_v38  ;;  %1062 = vperm.xlu1 %5634, %v1048_v38  }
 0x1bb   :  { %v1300_v45 = vpop.xlane.xlu1 %1299  ;;  %v1303_v46 = vpop.xlane.xlu0 %1302 }
 0x1bc   :  { %v1053_v47 = vmul.f32 1.442695, %v1050_v44  ;;  %v1304_v48 = vmax.f32 %v1296_v39, %v1300_v45  ;;  %v1305_v49 = vmax.f32 %v1297_v40, %v1303_v46 }
 0x1be   :  { %5658 = vpow2.f32 %v1053_v47  ;;  %v1306_v52 = vsub.f32 %v1296_v39, %v1304_v48  ;;  %1343 = vst.msk [vmem:[#allocation2 + $0x10] sm:$0xff] %vm33_vm4, %v1304_v48  ;;  %v1307_v53 = vsub.f32 %v1297_v40, %v1305_v49  ;;  %1344 = vst.msk [vmem:[#allocation2 + $0x18] sm:$0xff] %vm33_vm4, %v1305_v49  ;;  %1057 = vperm.xlu1 %5634, %v1047_v34  }
 0x1c0   :  { %v1308_v54 = vmul.f32 1.442695, %v1306_v52  ;;  %v1310_v55 = vmul.f32 1.442695, %v1307_v53 }
 0x1c2   :  { %5660 = vpow2.f32 %v1308_v54  ;;  %1319 = vperm.xlu1 %5634, %v1305_v49   ;;  %v1561_v59 = vpop.xlane.xlu0 %1560 }
 0x1c3   :  { %5662 = vpow2.f32 %v1310_v55  ;;  %v1563_v61 = vmax.f32 %v1555_v56, %v1561_v59 }
 0x1c4   :  { %v6171_v62 = vpop.eup %5656 }
 0x1c5   :  { %v1565_v63 = vsub.f32 %v1555_v56, %v1563_v61  ;;  %1602 = vst.msk [vmem:[#allocation2 + $0x28] sm:$0xff] %vm33_vm4, %v1563_v61  ;;  %1093 = vperm.xlu0 %5635, %v6171_v62   ;;  %v2676_v1 = vrot.slane %v6171_v62, %v6169_v58  ;;  %v2669_v2 = vcombine.high %v6171_v62, %v6171_v62 }
 0x1c6   :  { %1314 = vperm.xlu1 %5634, %v1304_v48   ;;  %v1558_v4 = vpop.xlane.xlu0 %1557 }
 0x1c7   :  { %v1568_v6 = vmul.f32 1.442695, %v1565_v63  ;;  %v1562_v7 = vmax.f32 %v1554_v14, %v1558_v4  ;;  %v6180_v8 = vrot.slane %v2676_v1, %v6169_v58  ;;  %v2683_v15 = vrot.slane %v2669_v2, %v6169_v58 }
 0x1c8   :  { %v6183_v9 = vpop.eup %5658  ;;  %v2684_v10 = vcombine.high %v2676_v1, %v2676_v1 }
 0x1c9   :  { %5664 = vpow2.f32 %v1568_v6  ;;  %v1564_v11 = vsub.f32 %v1554_v14, %v1562_v7  ;;  %1601 = vst.msk [vmem:[#allocation2 + $0x20] sm:$0xff] %vm33_vm4, %v1562_v7  ;;  %1572 = vperm.xlu0 %5635, %v1562_v7   ;;  %v6189_v19 = vrot.slane %v2683_v15, %v6169_v58  ;;  %v6197_v22 = vrot.slane %v6183_v9, %v6169_v58 }
 0x1ca   :  { %1098 = vperm.xlu1 %5634, %v6183_v9   ;;  %v6193_v21 = vrot.slane %v2684_v10, %v6169_v58  ;;  %v2685_v23 = vcombine.high %v2683_v15, %v2683_v15  ;;  %v2718_v24 = vcombine.high %v6183_v9, %v6183_v9  ;;  %v2714_v26 = vcombine.high %v6180_v8, %v6180_v8 }
 0x1cb   :  { %v1566_v25 = vmul.f32 1.442695, %v1564_v11  ;;  %v1816_v16 = vpop.xlane.xlu0 %1815  ;;  %v2715_v32 = vcombine.high %v6189_v19, %v6189_v19  ;;  %v6212_v33 = vrot.slane %v6197_v22, %v6169_v58 }
 0x1cc   :  { %v6203_v27 = vpop.eup %5660  ;;  %v1820_v29 = vmax.f32 %v1812_v12, %v1816_v16  ;;  %v2716_v34 = vcombine.high %v6193_v21, %v6193_v21  ;;  %v6223_v38 = vrot.slane %v2718_v24, %v6169_v58  ;;  %v6232_v41 = vrot.slane %v2685_v23, %v6169_v58 }
 0x1cd   :  { %v6216_v17 = vpop.eup %5662  ;;  %5666 = vpow2.f32 %v1566_v25  ;;  %v2790_v36 = vrot.slane %v6203_v27, %v6169_v58  ;;  %v2783_v37 = vcombine.high %v6203_v27, %v6203_v27  ;;  %v2763_v46 = vcombine.high %v6212_v33, %v6212_v33 }
 0x1ce   :  { %v1822_v39 = vsub.f32 %v1812_v12, %v1820_v29  ;;  %1859 = vst.msk [vmem:[#allocation2 + $0x30] sm:$0xff] %vm33_vm4, %v1820_v29  ;;  %1356 = vperm.xlu0 %5635, %v6216_v17   ;;  %1577 = vperm.xlu1 %5634, %v1563_v61   ;;  %v6229_v40 = vrot.slane %v6216_v17, %v6169_v58 }
 0x1cf   :  { %v1819_v42 = vpop.xlane.xlu0 %1818  ;;  %v2806_v43 = vrot.slane %v2790_v36, %v6169_v58  ;;  %v2797_v44 = vrot.slane %v2783_v37, %v6169_v58  ;;  %v2798_v45 = vcombine.high %v2790_v36, %v2790_v36  ;;  %v6243_v50 = vrot.slane %v6223_v38, %v6169_v58 }
 0x1d0   :  { %v1824_v47 = vmul.f32 1.442695, %v1822_v39  ;;  %v1821_v48 = vmax.f32 %v1813_v35, %v1819_v42  ;;  %v2855_v49 = vrot.slane %v6229_v40, %v6169_v58  ;;  %v2832_v54 = vcombine.high %v6216_v17, %v6216_v17 }
 0x1d1   :  { %v2828_v51 = vcombine.high %v2806_v43, %v2806_v43  ;;  %v2813_v52 = vrot.slane %v2797_v44, %v6169_v58  ;;  %v2820_v53 = vrot.slane %v2798_v45, %v6169_v58  ;;  %v3080_v14 = vrot.slane %v2806_v43, %v6186_v18 }
 0x1d2   :  { %5668 = vpow2.f32 %v1824_v47  ;;  %v1823_v55 = vsub.f32 %v1813_v35, %v1821_v48  ;;  %1860 = vst.msk [vmem:[#allocation2 + $0x38] sm:$0xff] %vm33_vm4, %v1821_v48  ;;  %1351 = vperm.xlu1 %5634, %v6203_v27   ;;  %v3112_v56 = vrot.slane %v2855_v49, %v6186_v18  ;;  %v2877_v59 = vcombine.high %v2855_v49, %v2855_v49 }
 0x1d3   :  { %v6252_v61 = vpop.eup %5664  ;;  %v3088_v63 = vrot.slane %v2828_v51, %v6186_v18  ;;  %v3096_v1 = vrot.slane %v2813_v52, %v6186_v18  ;;  %v2829_v2 = vcombine.high %v2813_v52, %v2813_v52  ;;  %v3084_v6 = vrot.slane %v2820_v53, %v6186_v18 }
 0x1d4   :  { %7548 = vst [vmem:[#allocation6_spill] sm:$0xff] %v6252_v61  ;;  %v1826_v4 = vmul.f32 1.442695, %v1823_v55  ;;  %v6260_v7 = vrot.slane %v6252_v61, %v6169_v58  ;;  %v3325_v15 = vsel %vm2566_vm13, %v6212_v33, %v3112_v56  ;;  %v2830_v23 = vcombine.high %v2820_v53, %v2820_v53 }
 0x1d5   :  { %v6265_v10 = vsel %vm2566_vm13, %v2714_v26, %v3088_v63  ;;  %v6269_v11 = vsel %vm2566_vm13, %v6189_v19, %v3096_v1  ;;  %v3104_v12 = vrot.slane %v2829_v2, %v6186_v18  ;;  %v6274_v24 = vsel %vm2566_vm13, %v6193_v21, %v3084_v6 }
 0x1d6   :  { %5670 = vpow2.f32 %v1826_v4  ;;  %1830 = vperm.xlu1 %5634, %v1820_v29   ;;  %v2953_v25 = vrot.slane %v6260_v7, %v6169_v58  ;;  %v3120_v16 = vrot.slane %v2877_v59, %v6186_v18  ;;  %v3092_v19 = vrot.slane %v2830_v23, %v6186_v18 }
 0x1d7   :  { %v6279_v26 = vpop.eup %5666  ;;  %v6282_v31 = vsel %vm2566_vm13, %v2715_v32, %v3104_v12  ;;  %v2799_v33 = vcombine.high %v2797_v44, %v2797_v44  ;;  %v6286_v35 = vrot.slane %v2832_v54, %v6169_v58  ;;  %v3317_v32 = vsel %vm2566_vm13, %v6180_v8, %v3080_v14 }
 0x1d8   :  { %1609 = vperm.xlu0 %5635, %v6279_v26   ;;  %v2888_v29 = vrot.slane %v6279_v26, %v6169_v58  ;;  %v2881_v36 = vcombine.high %v6279_v26, %v6279_v26  ;;  %v3192_v37 = vrot.slane %v2953_v25, %v6186_v18  ;;  %v2975_v39 = vcombine.high %v2953_v25, %v2953_v25 }
 0x1d9   :  { %v6300_v42 = vsel %vm2566_vm13, %v2716_v34, %v3092_v19  ;;  %v3327_v43 = vsel %vm2566_vm13, %v2763_v46, %v3120_v16  ;;  %v6304_v44 = vrot.slane %v2799_v33, %v6169_v58  ;;  %v6312_v8 = vrot.slane %v6286_v35, %v6169_v58 }
 0x1da   :  { %1835 = vperm.xlu1 %5634, %v1821_v48   ;;  %v2904_v45 = vrot.slane %v2888_v29, %v6169_v58  ;;  %v6308_v47 = vrot.slane %v2881_v36, %v6169_v58  ;;  %v2896_v49 = vcombine.high %v2888_v29, %v2888_v29  ;;  %v6315_v21 = vsel %vm2650_vm14, %v3325_v15, %v3192_v37 }
 0x1db   :  { %v3200_v34 = vrot.slane %v2975_v39, %v6186_v18  ;;  %v3100_v46 = vrot.slane %v6304_v44, %v6186_v18  ;;  %v2930_v48 = vcombine.high %v6252_v61, %v6252_v61 }
 0x1dc   :  { %v6322_v51 = vpop.eup %5668  ;;  %v3160_v52 = vrot.slane %v2904_v45, %v6186_v18  ;;  %v2926_v53 = vcombine.high %v2904_v45, %v2904_v45  ;;  %v2911_v54 = vrot.slane %v6308_v47, %v6169_v58  ;;  %v2918_v55 = vrot.slane %v2896_v49, %v6169_v58 }
 0x1dd   :  { %7549 = vst [vmem:[#allocation7_spill] sm:$0xff] %v6322_v51  ;;  %1867 = vperm.xlu0 %5635, %v6322_v51   ;;  %v2986_v56 = vrot.slane %v6322_v51, %v6169_v58  ;;  %v2979_v59 = vcombine.high %v6322_v51, %v6322_v51  ;;  %v6334_v14 = vsel %vm2650_vm14, %v3327_v43, %v3200_v34 }
 0x1de   :  { %v2897_v63 = vcombine.high %v6308_v47, %v6308_v47  ;;  %1614 = vperm.xlu1 %5634, %v6252_v61   ;;  %v3334_v1 = vsel %vm2650_vm14, %v3317_v32, %v3160_v52  ;;  %v3168_v2 = vrot.slane %v2926_v53, %v6186_v18  ;;  %v3176_v4 = vrot.slane %v2911_v54, %v6186_v18 }
 0x1df   :  { %v3002_v6 = vrot.slane %v2986_v56, %v6169_v58  ;;  %v2993_v15 = vrot.slane %v2979_v59, %v6169_v58  ;;  %v2927_v12 = vcombine.high %v2911_v54, %v2911_v54  ;;  %v2994_v23 = vcombine.high %v2986_v56, %v2986_v56 }
 0x1e0   :  { %v6376_v25 = vpop.eup %5670  ;;  %v3336_v16 = vsel %vm2650_vm14, %v6265_v10, %v3168_v2  ;;  %v3338_v19 = vsel %vm2650_vm14, %v6269_v11, %v3176_v4  ;;  %v3164_v33 = vrot.slane %v2918_v55, %v6186_v18  ;;  %v2928_v29 = vcombine.high %v2918_v55, %v2918_v55 }
 0x1e1   :  { %7550 = vst [vmem:[#allocation8_spill] sm:$0xff] %v6376_v25  ;;  %v3240_v36 = vrot.slane %v3002_v6, %v6186_v18  ;;  %v3024_v37 = vcombine.high %v3002_v6, %v3002_v6  ;;  %v3009_v39 = vrot.slane %v2993_v15, %v6169_v58  ;;  %v3184_v32 = vrot.slane %v2927_v12, %v6186_v18 }
 0x1e2   :  { %1872 = vperm.xlu1 %5634, %v6376_v25   ;;  %v3016_v43 = vrot.slane %v2994_v23, %v6169_v58  ;;  %v3335_v10 = vsel %vm2650_vm14, %v6274_v24, %v3164_v33  ;;  %v6392_v11 = vrot.slane %v6376_v25, %v6169_v58  ;;  %v3172_v45 = vrot.slane %v2928_v29, %v6186_v18 }
 0x1e3   :  { %v3351_v47 = vsel %vm3350_vm15, %v3334_v1, %v3240_v36  ;;  %v3248_v49 = vrot.slane %v3024_v37, %v6186_v18  ;;  %v3256_v34 = vrot.slane %v3009_v39, %v6186_v18  ;;  %v3025_v52 = vcombine.high %v3009_v39, %v3009_v39 }
 0x1e4   :  { %v3340_v53 = vsel %vm2650_vm14, %v6282_v31, %v3184_v32  ;;  %v3244_v54 = vrot.slane %v3016_v43, %v6186_v18  ;;  %v3051_v24 = vrot.slane %v6392_v11, %v6169_v58  ;;  %v3026_v55 = vcombine.high %v3016_v43, %v3016_v43 }
 0x1e5   :  { %v6404_v56 = vsel %vm3350_vm15, %v3336_v16, %v3248_v49  ;;  %v6407_v59 = vsel %vm3350_vm15, %v3338_v19, %v3256_v34  ;;  %v3264_v1 = vrot.slane %v3025_v52, %v6186_v18  ;;  %v3337_v2 = vsel %vm2650_vm14, %v6300_v42, %v3172_v45 }
 0x1e6   :  { %4089 = vperm.xlu1 %5634, %v3351_v47   ;;  %v6413_v31 = vsel %vm3350_vm15, %v3335_v10, %v3244_v54  ;;  %v3272_v4 = vrot.slane %v3051_v24, %v6186_v18  ;;  %v3252_v6 = vrot.slane %v3026_v55, %v6186_v18  ;;  %v3073_v12 = vcombine.high %v3051_v24, %v3051_v24 }
 0x1e7   :  { %v6418_v23 = vsel %vm3350_vm15, %v3340_v53, %v3264_v1  ;;  %v2925_v16 = vrot.slane %v2897_v63, %v6169_v58  ;;  %v2995_v19 = vcombine.high %v2993_v15, %v2993_v15  ;;  %v3322_v42 = vsel %vm2566_vm13, %v6232_v41, %v3100_v46 }
 0x1e8   :  { %v6428_v33 = vsel %vm3350_vm15, %v6315_v21, %v3272_v4  ;;  %v6431_v29 = vsel %vm3350_vm15, %v3337_v2, %v3252_v6  ;;  %v3280_v36 = vrot.slane %v3073_v12, %v6186_v18  ;;  %v6438_v63 = vrot.slane %v2930_v48, %v6169_v58 }
 0x1e9   :  { %v3023_v15 = vrot.slane %v2995_v19, %v6169_v58  ;;  %v3180_v37 = vrot.slane %v2925_v16, %v6186_v18  ;;  %v3028_v46 = vcombine.high %v6376_v25, %v6376_v25  ;;  %v3128_v21 = vrot.slane %v6312_v8, %v6186_v18 }
 0x1ea   :  { %v6448_v39 = vsel %vm3350_vm15, %v6334_v14, %v3280_v36  ;;  %v2960_v32 = vrot.slane %v6438_v63, %v6169_v58  ;;  %v2717_v48 = vcombine.high %v6232_v41, %v6232_v41  ;;  %v2831_v43 = vcombine.high %v6304_v44, %v6304_v44 }
 0x1eb   :  { %v3260_v10 = vrot.slane %v3023_v15, %v6186_v18  ;;  %v3339_v45 = vsel %vm2650_vm14, %v3322_v42, %v3180_v37  ;;  %v3042_v47 = vrot.slane %v3028_v46, %v6169_v58  ;;  %v3329_v49 = vsel %vm2566_vm13, %v6243_v50, %v3128_v21 }
 0x1ec   :  { %v3208_v14 = vrot.slane %v2960_v32, %v6186_v18  ;;  %v2929_v34 = vcombine.high %v2925_v16, %v2925_v16  ;;  %v3027_v52 = vcombine.high %v3023_v15, %v3023_v15  ;;  %v3108_v53 = vrot.slane %v2831_v43, %v6186_v18 }
 0x1ed   :  { %v6464_v41 = vsel %vm3350_vm15, %v3339_v45, %v3260_v10  ;;  %v3058_v44 = vrot.slane %v3042_v47, %v6169_v58  ;;  %v2764_v54 = vcombine.high %v6243_v50, %v6243_v50  ;;  %v2878_v24 = vcombine.high %v6312_v8, %v6312_v8 }
 0x1ee   :  { %v3346_v55 = vsel %vm2650_vm14, %v3329_v49, %v3208_v14  ;;  %v3188_v1 = vrot.slane %v2929_v34, %v6186_v18  ;;  %v3268_v2 = vrot.slane %v3027_v52, %v6186_v18  ;;  %v3324_v4 = vsel %vm2566_vm13, %v2717_v48, %v3108_v53 }
 0x1ef   :  { %v3288_v6 = vrot.slane %v3058_v44, %v6186_v18  ;;  %v2976_v12 = vcombine.high %v2960_v32, %v2960_v32  ;;  %v3074_v16 = vcombine.high %v3058_v44, %v3058_v44  ;;  %v3136_v19 = vrot.slane %v2878_v24, %v6186_v18 }
 0x1f0   :  { %v3341_v42 = vsel %vm2650_vm14, %v3324_v4, %v3188_v1  ;;  %v2733_v50 = vcombine.high %v6197_v22, %v6197_v22  ;;  %v2847_v8 = vcombine.high %v6229_v40, %v6229_v40  ;;  %v2945_v36 = vcombine.high %v6260_v7, %v6260_v7 }
 0x1f1   :  { %v6485_v15 = vsel %vm3350_vm15, %v3346_v55, %v3288_v6  ;;  %v6488_v37 = vsel %vm3350_vm15, %v3341_v42, %v3268_v2  ;;  %v3216_v46 = vrot.slane %v2976_v12, %v6186_v18  ;;  %v3296_v21 = vrot.slane %v3074_v16, %v6186_v18 }
 0x1f2   :  { %v3331_v32 = vsel %vm2566_vm13, %v2764_v54, %v3136_v19  ;;  %v2755_v22 = vrot.slane %v2733_v50, %v6169_v58  ;;  %v2869_v48 = vrot.slane %v2847_v8, %v6169_v58  ;;  %v2967_v7 = vrot.slane %v2945_v36, %v6169_v58 }
 0x1f3   :  { %v3348_v40 = vsel %vm2650_vm14, %v3331_v32, %v3216_v46  ;;  %v3043_v43 = vcombine.high %v6392_v11, %v6392_v11  ;;  %v2734_v10 = vcombine.high %v6223_v38, %v6223_v38  ;;  %v2848_v38 = vcombine.high %v6286_v35, %v6286_v35 }
 0x1f4   :  { %v6502_v45 = vsel %vm3350_vm15, %v3348_v40, %v3296_v21  ;;  %v3116_v49 = vrot.slane %v2869_v48, %v6186_v18  ;;  %v2765_v14 = vcombine.high %v2755_v22, %v2755_v22  ;;  %v2879_v34 = vcombine.high %v2869_v48, %v2869_v48 }
 0x1f5   :  { %v3065_v52 = vrot.slane %v3043_v43, %v6169_v58  ;;  %v3196_v53 = vrot.slane %v2967_v7, %v6186_v18  ;;  %v2977_v44 = vcombine.high %v2967_v7, %v2967_v7  ;;  %v2762_v54 = vrot.slane %v2734_v10, %v6169_v58 }
 0x1f6   :  { %v3326_v24 = vsel %vm2566_vm13, %v2755_v22, %v3116_v49  ;;  %v3124_v11 = vrot.slane %v2879_v34, %v6186_v18  ;;  %v2946_v55 = vcombine.high %v6438_v63, %v6438_v63  ;;  %v2876_v16 = vrot.slane %v2848_v38, %v6169_v58 }
 0x1f7   :  { %v3276_v1 = vrot.slane %v3065_v52, %v6186_v18  ;;  %v3343_v2 = vsel %vm2650_vm14, %v3326_v24, %v3196_v53  ;;  %v3075_v4 = vcombine.high %v3065_v52, %v3065_v52  ;;  %v3204_v6 = vrot.slane %v2977_v44, %v6186_v18 }
 0x1f8   :  { %v3328_v12 = vsel %vm2566_vm13, %v2765_v14, %v3124_v11  ;;  %v2974_v19 = vrot.slane %v2946_v55, %v6169_v58  ;;  %v3044_v42 = vcombine.high %v3042_v47, %v3042_v47  ;;  %v3132_v36 = vrot.slane %v2876_v16, %v6186_v18 }
 0x1f9   :  { %v6521_v50 = vsel %vm3350_vm15, %v3343_v2, %v3276_v1  ;;  %v3284_v35 = vrot.slane %v3075_v4, %v6186_v18  ;;  %v3345_v63 = vsel %vm2650_vm14, %v3328_v12, %v3204_v6  ;;  %v2880_v21 = vcombine.high %v2876_v16, %v2876_v16 }
 0x1fa   :  { %v3072_v8 = vrot.slane %v3044_v42, %v6169_v58  ;;  %v3212_v46 = vrot.slane %v2974_v19, %v6186_v18  ;;  %v2766_v22 = vcombine.high %v2762_v54, %v2762_v54  ;;  %v2978_v48 = vcombine.high %v2974_v19, %v2974_v19 }
 0x1fb   :  { %v6529_v32 = vsel %vm3350_vm15, %v3345_v63, %v3284_v35  ;;  %v3330_v40 = vsel %vm2566_vm13, %v2762_v54, %v3132_v36  ;;  %v3140_v43 = vrot.slane %v2880_v21, %v6186_v18 }
 0x1fc   :  { %v3292_v47 = vrot.slane %v3072_v8, %v6186_v18  ;;  %v3076_v7 = vcombine.high %v3072_v8, %v3072_v8  ;;  %v3347_v10 = vsel %vm2650_vm14, %v3330_v40, %v3212_v46  ;;  %v3220_v49 = vrot.slane %v2978_v48, %v6186_v18  ;;  %v5653_v46 = vld [vmem:[%s7538_s2 + $0x8] sm:$0xff]  }
 0x1fd   :  { %v3332_v52 = vsel %vm2566_vm13, %v2766_v22, %v3140_v43 }
 0x1fe   :  { %v6537_v14 = vsel %vm3350_vm15, %v3347_v10, %v3292_v47  ;;  %v3300_v34 = vrot.slane %v3076_v7, %v6186_v18  ;;  %v3349_v53 = vsel %vm2650_vm14, %v3332_v52, %v3220_v49 }
 0x200   :  { %v6543_v44 = vsel %vm3350_vm15, %v3349_v53, %v3300_v34  ;;  %v5654_v34 = vld [vmem:[%s7538_s2 + $0x10] sm:$0xff]  }
 0x239   :  { %v1063_v54 = vpop.permute.xlu1 %1062 }
 0x23a   :  { %v1066_v24 = vsub.f32 %v6112_v60, %v1063_v54 }
 0x23c   :  { %v1069_v11 = vmul.f32 1.442695, %v1066_v24 }
 0x23d   :  { %v1058_v38 = vpop.permute.xlu1 %1057 }
 0x23e   :  { %5672 = vpow2.f32 %v1069_v11  ;;  %v1065_v55 = vsub.f32 %v6108_v57, %v1058_v38 }
 0x240   :  { %v1067_v1 = vmul.f32 1.442695, %v1065_v55 }
 0x241   :  { %v1320_v2 = vpop.permute.xlu1 %1319 }
 0x242   :  { %5674 = vpow2.f32 %v1067_v1  ;;  %v1323_v4 = vsub.f32 %v6117_v3, %v1320_v2 }
 0x244   :  { %v1326_v6 = vmul.f32 1.442695, %v1323_v4  ;;  %v6548_v12 = vpop.permute.xlu0 %1093 }
 0x245   :  { %7551 = vst [vmem:[#allocation9_spill] sm:$0xff] %v6548_v12  ;;  %v1315_v16 = vpop.permute.xlu1 %1314 }
 0x246   :  { %5676 = vpow2.f32 %v1326_v6  ;;  %v1322_v19 = vsub.f32 %v6122_v5, %v1315_v16 }
 0x248   :  { %v5673_v42 = vpop.eup %5672  ;;  %v1324_v35 = vmul.f32 1.442695, %v1322_v19  ;;  %v1573_v60 = vpop.permute.xlu0 %1572 }
 0x249   :  { %v1580_v63 = vsub.f32 %v6136_v20, %v1573_v60  ;;  %v6552_v8 = vpop.permute.xlu1 %1098  ;;  %v1078_v57 = vsel %vm116_vm0, %v5673_v42, 0.0  ;;  %v5215_v20 = vpack.c.bf16 %v5673_v42, %v5673_v42 }
 0x24a   :  { %7552 = vst [vmem:[#allocation10_spill] sm:$0xff] %v6552_v8  ;;  %5678 = vpow2.f32 %v1324_v35  ;;  %1079 = vadd.xlane.f32.xlu0 %v1078_v57  ;;  %v5655_v57 = vld [vmem:[%s7538_s2 + $0x18] sm:$0xff]  }
 0x24b   :  { %v1582_v36 = vmul.f32 1.442695, %v1580_v63 }
 0x24c   :  { %v5675_v3 = vpop.eup %5674 }
 0x24d   :  { %5680 = vpow2.f32 %v1582_v36  ;;  %v1578_v21 = vpop.permute.xlu1 %1577  ;;  %v1075_v5 = vsel %vm116_vm0, %v5675_v3, 0.0  ;;  %v1088_v22 = vpack.c.bf16 %v5673_v42, %v5675_v3 }
 0x24e   :  { %v1581_v48 = vsub.f32 %v6129_v13, %v1578_v21  ;;  %1076 = vadd.xlane.f32.xlu0 %v1075_v5  ;;  %v1949_v13 = vrot.slane %v5215_v20, %v6169_v58 }
 0x24f   :  { %5467 = vmatmul.mubr.msk.bf16.vlgmr.msra.gmra.mrb[32].mxu1 %vm116_vm0, %v1088_v22  ;;  %v1942_v49 = vrot.slane %v1088_v22, %v6169_v58 }
 0x250   :  { %v6561_v47 = vpop.eup %5676  ;;  %v1584_v40 = vmul.f32 1.442695, %v1581_v48  ;;  %5478 = vmatpush3.bf16.msra.mxu1 %v5653_v46  ;;  %5479 = vmatprep.mubr.msk.bf16.mxu1 %vm5720_vm1, %v7541_v0  ;;  %v1965_v11 = vrot.slane %v1949_v13, %v6169_v58  ;;  %v1951_v42 = vcombine.high %v1949_v13, %v1949_v13 }
 0x251   :  { %v6565_v7 = vpop.permute.xlu1 %1351  ;;  %v1336_v43 = vsel %vm116_vm0, %v6561_v47, 0.0  ;;  %5490 = vmatprep.subr.bf16.mxu1 %v7541_v0  ;;  %v1950_v55 = vcombine.high %v1942_v49, %v1942_v49  ;;  %v5216_v36 = vpack.c.bf16 %v6561_v47, %v6561_v47 }
 0x252   :  { %7553 = vst [vmem:[#allocation11_spill] sm:$0xff] %v6565_v7  ;;  %5682 = vpow2.f32 %v1584_v40  ;;  %1337 = vadd.xlane.f32.xlu0 %v1336_v43  ;;  %v1993_v19 = vunpack.i.h.s16 %v1965_v11  ;;  %v5223_v3 = vpack.i.b16 %v1965_v11, %v1965_v11  ;;  %v6602_v40 = vcombine.high %v1965_v11, %v1965_v11 }
 0x253   :  { %v1972_v60 = vrot.slane %v1950_v55, %v6169_v58 }
 0x254   :  { %v5679_v10 = vpop.eup %5678  ;;  %v6599_v20 = vpack.i.b16 %v1993_v19, %v1993_v19  ;;  %v6608_v13 = vrot.slane %v5223_v3, %v6186_v18 }
 0x255   :  { %v1831_v52 = vpop.permute.xlu1 %1830  ;;  %v1333_v53 = vsel %vm116_vm0, %v5679_v10, 0.0  ;;  %v1345_v54 = vpack.c.bf16 %v6561_v47, %v5679_v10  ;;  %v1987_v43 = vunpack.i.h.s16 %v1972_v60  ;;  %v6611_v10 = vrot.slane %v1951_v42, %v6169_v58 }
 0x256   :  { %v1838_v24 = vsub.f32 %v6141_v28, %v1831_v52  ;;  %1334 = vadd.xlane.f32.xlu1 %v1333_v53  ;;  %v1958_v28 = vrot.slane %v1942_v49, %v6169_v58  ;;  %v6616_v53 = vrot.slane %v5216_v36, %v6169_v58 }
 0x257   :  { %v5681_v38 = vpop.eup %5680  ;;  %5480 = vmatmul.mubr.msk.bf16.vlgmr.msra.gmra.mrb[36].mxu1 %vm116_vm0, %v1345_v54  ;;  %v2008_v4 = vrot.slane %v1345_v54, %v6169_v58 }
 0x258   :  { %v1840_v1 = vmul.f32 1.442695, %v1838_v24  ;;  %v1591_v2 = vsel %vm116_vm0, %v5681_v38, 0.0  ;;  %5491 = vmatpush3.bf16.msra.mxu1 %v5654_v34  ;;  %5492 = vmatprep.mubr.msk.bf16.mxu1 %vm5720_vm1, %v7541_v0  ;;  %v1985_v22 = vunpack.i.h.s16 %v1958_v28  ;;  %v1980_v48 = vcombine.high %v1958_v28, %v1958_v28 }
 0x259   :  { %v1836_v6 = vpop.permute.xlu1 %1835  ;;  %5503 = vmatprep.subr.bf16.mxu1 %v7541_v0  ;;  %v2016_v46 = vcombine.high %v2008_v4, %v2008_v4  ;;  %v2024_v21 = vrot.slane %v2008_v4, %v6169_v58  ;;  %v5219_v34 = vpack.i.b16 %v1958_v28, %v1958_v28  ;;  %v5220_v24 = vpack.i.b16 %v1972_v60, %v1972_v60 }
 0x25a   :  { %5684 = vpow2.f32 %v1840_v1  ;;  %v1839_v16 = vsub.f32 %v6145_v30, %v1836_v6  ;;  %1592 = vadd.xlane.f32.xlu1 %v1591_v2  ;;  %v2199_v54 = vpack.i.b16 %v1985_v22, %v1985_v22  ;;  %v1989_v11 = vunpack.i.h.s16 %v1980_v48 }
 0x25b   :  { %v2038_v49 = vrot.slane %v2016_v46, %v6169_v58  ;;  %v2051_v52 = vunpack.i.h.s16 %v2024_v21  ;;  %v5227_v55 = vpack.i.b16 %v2024_v21, %v2024_v21  ;;  %v2046_v1 = vcombine.high %v2024_v21, %v2024_v21 }
 0x25c   :  { %v6587_v35 = vpop.eup %5682  ;;  %v1842_v63 = vmul.f32 1.442695, %v1839_v16  ;;  %v5221_v2 = vpack.i.b16 %v1980_v48, %v1980_v48  ;;  %v6620_v4 = vcombine.high %v1972_v60, %v1972_v60  ;;  %v6623_v28 = vpack.i.b16 %v1987_v43, %v1987_v43 }
 0x25d   :  { %v1594_v30 = vsel %vm116_vm0, %v6587_v35, 0.0  ;;  %v1603_v5 = vpack.c.bf16 %v6587_v35, %v5681_v38  ;;  %v2295_v36 = vpack.i.b16 %v2051_v52, %v2051_v52  ;;  %v5228_v3 = vpack.i.b16 %v2038_v49, %v2038_v49 }
 0x25e   :  { %5686 = vpow2.f32 %v1842_v63  ;;  %1595 = vadd.xlane.f32.xlu0 %v1594_v30  ;;  %v2221_v60 = vrot.slane %v2199_v54, %v6186_v18  ;;  %v6633_v46 = vrot.slane %v5220_v24, %v6186_v18  ;;  %v2053_v21 = vunpack.i.h.s16 %v2038_v49 }
 0x25f   :  { %5493 = vmatmul.mubr.msk.bf16.vlgmr.msra.gmra.mrb[40].mxu1 %vm116_vm0, %v1603_v5  ;;  %v2074_v47 = vrot.slane %v1603_v5, %v6169_v58  ;;  %v6635_v30 = vpack.i.b16 %v1989_v11, %v1989_v11  ;;  %v2313_v5 = vrot.slane %v5227_v55, %v6186_v18  ;;  %v6639_v22 = vrot.slane %v5221_v2, %v6186_v18 }
 0x260   :  { %5504 = vmatpush3.bf16.msra.mxu1 %v5655_v57  ;;  %5505 = vmatprep.mubr.msk.bf16.mxu1 %vm5720_vm1, %v7541_v0  ;;  %v6629_v57 = vrot.slane %v5219_v34, %v6186_v18  ;;  %v5229_v48 = vpack.i.b16 %v2046_v1, %v2046_v1  ;;  %v2229_v54 = vrot.slane %v6623_v28, %v6186_v18  ;;  %v2055_v24 = vunpack.i.h.s16 %v2046_v1 }
 0x261   :  { %5515 = vmatprep.subr.bf16.mxu1 %v7541_v0  ;;  %v2082_v16 = vcombine.high %v2074_v47, %v2074_v47  ;;  %v2090_v19 = vrot.slane %v2074_v47, %v6169_v58  ;;  %v5222_v47 = vpack.i.b16 %v6620_v4, %v6620_v4  ;;  %v2317_v2 = vrot.slane %v2295_v36, %v6186_v18 }
 0x262   :  { %v2297_v28 = vpack.i.b16 %v2053_v21, %v2053_v21  ;;  %v2237_v38 = vrot.slane %v6635_v30, %v6186_v18  ;;  %v2569_v36 = vsel %vm6657_vm6, %v6629_v57, %v2313_v5  ;;  %v6677_v7 = vcombine.high %v2038_v49, %v2038_v49 }
 0x263   :  { %v2104_v34 = vrot.slane %v2082_v16, %v6169_v58  ;;  %v2117_v52 = vunpack.i.h.s16 %v2090_v19  ;;  %v5235_v42 = vpack.i.b16 %v2090_v19, %v2090_v19  ;;  %v2112_v1 = vcombine.high %v2090_v19, %v2090_v19  ;;  %v5704_v19 = vld [vmem:[%s7532_s6 + $0x8] sm:$0xff]   ;;  %v5717_v16 = vld [vmem:[%s7532_s6 + $0x70] sm:$0xff]  }
 0x264   :  { %v5685_v6 = vpop.eup %5684  ;;  %v2570_v5 = vsel %vm6657_vm6, %v2221_v60, %v2317_v2 }
 0x265   :  { %v1849_v63 = vsel %vm116_vm0, %v5685_v6, 0.0  ;;  %v2391_v21 = vpack.i.b16 %v2117_v52, %v2117_v52  ;;  %v2119_v30 = vunpack.i.h.s16 %v2104_v34  ;;  %v5236_v52 = vpack.i.b16 %v2104_v34, %v2104_v34 }
 0x266   :  { %1850 = vadd.xlane.f32.xlu1 %v1849_v63  ;;  %v6653_v63 = vrot.slane %v5228_v3, %v6186_v18  ;;  %v2329_v3 = vrot.slane %v5229_v48, %v6186_v18  ;;  %v5237_v49 = vpack.i.b16 %v2112_v1, %v2112_v1 }
 0x267   :  { %v2417_v51 = vrot.slane %v5236_v52, %v6186_v18 }
 0x268   :  { %v6643_v43 = vpop.eup %5686  ;;  %v2571_v48 = vsel %vm6657_vm6, %v6633_v46, %v6653_v63  ;;  %v2573_v60 = vsel %vm6657_vm6, %v6639_v22, %v2329_v3  ;;  %v2393_v46 = vpack.i.b16 %v2119_v30, %v2119_v30  ;;  %v2121_v63 = vunpack.i.h.s16 %v2112_v1 }
 0x269   :  { %v1852_v11 = vsel %vm116_vm0, %v6643_v43, 0.0  ;;  %v1861_v55 = vpack.c.bf16 %v6643_v43, %v5685_v6  ;;  %v6707_v22 = vrot.slane %v6616_v53, %v6169_v58  ;;  %v2425_v61 = vrot.slane %v5237_v49, %v6186_v18 }
 0x26a   :  { %1853 = vadd.xlane.f32.xlu0 %v1852_v11  ;;  %v6670_v11 = vrot.slane %v5222_v47, %v6186_v18  ;;  %v2409_v47 = vrot.slane %v5235_v42, %v6186_v18  ;;  %v2413_v42 = vrot.slane %v2391_v21, %v6186_v18  ;;  %v5230_v1 = vpack.i.b16 %v6677_v7, %v6677_v7 }
 0x26b   :  { %5506 = vmatmul.mubr.msk.bf16.vlgmr.msra.gmra.mrb[44].mxu1 %vm116_vm0, %v1861_v55  ;;  %v2140_v6 = vrot.slane %v1861_v55, %v6169_v58  ;;  %v2299_v55 = vpack.i.b16 %v2055_v24, %v2055_v24  ;;  %v2325_v24 = vrot.slane %v2297_v28, %v6186_v18 }
 0x26c   :  { %5516 = vmatpush3.bf16.msra.mxu1 %v5704_v19  ;;  %5517 = vmatprep.mubr.msk.bf16.mxu1 %vm5720_vm1, %v7541_v0  ;;  %v2588_v3 = vsel %vm2566_vm13, %v2569_v36, %v2409_v47  ;;  %v2592_v36 = vsel %vm2566_vm13, %v2570_v5, %v2413_v42  ;;  %v2421_v47 = vrot.slane %v2393_v46, %v6186_v18  ;;  %v2059_v5 = vunpack.i.h.s16 %v6707_v22 }
 0x26d   :  { %v2148_v8 = vcombine.high %v2140_v6, %v2140_v6  ;;  %v2156_v57 = vrot.slane %v2140_v6, %v6169_v58  ;;  %5527 = vmatprep.subr.bf16.mxu1 %v7541_v0  ;;  %v2333_v28 = vrot.slane %v2299_v55, %v6186_v18  ;;  %v6719_v55 = vcombine.high %v2104_v34, %v2104_v34 }
 0x26e   :  { %v2572_v52 = vsel %vm6657_vm6, %v2229_v54, %v2325_v24  ;;  %v7558_v34 = vmov 0.0   ;;  %v2596_v54 = vsel %vm2566_vm13, %v2571_v48, %v2417_v51  ;;  %v6742_v24 = vrot.slane %v5230_v1, %v6186_v18 }
 0x26f   :  { %v5243_v19 = vpack.i.b16 %v2156_v57, %v2156_v57  ;;  %v2183_v12 = vunpack.i.h.s16 %v2156_v57  ;;  %v6690_v6 = vrot.slane %v2148_v8, %v6169_v58  ;;  %v2178_v49 = vcombine.high %v2156_v57, %v2156_v57 }
 0x270   :  { %v2574_v57 = vsel %vm6657_vm6, %v2237_v38, %v2333_v28  ;;  %v6750_v46 = vsel %vm2566_vm13, %v2573_v60, %v2425_v61  ;;  %v5238_v51 = vpack.i.b16 %v6719_v55, %v6719_v55  ;;  %v2600_v38 = vsel %vm2566_vm13, %v2572_v52, %v2421_v47 }
 0x271   :  { %v2489_v0 = vrot.slane %v5243_v19, %v6186_v18  ;;  %v2471_v8 = vpack.i.b16 %v2183_v12, %v2183_v12  ;;  %v2185_v25 = vunpack.i.h.s16 %v6690_v6  ;;  %v5244_v30 = vpack.i.b16 %v6690_v6, %v6690_v6  ;;  %v5705_v19 = vld [vmem:[%s7532_s6 + $0x10] sm:$0xff]  }
 0x272   :  { %v1991_v48 = vunpack.i.h.s16 %v6620_v4  ;;  %v5231_v60 = vpack.i.b16 %v6707_v22, %v6707_v22  ;;  %v2303_v1 = vpack.i.b16 %v2059_v5, %v2059_v5  ;;  %v5217_v4 = vpack.c.bf16 %v6587_v35, %v6587_v35 }
 0x273   :  { %v2653_v21 = vsel %vm6697_vm7, %v2588_v3, %v2489_v0  ;;  %v2493_v12 = vrot.slane %v2471_v8, %v6186_v18  ;;  %v2473_v8 = vpack.i.b16 %v2185_v25, %v2185_v25  ;;  %v6733_v3 = vpack.i.b16 %v2121_v63, %v2121_v63  ;;  %v5706_v25 = vld [vmem:[%s7532_s6 + $0x18] sm:$0xff]  }
 0x274   :  { %5512 = vmatmul.mubr.msk.bf16.vlgmr.msra.gmra.mrb[40].mxu0 %vm116_vm0, %v2653_v21  ;;  %v2497_v42 = vrot.slane %v5244_v30, %v6186_v18  ;;  %v2057_v63 = vunpack.i.h.s16 %v6677_v7  ;;  %v5245_v21 = vpack.i.b16 %v2178_v49, %v2178_v49  ;;  %v2017_v7 = vcombine.high %v6616_v53, %v6616_v53 }
 0x275   :  { %v2654_v0 = vsel %vm6697_vm7, %v2592_v36, %v2493_v12  ;;  %5522 = vmatpush3.bf16.msra.mxu0 %v5705_v19  ;;  %5523 = vmatprep.mubr.msk.bf16.mxu0 %vm5720_vm1, %v7558_v34  ;;  %v2501_v28 = vrot.slane %v2473_v8, %v6186_v18  ;;  %v2429_v61 = vrot.slane %v6733_v3, %v6186_v18  ;;  %v2123_v53 = vunpack.i.h.s16 %v6719_v55 }
 0x276   :  { %5518 = vmatmul.mubr.msk.bf16.vlgmr.msra.gmra.mrb[48].mxu1 %vm116_vm0, %v2654_v0  ;;  %5533 = vmatprep.subr.bf16.mxu0 %v7558_v34  ;;  %v2575_v12 = vsel %vm6657_vm6, %v6670_v11, %v6742_v24  ;;  %v2655_v30 = vsel %vm6697_vm7, %v2596_v54, %v2497_v42  ;;  %v5218_v36 = vpack.c.bf16 %v6643_v43, %v6643_v43  ;;  %v5707_v43 = vld [vmem:[%s7532_s6 + $0x20] sm:$0xff]   ;;  %v1995_v5 = vunpack.i.h.s16 %v6611_v10 }
 0x277   :  { %4099 = vperm.xlu1 %5634, %v6404_v56   ;;  %5528 = vmatpush3.bf16.msra.mxu1 %v5706_v25  ;;  %v2187_v56 = vunpack.i.h.s16 %v2178_v49  ;;  %v6779_v47 = vrot.slane %v5231_v60, %v6186_v18  ;;  %v2349_v52 = vrot.slane %v2303_v1, %v6186_v18  ;;  %v2180_v35 = vcombine.high %v6690_v6, %v6690_v6 }
 0x278   :  { %5529 = vmatprep.mubr.msk.bf16.mxu1 %vm5720_vm1, %v7558_v34  ;;  %5539 = vmatprep.subr.bf16.mxu1 %v7558_v34  ;;  %v2656_v49 = vsel %vm6697_vm7, %v2600_v38, %v2501_v28  ;;  %v7559_v55 = vrot.slane %v6599_v20, %v6186_v18  ;;  %v2433_v19 = vrot.slane %v5238_v51, %v6186_v18  ;;  %v5708_v20 = vld [vmem:[%s7532_s6 + $0x28] sm:$0xff]  }
 0x279   :  { %v2475_v11 = vpack.i.b16 %v2187_v56, %v2187_v56  ;;  %v2577_v6 = vsel %vm6657_vm6, %v6608_v13, %v6779_v47  ;;  %v2301_v8 = vpack.i.b16 %v2057_v63, %v2057_v63  ;;  %v6811_v3 = vrot.slane %v5217_v4, %v6169_v58 }
 0x27a   :  { %v6805_v0 = vsel %vm6657_vm6, %v7559_v55, %v2349_v52  ;;  %v2505_v54 = vrot.slane %v5245_v21, %v6186_v18  ;;  %v6820_v24 = vrot.slane %v5218_v36, %v6169_v58  ;;  %v2189_v42 = vunpack.i.h.s16 %v2180_v35  ;;  %v5709_v52 = vld [vmem:[%s7532_s6 + $0x30] sm:$0xff]   ;;  %v5710_v55 = vld [vmem:[%s7532_s6 + $0x38] sm:$0xff]  }
 0x27b   :  { %4109 = vperm.xlu1 %5634, %v6407_v59   ;;  %v6787_v59 = vrot.slane %v2017_v7, %v6169_v58  ;;  %v2397_v51 = vpack.i.b16 %v2123_v53, %v2123_v53  ;;  %v2509_v56 = vrot.slane %v2475_v11, %v6186_v18  ;;  %v5246_v63 = vpack.i.b16 %v2180_v35, %v2180_v35 }
 0x27c   :  { %5524 = vmatmul.mubr.msk.bf16.vlgmr.msra.gmra.mrb[44].mxu0 %vm116_vm0, %v2655_v30  ;;  %v7560_v28 = vpack.i.b16 %v6611_v10, %v6611_v10  ;;  %v2608_v1 = vsel %vm2566_vm13, %v2574_v57, %v2429_v61  ;;  %v6843_v21 = vrot.slane %v6811_v3, %v6169_v58  ;;  %v2209_v4 = vpack.i.b16 %v1995_v5, %v1995_v5 }
 0x27d   :  { %5534 = vmatpush3.bf16.msra.mxu0 %v5707_v43  ;;  %5535 = vmatprep.mubr.msk.bf16.mxu0 %vm5720_vm1, %v7558_v34  ;;  %v5232_v25 = vpack.i.b16 %v6787_v59, %v6787_v59  ;;  %v2061_v38 = vunpack.i.h.s16 %v6787_v59  ;;  %v2657_v7 = vsel %vm6697_vm7, %v6750_v46, %v2505_v54  ;;  %v2341_v30 = vrot.slane %v2301_v8, %v6186_v18 }
 0x27e   :  { %5530 = vmatmul.mubr.msk.bf16.vlgmr.msra.gmra.mrb[52].mxu1 %vm116_vm0, %v2656_v49  ;;  %5545 = vmatprep.subr.bf16.mxu0 %v7558_v34  ;;  %v6834_v60 = vrot.slane %v7560_v28, %v6186_v18  ;;  %v6852_v36 = vrot.slane %v6820_v24, %v6169_v58  ;;  %v2477_v61 = vpack.i.b16 %v2189_v42, %v2189_v42  ;;  %v2125_v35 = vunpack.i.h.s16 %v6843_v21 }
 0x27f   :  { %4119 = vperm.xlu1 %5634, %v6418_v23   ;;  %5540 = vmatpush3.bf16.msra.mxu1 %v5708_v20  ;;  %v2205_v23 = vpack.i.b16 %v1991_v48, %v1991_v48  ;;  %v2612_v48 = vsel %vm2566_vm13, %v2575_v12, %v2433_v19  ;;  %v2305_v12 = vpack.i.b16 %v2061_v38, %v2061_v38 }
 0x280   :  { %4094 = vperm.xlu0 %5635, %v6413_v31   ;;  %5541 = vmatprep.mubr.msk.bf16.mxu1 %vm5720_vm1, %v7558_v34  ;;  %v6837_v31 = vrot.slane %v5232_v25, %v6186_v18  ;;  %v2658_v46 = vsel %vm6697_vm7, %v2608_v1, %v2509_v56  ;;  %v2513_v11 = vrot.slane %v5246_v63, %v6186_v18  ;;  %v2191_v5 = vunpack.i.h.s16 %v6852_v36 }
 0x281   :  { %5551 = vmatprep.subr.bf16.mxu1 %v7558_v34  ;;  %v2083_v53 = vcombine.high %v6811_v3, %v6811_v3  ;;  %v2261_v49 = vrot.slane %v2209_v4, %v6186_v18  ;;  %v2357_v43 = vrot.slane %v2305_v12, %v6186_v18  ;;  %v5239_v8 = vpack.i.b16 %v6843_v21, %v6843_v21 }
 0x282   :  { %v2579_v57 = vsel %vm6657_vm6, %v6834_v60, %v6837_v31  ;;  %v2047_v3 = vcombine.high %v6707_v22, %v6707_v22  ;;  %v1997_v25 = vunpack.i.h.s16 %v6602_v40  ;;  %v5247_v22 = vpack.i.b16 %v6852_v36, %v6852_v36  ;;  %v5715_v31 = vld [vmem:[%s7532_s6 + $0x60] sm:$0xff]  }
 0x283   :  { %4129 = vperm.xlu1 %5634, %v6428_v33   ;;  %v2437_v33 = vrot.slane %v2397_v51, %v6186_v18  ;;  %v6895_v54 = vsel %vm6657_vm6, %v2261_v49, %v2357_v43  ;;  %v5225_v42 = vpack.i.b16 %v6602_v40, %v6602_v40  ;;  %v2659_v51 = vsel %vm6697_vm7, %v2612_v48, %v2513_v11 }
 0x284   :  { %4104 = vperm.xlu0 %5635, %v6431_v29   ;;  %5536 = vmatmul.mubr.msk.bf16.vlgmr.msra.gmra.mrb[48].mxu0 %vm116_vm0, %v2657_v7  ;;  %v2245_v29 = vrot.slane %v2205_v23, %v6186_v18  ;;  %v5233_v23 = vpack.i.b16 %v2047_v3, %v2047_v3  ;;  %v2399_v38 = vpack.i.b16 %v2125_v35, %v2125_v35  ;;  %v2063_v63 = vunpack.i.h.s16 %v2047_v3 }
 0x285   :  { %5546 = vmatpush3.bf16.msra.mxu0 %v5709_v52  ;;  %5547 = vmatprep.mubr.msk.bf16.mxu0 %vm5720_vm1, %v7558_v34  ;;  %v6908_v56 = vrot.slane %v2083_v53, %v6169_v58  ;;  %v2441_v28 = vrot.slane %v5239_v8, %v6186_v18  ;;  %v2479_v1 = vpack.i.b16 %v2191_v5, %v2191_v5  ;;  %v5712_v52 = vld [vmem:[%s7532_s6 + $0x48] sm:$0xff]  }
 0x286   :  { %5542 = vmatmul.mubr.msk.bf16.vlgmr.msra.gmra.mrb[56].mxu1 %vm116_vm0, %v2658_v46  ;;  %5557 = vmatprep.subr.bf16.mxu0 %v7558_v34  ;;  %v2576_v19 = vsel %vm6657_vm6, %v2245_v29, %v2341_v30  ;;  %v6913_v4 = vrot.slane %v5225_v42, %v6186_v18  ;;  %v2211_v48 = vpack.i.b16 %v1997_v25, %v1997_v25  ;;  %v5713_v25 = vld [vmem:[%s7532_s6 + $0x50] sm:$0xff]  }
 0x287   :  { %4139 = vperm.xlu1 %5634, %v6448_v39   ;;  %5552 = vmatpush3.bf16.msra.mxu1 %v5710_v55  ;;  %v2517_v39 = vrot.slane %v2477_v61, %v6186_v18  ;;  %v2616_v20 = vsel %vm2566_vm13, %v2576_v19, %v2437_v33  ;;  %v2307_v7 = vpack.i.b16 %v2063_v63, %v2063_v63  ;;  %v2127_v35 = vunpack.i.h.s16 %v6908_v56 }
 0x288   :  { %4114 = vperm.xlu0 %5635, %v6464_v41   ;;  %5553 = vmatprep.mubr.msk.bf16.mxu1 %vm5720_vm1, %v7558_v34  ;;  %v2149_v41 = vcombine.high %v6820_v24, %v6820_v24  ;;  %v6916_v24 = vrot.slane %v5233_v23, %v6186_v18  ;;  %v2521_v30 = vrot.slane %v5247_v22, %v6186_v18  ;;  %v5714_v23 = vld [vmem:[%s7532_s6 + $0x58] sm:$0xff]  }
 0x289   :  { %5563 = vmatprep.subr.bf16.mxu1 %v7558_v34  ;;  %v2660_v40 = vsel %vm6697_vm7, %v2616_v20, %v2517_v39  ;;  %v2445_v61 = vrot.slane %v2399_v38, %v6186_v18  ;;  %v2269_v12 = vrot.slane %v2211_v48, %v6186_v18  ;;  %v2365_v46 = vrot.slane %v2307_v7, %v6186_v18 }
 0x28a   :  { %v6929_v33 = vrot.slane %v2149_v41, %v6169_v58  ;;  %v2620_v11 = vsel %vm2566_vm13, %v2577_v6, %v2441_v28  ;;  %v2525_v29 = vrot.slane %v2479_v1, %v6186_v18  ;;  %v1983_v53 = vcombine.high %v6611_v10, %v6611_v10 }
 0x28b   :  { %4149 = vperm.xlu1 %5634, %v6485_v15   ;;  %v5711_v15 = vld [vmem:[%s7532_s6 + $0x40] sm:$0xff]   ;;  %v2049_v13 = vcombine.high %v6787_v59, %v6787_v59  ;;  %v2661_v47 = vsel %vm6697_vm7, %v2620_v11, %v2521_v30  ;;  %v2624_v43 = vsel %vm2566_vm13, %v6805_v0, %v2445_v61  ;;  %v2401_v8 = vpack.i.b16 %v2127_v35, %v2127_v35 }
 0x28c   :  { %4124 = vperm.xlu0 %5635, %v6488_v37   ;;  %5548 = vmatmul.mubr.msk.bf16.vlgmr.msra.gmra.mrb[52].mxu0 %vm116_vm0, %v2659_v51  ;;  %v2581_v37 = vsel %vm6657_vm6, %v6913_v4, %v6916_v24  ;;  %v5248_v6 = vpack.i.b16 %v6929_v33, %v6929_v33  ;;  %v2193_v49 = vunpack.i.h.s16 %v6929_v33  ;;  %v5226_v10 = vpack.i.b16 %v1983_v53, %v1983_v53 }
 0x28d   :  { %5558 = vmatpush3.bf16.msra.mxu0 %v5711_v15  ;;  %5559 = vmatprep.mubr.msk.bf16.mxu0 %vm5720_vm1, %v7558_v34  ;;  %v5234_v55 = vpack.i.b16 %v2049_v13, %v2049_v13  ;;  %v1999_v19 = vunpack.i.h.s16 %v1983_v53  ;;  %v2662_v59 = vsel %vm6697_vm7, %v2624_v43, %v2525_v29  ;;  %v2113_v5 = vcombine.high %v6843_v21, %v6843_v21 }
 0x28e   :  { %5554 = vmatmul.mubr.msk.bf16.vlgmr.msra.gmra.mrb[60].mxu1 %vm116_vm0, %v2660_v40  ;;  %5569 = vmatprep.subr.bf16.mxu0 %v7558_v34  ;;  %v2065_v3 = vunpack.i.h.s16 %v2049_v13  ;;  %v6980_v39 = vrot.slane %v5226_v10, %v6186_v18  ;;  %v2481_v21 = vpack.i.b16 %v2193_v49, %v2193_v49  ;;  %v2529_v51 = vrot.slane %v5248_v6, %v6186_v18 }
 0x28f   :  { %4159 = vperm.xlu1 %5634, %v6502_v45   ;;  %5564 = vmatpush3.bf16.msra.mxu1 %v5712_v52  ;;  %v6957_v45 = vsel %vm6657_vm6, %v2269_v12, %v2365_v46  ;;  %v6983_v0 = vrot.slane %v5234_v55, %v6186_v18  ;;  %v2213_v20 = vpack.i.b16 %v1999_v19, %v1999_v19  ;;  %v2129_v28 = vunpack.i.h.s16 %v2113_v5 }
 0x290   :  { %4134 = vperm.xlu0 %5635, %v6521_v50   ;;  %5565 = vmatprep.mubr.msk.bf16.mxu1 %vm5720_vm1, %v7558_v34  ;;  %v5240_v50 = vpack.i.b16 %v6908_v56, %v6908_v56  ;;  %v2309_v22 = vpack.i.b16 %v2065_v3, %v2065_v3  ;;  %v2453_v63 = vrot.slane %v2401_v8, %v6186_v18  ;;  %v7084_v3 = vpop.permute.xlu0 %1356 }
 0x291   :  { %5575 = vmatprep.subr.bf16.mxu1 %v7558_v34  ;;  %v2583_v42 = vsel %vm6657_vm6, %v6980_v39, %v6983_v0  ;;  %v2533_v1 = vrot.slane %v2481_v21, %v6186_v18  ;;  %v5241_v15 = vpack.i.b16 %v2113_v5, %v2113_v5  ;;  %v2403_v12 = vpack.i.b16 %v2129_v28, %v2129_v28  ;;  %v7090_v0 = vpop.permute.xlu1 %1614 }
 0x292   :  { %v2449_v41 = vrot.slane %v5240_v50, %v6186_v18  ;;  %v2373_v38 = vrot.slane %v2309_v22, %v6186_v18  ;;  %v2632_v61 = vsel %vm2566_vm13, %v6895_v54, %v2453_v63  ;;  %v2115_v46 = vcombine.high %v6908_v56, %v6908_v56  ;;  %v5716_v56 = vld [vmem:[%s7532_s6 + $0x68] sm:$0xff]  }
 0x293   :  { %v2664_v60 = vsel %vm6697_vm7, %v2632_v61, %v2533_v1  ;;  %v2457_v54 = vrot.slane %v5241_v15, %v6186_v18  ;;  %v2461_v11 = vrot.slane %v2403_v12, %v6186_v18 }
 0x294   :  { %4144 = vperm.xlu0 %5635, %v6529_v32   ;;  %5560 = vmatmul.mubr.msk.bf16.vlgmr.msra.gmra.mrb[56].mxu0 %vm116_vm0, %v2661_v47  ;;  %v2179_v32 = vcombine.high %v6852_v36, %v6852_v36  ;;  %v2277_v36 = vrot.slane %v2213_v20, %v6186_v18  ;;  %v2628_v7 = vsel %vm2566_vm13, %v2579_v57, %v2449_v41  ;;  %v1072_v20 = vld [vmem:[#allocation3 + $0x8] sm:$0xff] }
 0x295   :  { %5570 = vmatpush3.bf16.msra.mxu0 %v5713_v25  ;;  %5571 = vmatprep.mubr.msk.bf16.mxu0 %vm5720_vm1, %v7558_v34  ;;  %v2181_v57 = vcombine.high %v6929_v33, %v6929_v33  ;;  %v2131_v33 = vunpack.i.h.s16 %v2115_v46  ;;  %v2636_v53 = vsel %vm2566_vm13, %v2581_v37, %v2457_v54  ;;  %v5242_v13 = vpack.i.b16 %v2115_v46, %v2115_v46  ;;  %v5718_v37 = vld [vmem:[%s7532_s6 + $0x78] sm:$0xff]   ;;  %v7093_v41 = vpop.permute.xlu1 %1872  ;;  %v7561_v46 = vld [vmem:[#allocation6_spill] sm:$0xff]  ;;  %v1845_v54 = vld [vmem:[#allocation3 + $0x30] sm:$0xff] }
 0x296   :  { %5566 = vmatmul.mubr.msk.bf16.vlgmr.msra.gmra.mrb[64].mxu1 %vm116_vm0, %v2662_v59  ;;  %5581 = vmatprep.subr.bf16.mxu0 %v7558_v34  ;;  %v2195_v40 = vunpack.i.h.s16 %v2179_v32  ;;  %v2584_v48 = vsel %vm6657_vm6, %v2277_v36, %v2373_v38  ;;  %v5249_v30 = vpack.i.b16 %v2179_v32, %v2179_v32  ;;  %v2640_v6 = vsel %vm2566_vm13, %v6957_v45, %v2461_v11  ;;  %v1071_v32 = vld [vmem:[#allocation3] sm:$0xff] }
 0x297   :  { %5576 = vmatpush3.bf16.msra.mxu1 %v5714_v23  ;;  %5577 = vmatprep.mubr.msk.bf16.mxu1 %vm5720_vm1, %v7558_v34  ;;  %v2197_v35 = vunpack.i.h.s16 %v2181_v57  ;;  %v5250_v50 = vpack.i.b16 %v2181_v57, %v2181_v57  ;;  %v2405_v49 = vpack.i.b16 %v2131_v33, %v2131_v33  ;;  %v2465_v24 = vrot.slane %v5242_v13, %v6186_v18  ;;  %v1330_v23 = vld [vmem:[#allocation3 + $0x18] sm:$0xff] }
 0x298   :  { %4154 = vperm.xlu0 %5635, %v6537_v14   ;;  %5587 = vmatprep.subr.bf16.mxu1 %v7558_v34  ;;  %v2663_v14 = vsel %vm6697_vm7, %v2628_v7, %v2529_v51  ;;  %v2537_v52 = vrot.slane %v5249_v30, %v6186_v18  ;;  %v1074_v25 = vmul.f32 %v6183_v9, %v1072_v20  ;;  %v1329_v9 = vld [vmem:[#allocation3 + $0x10] sm:$0xff]  ;;  %v1588_v30 = vld [vmem:[#allocation3 + $0x28] sm:$0xff] }
 0x299   :  { %v2485_v4 = vpack.i.b16 %v2197_v35, %v2197_v35  ;;  %v2545_v45 = vrot.slane %v5250_v50, %v6186_v18  ;;  %v2469_v10 = vrot.slane %v2405_v49, %v6186_v18  ;;  %v2644_v19 = vsel %vm2566_vm13, %v2583_v42, %v2465_v24  ;;  %v7099_v38 = vpop.permute.xlu1 %4089  ;;  %v1347_v20 = vld [vmem:[#allocation4 + $0x10] sm:$0xff] }
 0x29a   :  { %v2665_v47 = vsel %vm6697_vm7, %v2636_v53, %v2537_v52  ;;  %v1073_v2 = vmul.f32 %v6171_v62, %v1071_v32  ;;  %v1332_v36 = vmul.f32 %v6216_v17, %v1330_v23  ;;  %v1587_v62 = vld [vmem:[#allocation3 + $0x20] sm:$0xff]  ;;  %v7562_v52 = vld [vmem:[#allocation7_spill] sm:$0xff] }
 0x29b   :  { %v2549_v55 = vrot.slane %v2485_v4, %v6186_v18  ;;  %v2667_v59 = vsel %vm6697_vm7, %v2644_v19, %v2545_v45  ;;  %v2648_v8 = vsel %vm2566_vm13, %v2584_v48, %v2469_v10  ;;  %v1847_v11 = vmul.f32 %v7562_v52, %v1845_v54  ;;  %v1089_v10 = vld [vmem:[#allocation4] sm:$0xff]  ;;  %v1090_v19 = vld [vmem:[#allocation4 + $0x8] sm:$0xff] }
 0x29c   :  { %4164 = vperm.xlu0 %5635, %v6543_v44   ;;  %5572 = vmatmul.mubr.msk.bf16.vlgmr.msra.gmra.mrb[60].mxu0 %vm116_vm0, %v2663_v14  ;;  %v2483_v44 = vpack.i.b16 %v2195_v40, %v2195_v40  ;;  %v1331_v40 = vmul.f32 %v6203_v27, %v1329_v9  ;;  %v1589_v14 = vmul.f32 %v6279_v26, %v1587_v62 }
 0x29d   :  { %5582 = vmatpush3.bf16.msra.mxu0 %v5715_v31  ;;  %5583 = vmatprep.mubr.msk.bf16.mxu0 %vm5720_vm1, %v7558_v34  ;;  %v2668_v5 = vsel %vm6697_vm7, %v2648_v8, %v2549_v55 }
 0x29e   :  { %5578 = vmatmul.mubr.msk.bf16.vlgmr.msra.gmra.mrb[68].mxu1 %vm116_vm0, %v2664_v60  ;;  %5593 = vmatprep.subr.bf16.mxu0 %v7558_v34  ;;  %v2541_v29 = vrot.slane %v2483_v44, %v6186_v18  ;;  %v1590_v60 = vmul.f32 %v7561_v46, %v1588_v30 }
 0x29f   :  { %5588 = vmatpush3.bf16.msra.mxu1 %v5716_v56  ;;  %5589 = vmatprep.mubr.msk.bf16.mxu1 %vm5720_vm1, %v7558_v34 }
 0x2a0   :  { %5599 = vmatprep.subr.bf16.mxu1 %v7558_v34  ;;  %v2666_v43 = vsel %vm6697_vm7, %v2640_v6, %v2541_v29  ;;  %v1846_v29 = vld [vmem:[#allocation3 + $0x38] sm:$0xff] }
 0x2a4   :  { %5584 = vmatmul.mubr.msk.bf16.vlgmr.msra.gmra.mrb[64].mxu0 %vm116_vm0, %v2665_v47  ;;  %v7563_v47 = vld [vmem:[#allocation8_spill] sm:$0xff] }
 0x2a5   :  { %5594 = vmatpush3.bf16.msra.mxu0 %v5717_v16  ;;  %5595 = vmatprep.mubr.msk.bf16.mxu0 %vm5720_vm1, %v7558_v34  ;;  %v1848_v50 = vmul.f32 %v7563_v47, %v1846_v29 }
 0x2a6   :  { %5590 = vmatmul.mubr.msk.bf16.vlgmr.msra.gmra.mrb[72].mxu1 %vm116_vm0, %v2666_v43 }
 0x2a7   :  { %5600 = vmatpush3.bf16.msra.mxu1 %v5718_v37  ;;  %5601 = vmatprep.mubr.msk.bf16.mxu1 %vm5720_vm1, %v7558_v34  ;;  %v7086_v34 = vpop.permute.xlu0 %1609 }
 0x2ab   :  { %v7088_v39 = vpop.permute.xlu0 %1867 }
 0x2ac   :  { %5596 = vmatmul.mubr.msk.bf16.vlgmr.msra.gmra.mrb[68].mxu0 %vm116_vm0, %v2667_v59 }
 0x2ae   :  { %5602 = vmatmul.mubr.msk.bf16.vlgmr.msra.gmra.mrb[76].mxu1 %vm116_vm0, %v2668_v5  ;;  %v1348_v5 = vld [vmem:[#allocation4 + $0x18] sm:$0xff] }
 0x2d7   :  { %v1080_v21 = vpop.xlane.xlu0 %1079 }
 0x2d8   :  { %v1082_v22 = vadd.f32 %v1080_v21, %v1074_v25 }
 0x2da   :  { %1085 = vst.msk [vmem:[#allocation3 + $0x8] sm:$0xff] %vm33_vm4, %v1082_v22  ;;  %v7564_v22 = vld [vmem:[#allocation9_spill] sm:$0xff] }
 0x2db   :  { %v1077_v42 = vpop.xlane.xlu0 %1076 }
 0x2dc   :  { %v1081_v51 = vadd.f32 %v1077_v42, %v1073_v2  ;;  %v7125_v2 = vmul.f32 %v7564_v22, %v1089_v10 }
 0x2de   :  { %1084 = vst.msk [vmem:[#allocation3] sm:$0xff] %vm33_vm4, %v1081_v51 }
 0x2df   :  { %v1338_v63 = vpop.xlane.xlu0 %1337 }
 0x2e0   :  { %v1340_v28 = vadd.f32 %v1338_v63, %v1332_v36  ;;  %v7565_v63 = vld [vmem:[#allocation10_spill] sm:$0xff] }
 0x2e1   :  { %v4220_v1 = vld [vmem:[#allocation3 + $0x8] sm:$0xff]  ;;  %v7132_v9 = vmul.f32 %v7565_v63, %v1090_v19 }
 0x2e2   :  { %1342 = vst.msk [vmem:[#allocation3 + $0x18] sm:$0xff] %vm33_vm4, %v1340_v28  ;;  %5688 = vrcp.f32 %v4220_v1 }
 0x2e3   :  { %v1335_v48 = vpop.xlane.xlu1 %1334 }
 0x2e4   :  { %v1339_v7 = vadd.f32 %v1335_v48, %v1331_v40  ;;  %v7139_v40 = vmul.f32 %v7084_v3, %v1348_v5  ;;  %v7566_v48 = vld [vmem:[#allocation11_spill] sm:$0xff] }
 0x2e5   :  { %v4219_v15 = vld [vmem:[#allocation3] sm:$0xff]  ;;  %v7142_v62 = vmul.f32 %v7566_v48, %v1347_v20 }
 0x2e6   :  { %1341 = vst.msk [vmem:[#allocation3 + $0x10] sm:$0xff] %vm33_vm4, %v1339_v7  ;;  %5690 = vrcp.f32 %v4219_v15 }
 0x2e7   :  { %v1593_v17 = vpop.xlane.xlu1 %1592 }
 0x2e8   :  { %v1597_v61 = vadd.f32 %v1593_v17, %v1589_v14 }
 0x2e9   :  { %v4240_v12 = vld [vmem:[#allocation3 + $0x18] sm:$0xff] }
 0x2ea   :  { %1599 = vst.msk [vmem:[#allocation3 + $0x20] sm:$0xff] %vm33_vm4, %v1597_v61  ;;  %5692 = vrcp.f32 %v4240_v12 }
 0x2eb   :  { %v1596_v27 = vpop.xlane.xlu0 %1595 }
 0x2ec   :  { %v5689_v31 = vpop.eup %5688  ;;  %v1598_v44 = vadd.f32 %v1596_v27, %v1590_v60 }
 0x2ed   :  { %4232 = vperm.xlu0 %5635, %v5689_v31   ;;  %v4239_v57 = vld [vmem:[#allocation3 + $0x10] sm:$0xff]  ;;  %v4358_v6 = vrot.slane %v5689_v31, %v6169_v58  ;;  %v4351_v24 = vcombine.high %v5689_v31, %v5689_v31 }
 0x2ee   :  { %1600 = vst.msk [vmem:[#allocation3 + $0x28] sm:$0xff] %vm33_vm4, %v1598_v44  ;;  %5694 = vrcp.f32 %v4239_v57 }
 0x2ef   :  { %v4366_v55 = vcombine.high %v4358_v6, %v4358_v6  ;;  %v7121_v25 = vrot.slane %v4358_v6, %v6169_v58  ;;  %v4365_v32 = vrot.slane %v4351_v24, %v6169_v58 }
 0x2f0   :  { %v5691_v26 = vpop.eup %5690 }
 0x2f1   :  { %4227 = vperm.xlu1 %5634, %v5691_v26   ;;  %v4260_v56 = vld [vmem:[#allocation3 + $0x20] sm:$0xff]  ;;  %v4309_v37 = vrot.slane %v5691_v26, %v6169_v58  ;;  %v4302_v45 = vcombine.high %v5691_v26, %v5691_v26  ;;  %v7136_v1 = vrot.slane %v4366_v55, %v6169_v58  ;;  %v4396_v61 = vcombine.high %v7121_v25, %v7121_v25 }
 0x2f2   :  { %5696 = vrcp.f32 %v4260_v56  ;;  %v4367_v12 = vcombine.high %v4365_v32, %v4365_v32  ;;  %v7162_v54 = vrot.slane %v4365_v32, %v6169_v58 }
 0x2f3   :  { %v1851_v33 = vpop.xlane.xlu1 %1850  ;;  %v4317_v51 = vcombine.high %v4309_v37, %v4309_v37  ;;  %v4316_v36 = vrot.slane %v4302_v45, %v6169_v58  ;;  %v7149_v30 = vrot.slane %v4309_v37, %v6169_v58  ;;  %v4398_v57 = vcombine.high %v7136_v1, %v7136_v1 }
 0x2f4   :  { %v5693_v35 = vpop.eup %5692  ;;  %v1855_v53 = vadd.f32 %v1851_v33, %v1847_v11 }
 0x2f5   :  { %4252 = vperm.xlu0 %5635, %v5693_v35   ;;  %v4261_v13 = vld [vmem:[#allocation3 + $0x28] sm:$0xff]  ;;  %v4472_v4 = vrot.slane %v5693_v35, %v6169_v58  ;;  %v4465_v59 = vcombine.high %v5693_v35, %v5693_v35  ;;  %v7154_v46 = vrot.slane %v4317_v51, %v6169_v58  ;;  %v7157_v27 = vrot.slane %v4316_v36, %v6169_v58 }
 0x2f6   :  { %1857 = vst.msk [vmem:[#allocation3 + $0x30] sm:$0xff] %vm33_vm4, %v1855_v53  ;;  %5698 = vrcp.f32 %v4261_v13  ;;  %v4318_v31 = vcombine.high %v4316_v36, %v4316_v36  ;;  %v7172_v35 = vrot.slane %v4367_v12, %v6169_v58  ;;  %v4347_v53 = vcombine.high %v7149_v30, %v7149_v30 }
 0x2f7   :  { %v1854_v49 = vpop.xlane.xlu0 %1853  ;;  %v4480_v21 = vcombine.high %v4472_v4, %v4472_v4  ;;  %v4488_v28 = vrot.slane %v4472_v4, %v6169_v58  ;;  %v4479_v15 = vrot.slane %v4465_v59, %v6169_v58  ;;  %v4349_v47 = vcombine.high %v7154_v46, %v7154_v46 }
 0x2f8   :  { %v7112_v43 = vpop.eup %5694  ;;  %v1856_v16 = vadd.f32 %v1854_v49, %v1848_v50  ;;  %v7182_v50 = vrot.slane %v4318_v31, %v6169_v58  ;;  %v4348_v6 = vcombine.high %v7157_v27, %v7157_v27 }
 0x2f9   :  { %4247 = vperm.xlu1 %5634, %v7112_v43   ;;  %v4423_v23 = vrot.slane %v7112_v43, %v6169_v58  ;;  %v4502_v17 = vrot.slane %v4480_v21, %v6169_v58  ;;  %v4510_v44 = vcombine.high %v4488_v28, %v4488_v28  ;;  %v7168_v52 = vrot.slane %v4479_v15, %v6169_v58 }
 0x2fa   :  { %1858 = vst.msk [vmem:[#allocation3 + $0x38] sm:$0xff] %vm33_vm4, %v1856_v16  ;;  %v4481_v11 = vcombine.high %v4479_v15, %v4479_v15  ;;  %v4745_v49 = vrot.slane %v4488_v28, %v6186_v18  ;;  %v4416_v21 = vcombine.high %v7112_v43, %v7112_v43 }
 0x2fb   :  { %v4431_v60 = vcombine.high %v4423_v23, %v4423_v23  ;;  %v7165_v26 = vrot.slane %v4423_v23, %v6169_v58  ;;  %v4512_v29 = vcombine.high %v4502_v17, %v4502_v17  ;;  %v4749_v16 = vrot.slane %v4502_v17, %v6186_v18 }
 0x2fc   :  { %v7118_v8 = vpop.eup %5696  ;;  %v4753_v24 = vrot.slane %v4510_v44, %v6186_v18  ;;  %v4761_v10 = vrot.slane %v7168_v52, %v6186_v18  ;;  %v7200_v55 = vrot.slane %v4481_v11, %v6169_v58  ;;  %v4350_v23 = vcombine.high %v7182_v50, %v7182_v50 }
 0x2fd   :  { %4268 = vperm.xlu1 %5634, %v7118_v8   ;;  %v4281_v42 = vld [vmem:[#allocation3 + $0x30] sm:$0xff]  ;;  %v4521_v7 = vrot.slane %v7118_v8, %v6169_v58  ;;  %v7177_v13 = vrot.slane %v4431_v60, %v6169_v58  ;;  %v4713_v37 = vrot.slane %v7165_v26, %v6186_v18  ;;  %v4757_v5 = vrot.slane %v4512_v29, %v6186_v18 }
 0x2fe   :  { %5700 = vrcp.f32 %v4281_v42  ;;  %v4958_v51 = vsel %vm2566_vm13, %v7121_v25, %v4745_v49  ;;  %v4959_v36 = vsel %vm2566_vm13, %v7136_v1, %v4749_v16  ;;  %v4960_v63 = vsel %vm2566_vm13, %v4396_v61, %v4753_v24 }
 0x2ff   :  { %v4529_v56 = vcombine.high %v4521_v7, %v4521_v7  ;;  %v7189_v4 = vrot.slane %v4521_v7, %v6169_v58  ;;  %v4717_v42 = vrot.slane %v7177_v13, %v6186_v18  ;;  %v4950_v28 = vsel %vm2566_vm13, %v7149_v30, %v4713_v37 }
 0x300   :  { %v5699_v14 = vpop.eup %5698  ;;  %v7228_v7 = vsel %vm2566_vm13, %v7162_v54, %v4761_v10  ;;  %v4765_v25 = vrot.slane %v7200_v55, %v6186_v18  ;;  %v7234_v17 = vsel %vm2566_vm13, %v4398_v57, %v4757_v5  ;;  %v4461_v57 = vcombine.high %v7165_v26, %v7165_v26 }
 0x301   :  { %4273 = vperm.xlu0 %5635, %v5699_v14   ;;  %v4282_v3 = vld [vmem:[#allocation3 + $0x38] sm:$0xff]  ;;  %v4570_v33 = vrot.slane %v5699_v14, %v6169_v58  ;;  %v7195_v45 = vrot.slane %v4529_v56, %v6169_v58  ;;  %v4563_v20 = vcombine.high %v5699_v14, %v5699_v14  ;;  %v4793_v43 = vrot.slane %v7189_v4, %v6186_v18 }
 0x302   :  { %5702 = vrcp.f32 %v4282_v3  ;;  %v4951_v3 = vsel %vm2566_vm13, %v7154_v46, %v4717_v42  ;;  %v7249_v16 = vsel %vm2566_vm13, %v7172_v35, %v4765_v25 }
 0x303   :  { %v4578_v59 = vcombine.high %v4570_v33, %v4570_v33  ;;  %v4586_v32 = vrot.slane %v4570_v33, %v6169_v58  ;;  %v4797_v48 = vrot.slane %v7195_v45, %v6186_v18  ;;  %v4577_v61 = vrot.slane %v4563_v20, %v6169_v58 }
 0x304   :  { %v4966_v11 = vsel %vm2650_vm14, %v4950_v28, %v4793_v43  ;;  %v4559_v28 = vcombine.high %v7189_v4, %v7189_v4 }
 0x305   :  { %v4600_v1 = vrot.slane %v4578_v59, %v6169_v58  ;;  %v4608_v60 = vcombine.high %v4586_v32, %v4586_v32  ;;  %v4825_v44 = vrot.slane %v4586_v32, %v6186_v18  ;;  %v4967_v49 = vsel %vm2650_vm14, %v4951_v3, %v4797_v48 }
 0x306   :  { %v7254_v10 = vrot.slane %v4577_v61, %v6169_v58  ;;  %v4579_v59 = vcombine.high %v4577_v61, %v4577_v61 }
 0x307   :  { %v4829_v24 = vrot.slane %v4600_v1, %v6186_v18  ;;  %v4833_v20 = vrot.slane %v4608_v60, %v6186_v18  ;;  %v4610_v43 = vcombine.high %v4600_v1, %v4600_v1 }
 0x308   :  { %v7202_v19 = vpop.eup %5700  ;;  %v7272_v1 = vrot.slane %v4579_v59, %v6169_v58 }
 0x309   :  { %4289 = vperm.xlu1 %5634, %v7202_v19   ;;  %v4619_v22 = vrot.slane %v7202_v19, %v6169_v58  ;;  %v4975_v61 = vsel %vm2650_vm14, %v4959_v36, %v4829_v24  ;;  %v4976_v3 = vsel %vm2650_vm14, %v4960_v63, %v4833_v20  ;;  %v4463_v36 = vcombine.high %v7177_v13, %v7177_v13 }
 0x30a   :  { %v4514_v63 = vcombine.high %v7118_v8, %v7118_v8  ;;  %v4612_v59 = vcombine.high %v7202_v19, %v7202_v19  ;;  %v4561_v13 = vcombine.high %v7195_v45, %v7195_v45 }
 0x30b   :  { %v4627_v14 = vcombine.high %v4619_v22, %v4619_v22  ;;  %v4635_v56 = vrot.slane %v4619_v22, %v6169_v58  ;;  %v4974_v22 = vsel %vm2650_vm14, %v4958_v51, %v4825_v44  ;;  %v4841_v51 = vrot.slane %v7254_v10, %v6186_v18 }
 0x30c   :  { %v5703_v15 = vpop.eup %5702  ;;  %v4626_v8 = vrot.slane %v4612_v59, %v6169_v58 }
 0x30d   :  { %4294 = vperm.xlu0 %5635, %v5703_v15   ;;  %v4668_v12 = vrot.slane %v5703_v15, %v6169_v58  ;;  %v4661_v31 = vcombine.high %v5703_v15, %v5703_v15  ;;  %v4649_v37 = vrot.slane %v4627_v14, %v6169_v58  ;;  %v4873_v42 = vrot.slane %v4635_v56, %v6186_v18 }
 0x30e   :  { %v4721_v14 = vrot.slane %v4461_v57, %v6186_v18  ;;  %v4837_v57 = vrot.slane %v4610_v43, %v6186_v18  ;;  %v4978_v19 = vsel %vm2650_vm14, %v7228_v7, %v4841_v51  ;;  %v4725_v43 = vrot.slane %v4463_v36, %v6186_v18 }
 0x30f   :  { %v4684_v33 = vrot.slane %v4668_v12, %v6169_v58  ;;  %v4676_v29 = vcombine.high %v4668_v12, %v4668_v12  ;;  %v4675_v32 = vrot.slane %v4661_v31, %v6169_v58  ;;  %v4877_v12 = vrot.slane %v4649_v37, %v6186_v18 }
 0x310   :  { %v4982_v44 = vsel %vm3350_vm15, %v4966_v11, %v4873_v42  ;;  %v4801_v42 = vrot.slane %v4559_v28, %v6186_v18  ;;  %v4952_v28 = vsel %vm2566_vm13, %v4347_v53, %v4721_v14  ;;  %v4642_v36 = vrot.slane %v4626_v8, %v6169_v58 }
 0x311   :  { %v4905_v5 = vrot.slane %v4684_v33, %v6186_v18  ;;  %v4698_v26 = vrot.slane %v4676_v29, %v6169_v58  ;;  %v4706_v15 = vcombine.high %v4684_v33, %v4684_v33  ;;  %v4677_v31 = vcombine.high %v4675_v32, %v4675_v32 }
 0x312   :  { %v4430_v33 = vrot.slane %v4416_v21, %v6169_v58  ;;  %v7283_v24 = vrot.slane %v4675_v32, %v6169_v58  ;;  %v4983_v11 = vsel %vm3350_vm15, %v4967_v49, %v4877_v12  ;;  %v4528_v32 = vrot.slane %v4514_v63, %v6169_v58 }
 0x313   :  { %v4990_v48 = vsel %vm3350_vm15, %v4974_v22, %v4905_v5  ;;  %v4909_v25 = vrot.slane %v4698_v26, %v6186_v18  ;;  %v4708_v60 = vcombine.high %v4698_v26, %v4698_v26  ;;  %v4913_v29 = vrot.slane %v4706_v15, %v6186_v18 }
 0x314   :  { %5056 = vperm.xlu1 %5634, %v4990_v48   ;;  %v4657_v5 = vcombine.high %v4635_v56, %v4635_v56  ;;  %v4659_v26 = vcombine.high %v4649_v37, %v4649_v37  ;;  %v7294_v20 = vrot.slane %v4677_v31, %v6169_v58  ;;  %v4845_v56 = vrot.slane %v7272_v1, %v6186_v18 }
 0x315   :  { %v4991_v4 = vsel %vm3350_vm15, %v4975_v61, %v4909_v25  ;;  %v4917_v21 = vrot.slane %v4708_v60, %v6186_v18  ;;  %v4446_v49 = vrot.slane %v4430_v33, %v6169_v58  ;;  %v4432_v45 = vcombine.high %v4430_v33, %v4430_v33 }
 0x316   :  { %5061 = vperm.xlu0 %5635, %v4991_v4   ;;  %v4992_v37 = vsel %vm3350_vm15, %v4976_v3, %v4913_v29  ;;  %v4921_v22 = vrot.slane %v7283_v24, %v6186_v18  ;;  %v4977_v48 = vsel %vm2650_vm14, %v7234_v17, %v4837_v57  ;;  %v4881_v7 = vrot.slane %v4657_v5, %v6186_v18 }
 0x317   :  { %v4805_v25 = vrot.slane %v4561_v13, %v6186_v18  ;;  %v4530_v15 = vcombine.high %v4528_v32, %v4528_v32  ;;  %v4993_v61 = vsel %vm3350_vm15, %v4977_v48, %v4917_v21  ;;  %v4925_v12 = vrot.slane %v7294_v20, %v6186_v18 }
 0x318   :  { %5016 = vperm.xlu1 %5634, %v4982_v44   ;;  %v4885_v51 = vrot.slane %v4659_v26, %v6186_v18  ;;  %v4628_v4 = vcombine.high %v4626_v8, %v4626_v8  ;;  %v4544_v17 = vrot.slane %v4528_v32, %v6169_v58  ;;  %v4729_v3 = vrot.slane %v4446_v49, %v6186_v18 }
 0x319   :  { %v4460_v60 = vrot.slane %v4432_v45, %v6169_v58  ;;  %v4994_v31 = vsel %vm3350_vm15, %v4978_v19, %v4921_v22  ;;  %v4968_v44 = vsel %vm2650_vm14, %v4952_v28, %v4801_v42  ;;  %v4953_v57 = vsel %vm2566_vm13, %v4349_v47, %v4725_v43 }
 0x31a   :  { %5021 = vperm.xlu0 %5635, %v4983_v11   ;;  %v4979_v30 = vsel %vm2650_vm14, %v7249_v16, %v4845_v56  ;;  %v4984_v53 = vsel %vm3350_vm15, %v4968_v44, %v4881_v7  ;;  %v4969_v14 = vsel %vm2650_vm14, %v4953_v57, %v4805_v25  ;;  %v4558_v33 = vrot.slane %v4530_v15, %v6169_v58 }
 0x31b   :  { %v4995_v29 = vsel %vm3350_vm15, %v4979_v30, %v4925_v12  ;;  %v4985_v63 = vsel %vm3350_vm15, %v4969_v14, %v4885_v51  ;;  %v4656_v46 = vrot.slane %v4628_v4, %v6169_v58  ;;  %v4462_v59 = vcombine.high %v4446_v49, %v4446_v49 }
 0x31c   :  { %5066 = vperm.xlu1 %5634, %v4992_v37   ;;  %v4809_v11 = vrot.slane %v4544_v17, %v6186_v18  ;;  %v4954_v16 = vsel %vm2566_vm13, %v7157_v27, %v4729_v3  ;;  %v4733_v5 = vrot.slane %v4460_v60, %v6186_v18  ;;  %v4560_v13 = vcombine.high %v4544_v17, %v4544_v17 }
 0x31d   :  { %v4889_v32 = vrot.slane %v4642_v36, %v6186_v18  ;;  %v4658_v8 = vcombine.high %v4642_v36, %v4642_v36  ;;  %v4464_v19 = vcombine.high %v4460_v60, %v4460_v60  ;;  %v4813_v58 = vrot.slane %v4558_v33, %v6186_v18 }
 0x31e   :  { %5071 = vperm.xlu0 %5635, %v4993_v61   ;;  %v4562_v49 = vcombine.high %v4558_v33, %v4558_v33  ;;  %v4511_v45 = vcombine.high %v7168_v52, %v7168_v52  ;;  %v4609_v37 = vcombine.high %v7254_v10, %v7254_v10  ;;  %v4893_v42 = vrot.slane %v4656_v46, %v6186_v18 }
 0x31f   :  { %v4737_v43 = vrot.slane %v4462_v59, %v6186_v18  ;;  %v4660_v48 = vcombine.high %v4656_v46, %v4656_v46  ;;  %v4970_v7 = vsel %vm2650_vm14, %v4954_v16, %v4809_v11  ;;  %v4955_v25 = vsel %vm2566_vm13, %v7182_v50, %v4733_v5  ;;  %v1605_v59 = vld [vmem:[#allocation4 + $0x20] sm:$0xff]  ;;  %v1606_v16 = vld [vmem:[#allocation4 + $0x28] sm:$0xff] }
 0x320   :  { %5076 = vperm.xlu1 %5634, %v4994_v31   ;;  %v4817_v52 = vrot.slane %v4560_v13, %v6186_v18  ;;  %v4707_v10 = vcombine.high %v7283_v24, %v7283_v24  ;;  %v4897_v15 = vrot.slane %v4658_v8, %v6186_v18  ;;  %v4741_v61 = vrot.slane %v4464_v19, %v6186_v18 }
 0x321   :  { %v4513_v12 = vcombine.high %v7200_v55, %v7200_v55  ;;  %v4971_v51 = vsel %vm2650_vm14, %v4955_v25, %v4813_v58  ;;  %v4821_v4 = vrot.slane %v4562_v49, %v6186_v18  ;;  %v4769_v28 = vrot.slane %v4511_v45, %v6186_v18  ;;  %v4095_v58 = vpop.permute.xlu0 %4094  ;;  %v1863_v49 = vld [vmem:[#allocation4 + $0x30] sm:$0xff]  ;;  %v1864_v45 = vld [vmem:[#allocation4 + $0x38] sm:$0xff] }
 0x322   :  { %v1148_v47 = vpop.f32.mrb[32].mxu1  ;;  %5081 = vperm.xlu0 %5635, %v4995_v29   ;;  %v4611_v24 = vcombine.high %v7272_v1, %v7272_v1  ;;  %v4987_v17 = vsel %vm3350_vm15, %v4971_v51, %v4893_v42  ;;  %v4956_v3 = vsel %vm2566_vm13, %v4348_v6, %v4737_v43  ;;  %v4901_v60 = vrot.slane %v4660_v48, %v6186_v18  ;;  %v4100_v48 = vpop.permute.xlu1 %4099 }
 0x323   :  { %v1155_v26 = vadd.f32 %v1148_v47, %v7125_v2  ;;  %v5468_v21 = vpop.f32.mrb[33].mxu1  ;;  %v4709_v55 = vcombine.high %v7294_v20, %v7294_v20  ;;  %v4972_v44 = vsel %vm2650_vm14, %v4956_v3, %v4817_v52  ;;  %v4397_v57 = vcombine.high %v7162_v54, %v7162_v54 }
 0x324   :  { %v1151_v56 = vpop.f32.mrb[34].mxu1  ;;  %5026 = vperm.xlu1 %5634, %v4984_v53   ;;  %v4849_v1 = vrot.slane %v4609_v37, %v6186_v18  ;;  %v4929_v36 = vrot.slane %v4707_v10, %v6186_v18  ;;  %v4988_v6 = vsel %vm3350_vm15, %v4972_v44, %v4897_v15  ;;  %v4957_v20 = vsel %vm2566_vm13, %v4350_v23, %v4741_v61  ;;  %v4071_v10 = vld [vmem:[#allocation5] sm:$0xf] }
 0x325   :  { %1158 = vst.msk [vmem:[#allocation4] sm:$0xff] %vm50_vm12, %v1155_v26  ;;  %v1156_v2 = vadd.f32 %v1151_v56, %v7132_v9  ;;  %v5469_v22 = vpop.f32.mrb[35].mxu1  ;;  %v4986_v9 = vsel %vm3350_vm15, %v4970_v7, %v4889_v32  ;;  %v4773_v53 = vrot.slane %v4513_v12, %v6186_v18  ;;  %v4973_v54 = vsel %vm2650_vm14, %v4957_v20, %v4821_v4  ;;  %v4105_v37 = vpop.permute.xlu0 %4104 }
 0x326   :  { %5031 = vperm.xlu0 %5635, %v4985_v63   ;;  %v4399_v33 = vcombine.high %v7172_v35, %v7172_v35  ;;  %v4853_v29 = vrot.slane %v4611_v24, %v6186_v18  ;;  %v4989_v50 = vsel %vm3350_vm15, %v4973_v54, %v4901_v60  ;;  %v4964_v23 = vsel %vm2566_vm13, %v4397_v57, %v4769_v28  ;;  %v4110_v61 = vpop.permute.xlu1 %4109  ;;  %v4074_v57 = vld [vmem:[#allocation5 + $0xc] sm:$0xf] }
 0x327   :  { %1159 = vst.msk [vmem:[#allocation4 + $0x8] sm:$0xff] %vm50_vm12, %v1156_v2  ;;  %v4933_v46 = vrot.slane %v4709_v55, %v6186_v18  ;;  %v4980_v47 = vsel %vm2650_vm14, %v4964_v23, %v4849_v1  ;;  %v1617_v5 = vmul.f32 %v7086_v34, %v1605_v59  ;;  %v1618_v18 = vmul.f32 %v7090_v0, %v1606_v16  ;;  %v4073_v55 = vld [vmem:[#allocation5 + $0x8] sm:$0xf]  ;;  %v4076_v23 = vld [vmem:[#allocation5 + $0x14] sm:$0xf] }
 0x328   :  { %5036 = vperm.xlu1 %5634, %v4986_v9   ;;  %v4996_v35 = vsel %vm3350_vm15, %v4980_v47, %v4929_v36  ;;  %v4965_v11 = vsel %vm2566_vm13, %v4399_v33, %v4773_v53  ;;  %v1875_v34 = vmul.f32 %v7088_v39, %v1863_v49  ;;  %v1876_v22 = vmul.f32 %v7093_v41, %v1864_v45  ;;  %v4072_v9 = vld [vmem:[#allocation5 + $0x4] sm:$0xf] }
 0x329   :  { %v4115_v52 = vpop.permute.xlu0 %4114  ;;  %v4167_v15 = vmul.f32 %v7099_v38, %v4071_v10  ;;  %v4168_v12 = vmul.f32 %v4095_v58, %v4072_v9  ;;  %v4169_v38 = vmul.f32 %v4100_v48, %v4073_v55  ;;  %v4081_v55 = vld [vmem:[#allocation5 + $0x28] sm:$0xf] }
 0x32a   :  { %v1407_v31 = vpop.f32.mrb[36].mxu1  ;;  %5041 = vperm.xlu0 %5635, %v4987_v17   ;;  %v4120_v1 = vpop.permute.xlu1 %4119 }
 0x32b   :  { %v1414_v27 = vadd.f32 %v1407_v31, %v7142_v62  ;;  %v5481_v30 = vpop.f32.mrb[37].mxu1 }
 0x32c   :  { %v1410_v14 = vpop.f32.mrb[38].mxu1  ;;  %5046 = vperm.xlu1 %5634, %v4988_v6  }
 0x32d   :  { %1416 = vst.msk [vmem:[#allocation4 + $0x10] sm:$0xff] %vm50_vm12, %v1414_v27  ;;  %v1415_v62 = vadd.f32 %v1410_v14, %v7139_v40  ;;  %v5482_v63 = vpop.f32.mrb[39].mxu1  ;;  %v4981_v40 = vsel %vm2650_vm14, %v4965_v11, %v4853_v29  ;;  %v4125_v51 = vpop.permute.xlu0 %4124  ;;  %v4170_v27 = vmul.f32 %v4105_v37, %v4074_v57 }
 0x32e   :  { %5051 = vperm.xlu0 %5635, %v4989_v50   ;;  %v4997_v13 = vsel %vm3350_vm15, %v4981_v40, %v4933_v46  ;;  %v4130_v59 = vpop.permute.xlu1 %4129 }
 0x32f   :  { %1417 = vst.msk [vmem:[#allocation4 + $0x18] sm:$0xff] %vm50_vm12, %v1415_v62  ;;  %v4075_v62 = vld [vmem:[#allocation5 + $0x10] sm:$0xf] }
 0x330   :  { %5086 = vperm.xlu1 %5634, %v4996_v35   ;;  %v4171_v46 = vmul.f32 %v4110_v61, %v4075_v62  ;;  %v4172_v35 = vmul.f32 %v4115_v52, %v4076_v23 }
 0x331   :  { %v4135_v30 = vpop.permute.xlu0 %4134 }
 0x332   :  { %v1665_v26 = vpop.f32.mrb[40].mxu1  ;;  %5091 = vperm.xlu0 %5635, %v4997_v13   ;;  %v4140_v49 = vpop.permute.xlu1 %4139 }
 0x333   :  { %v1672_v21 = vadd.f32 %v1665_v26, %v1617_v5  ;;  %v5494_v32 = vpop.f32.mrb[41].mxu1 }
 0x334   :  { %v1668_v8 = vpop.f32.mrb[42].mxu1  ;;  %v4077_v32 = vld [vmem:[#allocation5 + $0x18] sm:$0xf] }
 0x335   :  { %1674 = vst.msk [vmem:[#allocation4 + $0x20] sm:$0xff] %vm50_vm12, %v1672_v21  ;;  %v1673_v19 = vadd.f32 %v1668_v8, %v1618_v18  ;;  %v5495_v56 = vpop.f32.mrb[43].mxu1  ;;  %v4145_v11 = vpop.permute.xlu0 %4144  ;;  %v4173_v58 = vmul.f32 %v4120_v1, %v4077_v32 }
 0x336   :  { %v4078_v56 = vld [vmem:[#allocation5 + $0x1c] sm:$0xf]  ;;  %v4150_v9 = vpop.permute.xlu1 %4149 }
 0x337   :  { %1675 = vst.msk [vmem:[#allocation4 + $0x28] sm:$0xff] %vm50_vm12, %v1673_v19  ;;  %v4174_v37 = vmul.f32 %v4125_v51, %v4078_v56 }
 0x33e   :  { %v1923_v2 = vpop.f32.mrb[44].mxu1 }
 0x33f   :  { %v1930_v42 = vadd.f32 %v1923_v2, %v1875_v34  ;;  %v5507_v0 = vpop.f32.mrb[45].mxu1  ;;  %v7420_v34 = vpop.permute.xlu0 %4154 }
 0x340   :  { %v1926_v43 = vpop.f32.mrb[46].mxu1 }
 0x341   :  { %1932 = vst.msk [vmem:[#allocation4 + $0x30] sm:$0xff] %vm50_vm12, %v1930_v42  ;;  %v1931_v7 = vadd.f32 %v1926_v43, %v1876_v22  ;;  %v5508_v25 = vpop.f32.mrb[47].mxu1 }
 0x342   :  { %v4079_v25 = vld [vmem:[#allocation5 + $0x20] sm:$0xf] }
 0x343   :  { %1933 = vst.msk [vmem:[#allocation4 + $0x38] sm:$0xff] %vm50_vm12, %v1931_v7  ;;  %v4175_v61 = vmul.f32 %v4130_v59, %v4079_v25  ;;  %v7424_v51 = vpop.permute.xlu0 %4164  ;;  %v4083_v59 = vld [vmem:[#allocation5 + $0x30] sm:$0xf] }
 0x347   :  { %v3405_v39 = vpop.f32.mrb[40].mxu0 }
 0x348   :  { %v4183_v41 = vadd.f32 %v4167_v15, %v3405_v39  ;;  %v5513_v4 = vpop.f32.mrb[41].mxu0  ;;  %v4080_v15 = vld [vmem:[#allocation5 + $0x24] sm:$0xf] }
 0x349   :  { %v3408_v28 = vpop.f32.mrb[42].mxu0  ;;  %v3449_v24 = vpop.f32.mrb[48].mxu1 }
 0x34a   :  { %4200 = vst.msk [vmem:[#allocation5] sm:$0xf] %vm59_vm2, %v4183_v41  ;;  %v4184_v17 = vadd.f32 %v4168_v12, %v3449_v24  ;;  %v5514_v3 = vpop.f32.mrb[43].mxu0  ;;  %v5519_v60 = vpop.f32.mrb[49].mxu1  ;;  %v4176_v12 = vmul.f32 %v4135_v30, %v4080_v15  ;;  %v4177_v30 = vmul.f32 %v4140_v49, %v4081_v55 }
 0x34b   :  { %v3452_v31 = vpop.f32.mrb[50].mxu1 }
 0x34c   :  { %4201 = vst.msk [vmem:[#allocation5 + $0x4] sm:$0xf] %vm59_vm2, %v4184_v17  ;;  %v5520_v44 = vpop.f32.mrb[51].mxu1  ;;  %v4160_v31 = vpop.permute.xlu1 %4159 }
 0x34f   :  { %v3493_v36 = vpop.f32.mrb[44].mxu0 }
 0x350   :  { %v4185_v6 = vadd.f32 %v4169_v38, %v3493_v36  ;;  %v5525_v20 = vpop.f32.mrb[45].mxu0  ;;  %v4224_v38 = vld [vmem:[#allocation4 + $0x8] sm:$0xff] }
 0x351   :  { %v3496_v53 = vpop.f32.mrb[46].mxu0  ;;  %v3537_v14 = vpop.f32.mrb[52].mxu1  ;;  %v4082_v36 = vld [vmem:[#allocation5 + $0x2c] sm:$0xf] }
 0x352   :  { %4202 = vst.msk [vmem:[#allocation5 + $0x8] sm:$0xf] %vm59_vm2, %v4185_v6  ;;  %v4186_v54 = vadd.f32 %v4170_v27, %v3537_v14  ;;  %v5526_v33 = vpop.f32.mrb[47].mxu0  ;;  %v5531_v29 = vpop.f32.mrb[53].mxu1  ;;  %v4178_v20 = vmul.f32 %v4145_v11, %v4082_v36  ;;  %v4244_v11 = vld [vmem:[#allocation4 + $0x18] sm:$0xff] }
 0x353   :  { %v3540_v63 = vpop.f32.mrb[54].mxu1 }
 0x354   :  { %4203 = vst.msk [vmem:[#allocation5 + $0xc] sm:$0xf] %vm59_vm2, %v4186_v54  ;;  %v5532_v50 = vpop.f32.mrb[55].mxu1  ;;  %v4223_v54 = vld [vmem:[#allocation4] sm:$0xff] }
 0x357   :  { %v3581_v47 = vpop.f32.mrb[48].mxu0 }
 0x358   :  { %v4187_v16 = vadd.f32 %v4171_v46, %v3581_v47  ;;  %v5537_v40 = vpop.f32.mrb[49].mxu0 }
 0x359   :  { %v3584_v5 = vpop.f32.mrb[50].mxu0  ;;  %v3625_v13 = vpop.f32.mrb[56].mxu1  ;;  %v4084_v40 = vld [vmem:[#allocation5 + $0x34] sm:$0xf] }
 0x35a   :  { %4204 = vst.msk [vmem:[#allocation5 + $0x10] sm:$0xf] %vm59_vm2, %v4187_v16  ;;  %v4188_v26 = vadd.f32 %v4172_v35, %v3625_v13  ;;  %v5538_v18 = vpop.f32.mrb[51].mxu0  ;;  %v5543_v21 = vpop.f32.mrb[57].mxu1  ;;  %v4179_v13 = vmul.f32 %v4150_v9, %v4083_v59 }
 0x35b   :  { %v3628_v8 = vpop.f32.mrb[58].mxu1  ;;  %v4180_v18 = vmul.f32 %v7420_v34, %v4084_v40 }
 0x35c   :  { %4205 = vst.msk [vmem:[#allocation5 + $0x14] sm:$0xf] %vm59_vm2, %v4188_v26  ;;  %v5544_v19 = vpop.f32.mrb[59].mxu1  ;;  %v4243_v8 = vld [vmem:[#allocation4 + $0x10] sm:$0xff] }
 0x35f   :  { %v3669_v45 = vpop.f32.mrb[52].mxu0 }
 0x360   :  { %v4189_v2 = vadd.f32 %v4173_v58, %v3669_v45  ;;  %v5549_v22 = vpop.f32.mrb[53].mxu0 }
 0x361   :  { %v3672_v42 = vpop.f32.mrb[54].mxu0  ;;  %v3713_v0 = vpop.f32.mrb[60].mxu1  ;;  %v4085_v22 = vld [vmem:[#allocation5 + $0x38] sm:$0xf] }
 0x362   :  { %4206 = vst.msk [vmem:[#allocation5 + $0x18] sm:$0xf] %vm59_vm2, %v4189_v2  ;;  %v4190_v43 = vadd.f32 %v4174_v37, %v3713_v0  ;;  %v5550_v48 = vpop.f32.mrb[55].mxu0  ;;  %v5555_v7 = vpop.f32.mrb[61].mxu1  ;;  %v4264_v0 = vld [vmem:[#allocation4 + $0x20] sm:$0xff]  ;;  %v4181_v25 = vmul.f32 %v4160_v31, %v4085_v22 }
 0x363   :  { %v3716_v52 = vpop.f32.mrb[62].mxu1  ;;  %v4086_v48 = vld [vmem:[#allocation5 + $0x3c] sm:$0xf] }
 0x364   :  { %4207 = vst.msk [vmem:[#allocation5 + $0x1c] sm:$0xf] %vm59_vm2, %v4190_v43  ;;  %v5556_v10 = vpop.f32.mrb[63].mxu1 }
 0x365   :  { %v4182_v10 = vmul.f32 %v7424_v51, %v4086_v48 }
 0x367   :  { %v3757_v39 = vpop.f32.mrb[56].mxu0 }
 0x368   :  { %v4191_v41 = vadd.f32 %v4175_v61, %v3757_v39  ;;  %v5561_v4 = vpop.f32.mrb[57].mxu0  ;;  %v4265_v61 = vld [vmem:[#allocation4 + $0x28] sm:$0xff] }
 0x369   :  { %v3760_v28 = vpop.f32.mrb[58].mxu0  ;;  %v3801_v24 = vpop.f32.mrb[64].mxu1  ;;  %v5004_v22 = vld [vmem:[#allocation5 + $0x18] sm:$0xf] }
 0x36a   :  { %4208 = vst.msk [vmem:[#allocation5 + $0x20] sm:$0xf] %vm59_vm2, %v4191_v41  ;;  %v4192_v17 = vadd.f32 %v4176_v12, %v3801_v24  ;;  %v5562_v3 = vpop.f32.mrb[59].mxu0  ;;  %v5567_v60 = vpop.f32.mrb[65].mxu1 }
 0x36b   :  { %v3804_v44 = vpop.f32.mrb[66].mxu1  ;;  %v4285_v60 = vld [vmem:[#allocation4 + $0x30] sm:$0xff] }
 0x36c   :  { %4209 = vst.msk [vmem:[#allocation5 + $0x24] sm:$0xf] %vm59_vm2, %v4192_v17  ;;  %v5568_v57 = vpop.f32.mrb[67].mxu1  ;;  %v4233_v1 = vpop.permute.xlu0 %4232  ;;  %v4286_v44 = vld [vmem:[#allocation4 + $0x38] sm:$0xff] }
 0x36d   :  { %v4236_v27 = vmul.f32 %v4233_v1, %v4224_v38 }
 0x36f   :  { %4238 = vst.msk [vmem:[%s7539_s7 + $0x8] sm:$0xff] %vm50_vm12, %v4236_v27  ;;  %v3845_v6 = vpop.f32.mrb[60].mxu0 }
 0x370   :  { %v4193_v53 = vadd.f32 %v4177_v30, %v3845_v6  ;;  %v5573_v14 = vpop.f32.mrb[61].mxu0  ;;  %v4228_v33 = vpop.permute.xlu1 %4227 }
 0x371   :  { %v4235_v29 = vmul.f32 %v4228_v33, %v4223_v54  ;;  %v3848_v62 = vpop.f32.mrb[62].mxu0  ;;  %v3889_v63 = vpop.f32.mrb[68].mxu1  ;;  %v5006_v1 = vld [vmem:[#allocation5 + $0x20] sm:$0xf]  ;;  %v4999_v33 = vld [vmem:[#allocation5 + $0x4] sm:$0xf] }
 0x372   :  { %4210 = vst.msk [vmem:[#allocation5 + $0x28] sm:$0xf] %vm59_vm2, %v4193_v53  ;;  %v4194_v50 = vadd.f32 %v4178_v20, %v3889_v63  ;;  %v5574_v23 = vpop.f32.mrb[63].mxu0  ;;  %v5579_v46 = vpop.f32.mrb[69].mxu1  ;;  %v4998_v53 = vld [vmem:[#allocation5] sm:$0xf] }
 0x373   :  { %4237 = vst.msk [vmem:[%s7539_s7] sm:$0xff] %vm50_vm12, %v4235_v29  ;;  %v3892_v47 = vpop.f32.mrb[70].mxu1  ;;  %v5007_v30 = vld [vmem:[#allocation5 + $0x24] sm:$0xf] }
 0x374   :  { %4211 = vst.msk [vmem:[#allocation5 + $0x2c] sm:$0xf] %vm59_vm2, %v4194_v50  ;;  %v5580_v35 = vpop.f32.mrb[71].mxu1  ;;  %v4253_v16 = vpop.permute.xlu0 %4252 }
 0x375   :  { %v4256_v5 = vmul.f32 %v4253_v16, %v4244_v11 }
 0x377   :  { %5268 = vst.msk [vmem:[%s7539_s7 + $0x18] sm:$0xff] %vm50_vm12, %v4256_v5  ;;  %v3933_v26 = vpop.f32.mrb[64].mxu0 }
 0x378   :  { %v4195_v21 = vadd.f32 %v4179_v13, %v3933_v26  ;;  %v5585_v32 = vpop.f32.mrb[65].mxu0  ;;  %v4248_v19 = vpop.permute.xlu1 %4247  ;;  %v5000_v26 = vld [vmem:[#allocation5 + $0x8] sm:$0xf] }
 0x379   :  { %v4255_v56 = vmul.f32 %v4248_v19, %v4243_v8  ;;  %v3936_v58 = vpop.f32.mrb[66].mxu0  ;;  %v3977_v49 = vpop.f32.mrb[72].mxu1  ;;  %v5008_v63 = vld [vmem:[#allocation5 + $0x28] sm:$0xf]  ;;  %v5001_v32 = vld [vmem:[#allocation5 + $0xc] sm:$0xf] }
 0x37a   :  { %4212 = vst.msk [vmem:[#allocation5 + $0x30] sm:$0xf] %vm59_vm2, %v4195_v21  ;;  %v4196_v45 = vadd.f32 %v4180_v18, %v3977_v49  ;;  %v5586_v37 = vpop.f32.mrb[67].mxu0  ;;  %v5591_v2 = vpop.f32.mrb[73].mxu1 }
 0x37b   :  { %5267 = vst.msk [vmem:[%s7539_s7 + $0x10] sm:$0xff] %vm50_vm12, %v4255_v56  ;;  %v3980_v42 = vpop.f32.mrb[74].mxu1  ;;  %v5009_v46 = vld [vmem:[#allocation5 + $0x2c] sm:$0xf]  ;;  %v5002_v56 = vld [vmem:[#allocation5 + $0x10] sm:$0xf] }
 0x37c   :  { %4213 = vst.msk [vmem:[#allocation5 + $0x34] sm:$0xf] %vm59_vm2, %v4196_v45  ;;  %v5592_v34 = vpop.f32.mrb[75].mxu1  ;;  %v4269_v43 = vpop.permute.xlu1 %4268  ;;  %v5003_v45 = vld [vmem:[#allocation5 + $0x14] sm:$0xf] }
 0x37d   :  { %v4276_v7 = vmul.f32 %v4269_v43, %v4264_v0  ;;  %v5005_v0 = vld [vmem:[#allocation5 + $0x1c] sm:$0xf] }
 0x37f   :  { %5269 = vst.msk [vmem:[%s7539_s7 + $0x20] sm:$0xff] %vm50_vm12, %v4276_v7  ;;  %v4021_v52 = vpop.f32.mrb[68].mxu0 }
 0x380   :  { %v4197_v9 = vadd.f32 %v4181_v25, %v4021_v52  ;;  %v5597_v15 = vpop.f32.mrb[69].mxu0  ;;  %v4274_v39 = vpop.permute.xlu0 %4273 }
 0x381   :  { %v4277_v12 = vmul.f32 %v4274_v39, %v4265_v61  ;;  %v4024_v41 = vpop.f32.mrb[70].mxu0  ;;  %v4065_v4 = vpop.f32.mrb[76].mxu1  ;;  %v5010_v35 = vld [vmem:[#allocation5 + $0x30] sm:$0xf] }
 0x382   :  { %4214 = vst.msk [vmem:[#allocation5 + $0x38] sm:$0xf] %vm59_vm2, %v4197_v9  ;;  %v4198_v28 = vadd.f32 %v4182_v10, %v4065_v4  ;;  %v5598_v24 = vpop.f32.mrb[71].mxu0  ;;  %v5603_v17 = vpop.f32.mrb[77].mxu1 }
 0x383   :  { %5270 = vst.msk [vmem:[%s7539_s7 + $0x28] sm:$0xff] %vm50_vm12, %v4277_v12  ;;  %v4068_v3 = vpop.f32.mrb[78].mxu1  ;;  %v5011_v40 = vld [vmem:[#allocation5 + $0x34] sm:$0xf] }
 0x384   :  { %4215 = vst.msk [vmem:[#allocation5 + $0x3c] sm:$0xf] %vm59_vm2, %v4198_v28  ;;  %v5604_v51 = vpop.f32.mrb[79].mxu1 }
 0x388   :  { %v4290_v55 = vpop.permute.xlu1 %4289 }
 0x389   :  { %v4297_v31 = vmul.f32 %v4290_v55, %v4285_v60  ;;  %v5012_v7 = vld [vmem:[#allocation5 + $0x38] sm:$0xf] }
 0x38b   :  { %5271 = vst.msk [vmem:[%s7539_s7 + $0x30] sm:$0xff] %vm50_vm12, %v4297_v31  ;;  %v5013_v10 = vld [vmem:[#allocation5 + $0x3c] sm:$0xf] }
 0x38c   :  { %v4295_v57 = vpop.permute.xlu0 %4294 }
 0x38d   :  { %v4298_v38 = vmul.f32 %v4295_v57, %v4286_v44 }
 0x38f   :  { %5272 = vst.msk [vmem:[%s7539_s7 + $0x38] sm:$0xff] %vm50_vm12, %v4298_v38 }
 0x393   :  { %v5057_v36 = vpop.permute.xlu1 %5056 }
 0x394   :  { %v5102_v27 = vmul.f32 %v5057_v36, %v5006_v1 }
 0x395   :  { %v5062_v6 = vpop.permute.xlu0 %5061 }
 0x396   :  { %5118 = vst.msk [vmem:[%s7540_s8 + $0x20] sm:$0xf] %vm59_vm2, %v5102_v27  ;;  %v5103_v20 = vmul.f32 %v5062_v6, %v5007_v30 }
 0x397   :  { %v5017_v14 = vpop.permute.xlu1 %5016 }
 0x398   :  { %5119 = vst.msk [vmem:[%s7540_s8 + $0x24] sm:$0xf] %vm59_vm2, %v5103_v20  ;;  %v5094_v54 = vmul.f32 %v5017_v14, %v4998_v53 }
 0x399   :  { %v5022_v29 = vpop.permute.xlu0 %5021 }
 0x39a   :  { %5110 = vst.msk [vmem:[%s7540_s8] sm:$0xf] %vm59_vm2, %v5094_v54  ;;  %v5095_v62 = vmul.f32 %v5022_v29, %v4999_v33 }
 0x39b   :  { %v5067_v50 = vpop.permute.xlu1 %5066 }
 0x39c   :  { %5111 = vst.msk [vmem:[%s7540_s8 + $0x4] sm:$0xf] %vm59_vm2, %v5095_v62  ;;  %v5104_v23 = vmul.f32 %v5067_v50, %v5008_v63 }
 0x39d   :  { %v5072_v59 = vpop.permute.xlu0 %5071 }
 0x39e   :  { %5120 = vst.msk [vmem:[%s7540_s8 + $0x28] sm:$0xf] %vm59_vm2, %v5104_v23  ;;  %v5105_v47 = vmul.f32 %v5072_v59, %v5009_v46 }
 0x39f   :  { %v5077_v11 = vpop.permute.xlu1 %5076 }
 0x3a0   :  { %5121 = vst.msk [vmem:[%s7540_s8 + $0x2c] sm:$0xf] %vm59_vm2, %v5105_v47  ;;  %v5106_v16 = vmul.f32 %v5077_v11, %v5010_v35 }
 0x3a1   :  { %v5082_v5 = vpop.permute.xlu0 %5081 }
 0x3a2   :  { %5122 = vst.msk [vmem:[%s7540_s8 + $0x30] sm:$0xf] %vm59_vm2, %v5106_v16  ;;  %v5107_v13 = vmul.f32 %v5082_v5, %v5011_v40 }
 0x3a3   :  { %v5027_v18 = vpop.permute.xlu1 %5026 }
 0x3a4   :  { %5123 = vst.msk [vmem:[%s7540_s8 + $0x34] sm:$0xf] %vm59_vm2, %v5107_v13  ;;  %v5096_v21 = vmul.f32 %v5027_v18, %v5000_v26 }
 0x3a5   :  { %v5032_v8 = vpop.permute.xlu0 %5031 }
 0x3a6   :  { %5112 = vst.msk [vmem:[%s7540_s8 + $0x8] sm:$0xf] %vm59_vm2, %v5096_v21  ;;  %v5097_v19 = vmul.f32 %v5032_v8, %v5001_v32 }
 0x3a7   :  { %v5037_v58 = vpop.permute.xlu1 %5036 }
 0x3a8   :  { %5113 = vst.msk [vmem:[%s7540_s8 + $0xc] sm:$0xf] %vm59_vm2, %v5097_v19  ;;  %v5098_v49 = vmul.f32 %v5037_v58, %v5002_v56 }
 0x3a9   :  { %v5042_v37 = vpop.permute.xlu0 %5041 }
 0x3aa   :  { %5114 = vst.msk [vmem:[%s7540_s8 + $0x10] sm:$0xf] %vm59_vm2, %v5098_v49  ;;  %v5099_v2 = vmul.f32 %v5042_v37, %v5003_v45 }
 0x3ab   :  { %v5047_v42 = vpop.permute.xlu1 %5046 }
 0x3ac   :  { %5115 = vst.msk [vmem:[%s7540_s8 + $0x14] sm:$0xf] %vm59_vm2, %v5099_v2  ;;  %v5100_v34 = vmul.f32 %v5047_v42, %v5004_v22 }
 0x3ad   :  { %v5052_v43 = vpop.permute.xlu0 %5051 }
 0x3ae   :  { %5116 = vst.msk [vmem:[%s7540_s8 + $0x18] sm:$0xf] %vm59_vm2, %v5100_v34  ;;  %v5101_v48 = vmul.f32 %v5052_v43, %v5005_v0 }
 0x3af   :  { %v5087_v25 = vpop.permute.xlu1 %5086 }
 0x3b0   :  { %5117 = vst.msk [vmem:[%s7540_s8 + $0x1c] sm:$0xf] %vm59_vm2, %v5101_v48  ;;  %v5108_v52 = vmul.f32 %v5087_v25, %v5012_v7 }
 0x3b1   :  { %v5092_v9 = vpop.permute.xlu0 %5091 }
 0x3b2   :  { %5124 = vst.msk [vmem:[%s7540_s8 + $0x38] sm:$0xf] %vm59_vm2, %v5108_v52  ;;  %v5109_v15 = vmul.f32 %v5092_v9, %v5013_v10 }
 0x3b4   :  { %5125 = vst.msk [vmem:[%s7540_s8 + $0x3c] sm:$0xf] %vm59_vm2, %v5109_v15 }

</bundles_post_ra>
